<compile_context>
chip_gen: v6e
topology: v6e:2x2x1
jax: 0.10.0
libtpu: 0.0.40
codegen_flags: <defaults>
</compile_context>

<pallas_src>
import functools

import jax
import jax.numpy as jnp
from jax.experimental import pallas as pl
from jax.experimental.pallas import tpu as pltpu

# --- config (synthetic, mirrors config['autoencoder']) -----------------------
WINDOW_SIZE = 8          # config['autoencoder']['window_size']
NUM_FEATURES = 16        # config['autoencoder']['input_dim']
INPUT_DIM = WINDOW_SIZE * NUM_FEATURES   # 128

# encoder: INPUT_DIM->256->128->64->32 (tanh after each)
# decoder: 32->64->128->256->INPUT_DIM (tanh after all but the last layer)
LAYER_DIMS = [INPUT_DIM, 256, 128, 64, 32, 64, 128, 256, INPUT_DIM]
NUM_LAYERS = len(LAYER_DIMS) - 1   # 8 linear layers


def _round_up(x, m):
    return ((x + m - 1) // m) * m


def _ae_kernel(x_ref, *refs, mxu_dtype=None):
    """refs = (w0, b0, w1, b1, ..., w7, b7, out_ref).

    Each weight w_i is a full [in_i, out_i] block, each bias b_i is [1, out_i].
    One batch tile's full forward pass runs in this body so everything stays
    on-chip.
    """
    out_ref = refs[-1]
    param_refs = refs[:-1]

    h = x_ref[...]
    if h.dtype != jnp.float32:
        h = h.astype(jnp.float32)

    # Keep this loop Python-unrolled (8 fixed layers) for LLO scheduler visibility.
    for layer in range(NUM_LAYERS):
        w = param_refs[2 * layer][...]
        b = param_refs[2 * layer + 1][...]
        lhs, rhs = h, w
        if mxu_dtype is not None:
            # MXU operands only; accumulation stays f32.
            lhs = lhs.astype(mxu_dtype)
            rhs = rhs.astype(mxu_dtype)
        h = jnp.dot(lhs, rhs, preferred_element_type=jnp.float32) + b
        if layer < NUM_LAYERS - 1:
            h = jnp.tanh(h)   # f32 VPU/EUP path (safe on v5e; fine on v6e/v7x)
    out_ref[...] = h.astype(out_ref.dtype)


def autoencoder_forward(x, params, *, bm=512, mxu_dtype=None):
    """x: [B, INPUT_DIM]; params: list of (w[in,out], b[1,out]). Returns [B, INPUT_DIM]."""
    B, D = x.shape
    assert D == INPUT_DIM, f"expected feature dim {INPUT_DIM}, got {D}"

    # Effective batch tile: as big as requested (amortizes ~0.35us per-step
    # pipeline overhead, fills MXU rows) but never bigger than the 8-rounded
    # batch. Ragged batches are zero-padded and sliced off after the call.
    bm_eff = _round_up(min(bm, _round_up(B, 8)), 8)
    Bp = _round_up(B, bm_eff)
    x_in = jnp.pad(x, ((0, Bp - B), (0, 0))) if Bp != B else x
    grid = (Bp // bm_eff,)

    in_specs = [pl.BlockSpec((bm_eff, D), lambda i: (i, 0))]
    flat_params = []
    for (w, b) in params:
        # Constant index maps -> fetched once, kept VMEM-resident across steps.
        in_specs.append(pl.BlockSpec(w.shape, lambda i: (0, 0)))
        in_specs.append(pl.BlockSpec(b.shape, lambda i: (0, 0)))
        flat_params.extend([w, b])

    # Advisory cost estimate for XLA's scheduler.
    mac_per_row = sum(LAYER_DIMS[i] * LAYER_DIMS[i + 1] for i in range(NUM_LAYERS))
    tanh_per_row = sum(LAYER_DIMS[i + 1] for i in range(NUM_LAYERS - 1))
    param_bytes = sum(w.size * w.dtype.itemsize + b.size * b.dtype.itemsize
                      for (w, b) in params)
    cost = pl.CostEstimate(
        flops=2 * Bp * mac_per_row,
        transcendentals=Bp * tanh_per_row,
        bytes_accessed=2 * Bp * D * x.dtype.itemsize + param_bytes,
    )

    out = pl.pallas_call(
        functools.partial(_ae_kernel, mxu_dtype=mxu_dtype),
        out_shape=jax.ShapeDtypeStruct((Bp, D), x.dtype),
        grid_spec=pltpu.PrefetchScalarGridSpec(
            num_scalar_prefetch=0,
            grid=grid,
            in_specs=in_specs,
            out_specs=pl.BlockSpec((bm_eff, D), lambda i: (i, 0)),
        ),
        compiler_params=pltpu.CompilerParams(
            dimension_semantics=("parallel",)),
        cost_estimate=cost,
    )(x_in, *flat_params)

    return out[:B] if Bp != B else out


def init_params(key):
    """Deterministic init mimicking PyTorch nn.Linear default (U[-1/sqrt(in), 1/sqrt(in)])."""
    params = []
    for layer in range(NUM_LAYERS):
        fan_in = LAYER_DIMS[layer]
        fan_out = LAYER_DIMS[layer + 1]
        key, kw, kb = jax.random.split(key, 3)
        bound = 1.0 / (fan_in ** 0.5)
        w = jax.random.uniform(kw, (fan_in, fan_out), jnp.float32, -bound, bound)
        b = jax.random.uniform(kb, (1, fan_out), jnp.float32, -bound, bound)
        params.append((w, b))
    return params


def reference_forward(x, params):
    h = x
    for layer, (w, b) in enumerate(params):
        h = h @ w + b
        if layer < NUM_LAYERS - 1:
            h = jnp.tanh(h)
    return h


if __name__ == "__main__":
    key = jax.random.PRNGKey(0)
    key, kx = jax.random.split(key)
    params = init_params(key)

    # Batch chosen so bm=256 gives a 2-step "parallel" grid (one step per v7x TC)
    # while staying small.
    B = 512
    x = jax.random.normal(kx, (B, INPUT_DIM), jnp.float32)

    out = jax.block_until_ready(autoencoder_forward(x, params, bm=256))
    ref = reference_forward(x, params)
    assert out.shape == (B, INPUT_DIM)
    assert jnp.allclose(out, ref, atol=1e-4, rtol=1e-4), "mismatch vs JAX reference"

    # Ragged batch (not a multiple of 8 or of the tile) exercises the padding path.
    x_small = jax.random.normal(jax.random.PRNGKey(1), (100, INPUT_DIM), jnp.float32)
    out_small = jax.block_until_ready(autoencoder_forward(x_small, params, bm=512))
    ref_small = reference_forward(x_small, params)
    assert out_small.shape == (100, INPUT_DIM)
    assert jnp.allclose(out_small, ref_small, atol=1e-4, rtol=1e-4), "ragged-batch mismatch"

    print("KERNEL_OK")
</pallas_src>

<mosaic_0001>
module attributes {stable_mosaic.version = 11 : i64} {
  func.func @_ae_kernel(%arg0: i32, %arg1: memref<256x128xf32, #tpu.memory_space<vmem>>, %arg2: memref<128x256xf32, #tpu.memory_space<vmem>>, %arg3: memref<1x256xf32, #tpu.memory_space<vmem>>, %arg4: memref<256x128xf32, #tpu.memory_space<vmem>>, %arg5: memref<1x128xf32, #tpu.memory_space<vmem>>, %arg6: memref<128x64xf32, #tpu.memory_space<vmem>>, %arg7: memref<1x64xf32, #tpu.memory_space<vmem>>, %arg8: memref<64x32xf32, #tpu.memory_space<vmem>>, %arg9: memref<1x32xf32, #tpu.memory_space<vmem>>, %arg10: memref<32x64xf32, #tpu.memory_space<vmem>>, %arg11: memref<1x64xf32, #tpu.memory_space<vmem>>, %arg12: memref<64x128xf32, #tpu.memory_space<vmem>>, %arg13: memref<1x128xf32, #tpu.memory_space<vmem>>, %arg14: memref<128x256xf32, #tpu.memory_space<vmem>>, %arg15: memref<1x256xf32, #tpu.memory_space<vmem>>, %arg16: memref<256x128xf32, #tpu.memory_space<vmem>>, %arg17: memref<1x128xf32, #tpu.memory_space<vmem>>, %arg18: memref<256x128xf32, #tpu.memory_space<vmem>>) attributes {dimension_semantics = [#tpu.dimension_semantics<parallel>], iteration_bounds = array<i64: 2>, scalar_prefetch = 0 : i64, scratch_operands = 0 : i64, tpu.core_type = #tpu.core_type<tc>, window_params = [{transform_indices = @transform_0, window_bounds = array<i64: 256, 128>}, {pipeline_mode = #tpu.pipeline_mode<synchronous>, transform_indices = @transform_1, window_bounds = array<i64: 128, 256>}, {pipeline_mode = #tpu.pipeline_mode<synchronous>, transform_indices = @transform_2, window_bounds = array<i64: 1, 256>}, {pipeline_mode = #tpu.pipeline_mode<synchronous>, transform_indices = @transform_3, window_bounds = array<i64: 256, 128>}, {pipeline_mode = #tpu.pipeline_mode<synchronous>, transform_indices = @transform_4, window_bounds = array<i64: 1, 128>}, {pipeline_mode = #tpu.pipeline_mode<synchronous>, transform_indices = @transform_5, window_bounds = array<i64: 128, 64>}, {pipeline_mode = #tpu.pipeline_mode<synchronous>, transform_indices = @transform_6, window_bounds = array<i64: 1, 64>}, {pipeline_mode = #tpu.pipeline_mode<synchronous>, transform_indices = @transform_7, window_bounds = array<i64: 64, 32>}, {pipeline_mode = #tpu.pipeline_mode<synchronous>, transform_indices = @transform_8, window_bounds = array<i64: 1, 32>}, {pipeline_mode = #tpu.pipeline_mode<synchronous>, transform_indices = @transform_9, window_bounds = array<i64: 32, 64>}, {pipeline_mode = #tpu.pipeline_mode<synchronous>, transform_indices = @transform_10, window_bounds = array<i64: 1, 64>}, {pipeline_mode = #tpu.pipeline_mode<synchronous>, transform_indices = @transform_11, window_bounds = array<i64: 64, 128>}, {pipeline_mode = #tpu.pipeline_mode<synchronous>, transform_indices = @transform_12, window_bounds = array<i64: 1, 128>}, {pipeline_mode = #tpu.pipeline_mode<synchronous>, transform_indices = @transform_13, window_bounds = array<i64: 128, 256>}, {pipeline_mode = #tpu.pipeline_mode<synchronous>, transform_indices = @transform_14, window_bounds = array<i64: 1, 256>}, {pipeline_mode = #tpu.pipeline_mode<synchronous>, transform_indices = @transform_15, window_bounds = array<i64: 256, 128>}, {pipeline_mode = #tpu.pipeline_mode<synchronous>, transform_indices = @transform_16, window_bounds = array<i64: 1, 128>}, {transform_indices = @transform_17, window_bounds = array<i64: 256, 128>}]} {
    %c0 = arith.constant 0 : index
    %c0_0 = arith.constant 0 : index
    %0 = vector.load %arg1[%c0, %c0_0] : memref<256x128xf32, #tpu.memory_space<vmem>>, vector<256x128xf32>
    %c0_1 = arith.constant 0 : index
    %c0_2 = arith.constant 0 : index
    %1 = vector.load %arg2[%c0_1, %c0_2] : memref<128x256xf32, #tpu.memory_space<vmem>>, vector<128x256xf32>
    %c0_3 = arith.constant 0 : index
    %c0_4 = arith.constant 0 : index
    %2 = vector.load %arg3[%c0_3, %c0_4] : memref<1x256xf32, #tpu.memory_space<vmem>>, vector<1x256xf32>
    %cst = arith.constant dense<0.000000e+00> : vector<256x256xf32>
    %3 = tpu.matmul %0, %1, %cst {dimension_numbers = #tpu.dot_dimension_numbers<[1], [0], [0], [1], [0, 0, 1, 1], [], []>} : vector<256x128xf32>, vector<128x256xf32>, vector<256x256xf32> -> vector<256x256xf32>
    %4 = vector.broadcast %2 : vector<1x256xf32> to vector<256x256xf32>
    %5 = arith.addf %3, %4 : vector<256x256xf32>
    %6 = math.tanh %5 : vector<256x256xf32>
    %c0_5 = arith.constant 0 : index
    %c0_6 = arith.constant 0 : index
    %7 = vector.load %arg4[%c0_5, %c0_6] : memref<256x128xf32, #tpu.memory_space<vmem>>, vector<256x128xf32>
    %c0_7 = arith.constant 0 : index
    %c0_8 = arith.constant 0 : index
    %8 = vector.load %arg5[%c0_7, %c0_8] : memref<1x128xf32, #tpu.memory_space<vmem>>, vector<1x128xf32>
    %cst_9 = arith.constant dense<0.000000e+00> : vector<256x128xf32>
    %9 = tpu.matmul %6, %7, %cst_9 {dimension_numbers = #tpu.dot_dimension_numbers<[1], [0], [0], [1], [0, 0, 1, 1], [], []>} : vector<256x256xf32>, vector<256x128xf32>, vector<256x128xf32> -> vector<256x128xf32>
    %10 = vector.broadcast %8 : vector<1x128xf32> to vector<256x128xf32>
    %11 = arith.addf %9, %10 : vector<256x128xf32>
    %12 = math.tanh %11 : vector<256x128xf32>
    %c0_10 = arith.constant 0 : index
    %c0_11 = arith.constant 0 : index
    %13 = vector.load %arg6[%c0_10, %c0_11] : memref<128x64xf32, #tpu.memory_space<vmem>>, vector<128x64xf32>
    %c0_12 = arith.constant 0 : index
    %c0_13 = arith.constant 0 : index
    %14 = vector.load %arg7[%c0_12, %c0_13] : memref<1x64xf32, #tpu.memory_space<vmem>>, vector<1x64xf32>
    %cst_14 = arith.constant dense<0.000000e+00> : vector<256x64xf32>
    %15 = tpu.matmul %12, %13, %cst_14 {dimension_numbers = #tpu.dot_dimension_numbers<[1], [0], [0], [1], [0, 0, 1, 1], [], []>} : vector<256x128xf32>, vector<128x64xf32>, vector<256x64xf32> -> vector<256x64xf32>
    %16 = vector.broadcast %14 : vector<1x64xf32> to vector<256x64xf32>
    %17 = arith.addf %15, %16 : vector<256x64xf32>
    %18 = math.tanh %17 : vector<256x64xf32>
    %c0_15 = arith.constant 0 : index
    %c0_16 = arith.constant 0 : index
    %19 = vector.load %arg8[%c0_15, %c0_16] : memref<64x32xf32, #tpu.memory_space<vmem>>, vector<64x32xf32>
    %c0_17 = arith.constant 0 : index
    %c0_18 = arith.constant 0 : index
    %20 = vector.load %arg9[%c0_17, %c0_18] : memref<1x32xf32, #tpu.memory_space<vmem>>, vector<1x32xf32>
    %cst_19 = arith.constant dense<0.000000e+00> : vector<256x32xf32>
    %21 = tpu.matmul %18, %19, %cst_19 {dimension_numbers = #tpu.dot_dimension_numbers<[1], [0], [0], [1], [0, 0, 1, 1], [], []>} : vector<256x64xf32>, vector<64x32xf32>, vector<256x32xf32> -> vector<256x32xf32>
    %22 = vector.broadcast %20 : vector<1x32xf32> to vector<256x32xf32>
    %23 = arith.addf %21, %22 : vector<256x32xf32>
    %24 = math.tanh %23 : vector<256x32xf32>
    %c0_20 = arith.constant 0 : index
    %c0_21 = arith.constant 0 : index
    %25 = vector.load %arg10[%c0_20, %c0_21] : memref<32x64xf32, #tpu.memory_space<vmem>>, vector<32x64xf32>
    %c0_22 = arith.constant 0 : index
    %c0_23 = arith.constant 0 : index
    %26 = vector.load %arg11[%c0_22, %c0_23] : memref<1x64xf32, #tpu.memory_space<vmem>>, vector<1x64xf32>
    %cst_24 = arith.constant dense<0.000000e+00> : vector<256x64xf32>
    %27 = tpu.matmul %24, %25, %cst_24 {dimension_numbers = #tpu.dot_dimension_numbers<[1], [0], [0], [1], [0, 0, 1, 1], [], []>} : vector<256x32xf32>, vector<32x64xf32>, vector<256x64xf32> -> vector<256x64xf32>
    %28 = vector.broadcast %26 : vector<1x64xf32> to vector<256x64xf32>
    %29 = arith.addf %27, %28 : vector<256x64xf32>
    %30 = math.tanh %29 : vector<256x64xf32>
    %c0_25 = arith.constant 0 : index
    %c0_26 = arith.constant 0 : index
    %31 = vector.load %arg12[%c0_25, %c0_26] : memref<64x128xf32, #tpu.memory_space<vmem>>, vector<64x128xf32>
    %c0_27 = arith.constant 0 : index
    %c0_28 = arith.constant 0 : index
    %32 = vector.load %arg13[%c0_27, %c0_28] : memref<1x128xf32, #tpu.memory_space<vmem>>, vector<1x128xf32>
    %cst_29 = arith.constant dense<0.000000e+00> : vector<256x128xf32>
    %33 = tpu.matmul %30, %31, %cst_29 {dimension_numbers = #tpu.dot_dimension_numbers<[1], [0], [0], [1], [0, 0, 1, 1], [], []>} : vector<256x64xf32>, vector<64x128xf32>, vector<256x128xf32> -> vector<256x128xf32>
    %34 = vector.broadcast %32 : vector<1x128xf32> to vector<256x128xf32>
    %35 = arith.addf %33, %34 : vector<256x128xf32>
    %36 = math.tanh %35 : vector<256x128xf32>
    %c0_30 = arith.constant 0 : index
    %c0_31 = arith.constant 0 : index
    %37 = vector.load %arg14[%c0_30, %c0_31] : memref<128x256xf32, #tpu.memory_space<vmem>>, vector<128x256xf32>
    %c0_32 = arith.constant 0 : index
    %c0_33 = arith.constant 0 : index
    %38 = vector.load %arg15[%c0_32, %c0_33] : memref<1x256xf32, #tpu.memory_space<vmem>>, vector<1x256xf32>
    %cst_34 = arith.constant dense<0.000000e+00> : vector<256x256xf32>
    %39 = tpu.matmul %36, %37, %cst_34 {dimension_numbers = #tpu.dot_dimension_numbers<[1], [0], [0], [1], [0, 0, 1, 1], [], []>} : vector<256x128xf32>, vector<128x256xf32>, vector<256x256xf32> -> vector<256x256xf32>
    %40 = vector.broadcast %38 : vector<1x256xf32> to vector<256x256xf32>
    %41 = arith.addf %39, %40 : vector<256x256xf32>
    %42 = math.tanh %41 : vector<256x256xf32>
    %c0_35 = arith.constant 0 : index
    %c0_36 = arith.constant 0 : index
    %43 = vector.load %arg16[%c0_35, %c0_36] : memref<256x128xf32, #tpu.memory_space<vmem>>, vector<256x128xf32>
    %c0_37 = arith.constant 0 : index
    %c0_38 = arith.constant 0 : index
    %44 = vector.load %arg17[%c0_37, %c0_38] : memref<1x128xf32, #tpu.memory_space<vmem>>, vector<1x128xf32>
    %cst_39 = arith.constant dense<0.000000e+00> : vector<256x128xf32>
    %45 = tpu.matmul %42, %43, %cst_39 {dimension_numbers = #tpu.dot_dimension_numbers<[1], [0], [0], [1], [0, 0, 1, 1], [], []>} : vector<256x256xf32>, vector<256x128xf32>, vector<256x128xf32> -> vector<256x128xf32>
    %46 = vector.broadcast %44 : vector<1x128xf32> to vector<256x128xf32>
    %47 = arith.addf %45, %46 : vector<256x128xf32>
    %c0_40 = arith.constant 0 : index
    %c0_41 = arith.constant 0 : index
    %48 = vector.load %arg18[%c0_40, %c0_41] : memref<256x128xf32, #tpu.memory_space<vmem>>, vector<256x128xf32>
    tpu.vector_store %arg18[%c0_40, %c0_41], %47 {strides = array<i32>} : memref<256x128xf32, #tpu.memory_space<vmem>>, vector<256x128xf32>,
    return
  }
  func.func @transform_0(%arg0: i32) -> (i32, i32) {
    %c0_i32 = arith.constant 0 : i32
    %c0_i32_0 = arith.constant 0 : i32
    return %arg0, %c0_i32 : i32, i32
  }
  func.func @transform_1(%arg0: i32) -> (i32, i32) {
    %c0_i32 = arith.constant 0 : i32
    %c0_i32_0 = arith.constant 0 : i32
    %c0_i32_1 = arith.constant 0 : i32
    return %c0_i32, %c0_i32_0 : i32, i32
  }
  func.func @transform_2(%arg0: i32) -> (i32, i32) {
    %c0_i32 = arith.constant 0 : i32
    %c0_i32_0 = arith.constant 0 : i32
    %c0_i32_1 = arith.constant 0 : i32
    return %c0_i32, %c0_i32_0 : i32, i32
  }
  func.func @transform_3(%arg0: i32) -> (i32, i32) {
    %c0_i32 = arith.constant 0 : i32
    %c0_i32_0 = arith.constant 0 : i32
    %c0_i32_1 = arith.constant 0 : i32
    return %c0_i32, %c0_i32_0 : i32, i32
  }
  func.func @transform_4(%arg0: i32) -> (i32, i32) {
    %c0_i32 = arith.constant 0 : i32
    %c0_i32_0 = arith.constant 0 : i32
    %c0_i32_1 = arith.constant 0 : i32
    return %c0_i32, %c0_i32_0 : i32, i32
  }
  func.func @transform_5(%arg0: i32) -> (i32, i32) {
    %c0_i32 = arith.constant 0 : i32
    %c0_i32_0 = arith.constant 0 : i32
    %c0_i32_1 = arith.constant 0 : i32
    return %c0_i32, %c0_i32_0 : i32, i32
  }
  func.func @transform_6(%arg0: i32) -> (i32, i32) {
    %c0_i32 = arith.constant 0 : i32
    %c0_i32_0 = arith.constant 0 : i32
    %c0_i32_1 = arith.constant 0 : i32
    return %c0_i32, %c0_i32_0 : i32, i32
  }
  func.func @transform_7(%arg0: i32) -> (i32, i32) {
    %c0_i32 = arith.constant 0 : i32
    %c0_i32_0 = arith.constant 0 : i32
    %c0_i32_1 = arith.constant 0 : i32
    return %c0_i32, %c0_i32_0 : i32, i32
  }
  func.func @transform_8(%arg0: i32) -> (i32, i32) {
    %c0_i32 = arith.constant 0 : i32
    %c0_i32_0 = arith.constant 0 : i32
    %c0_i32_1 = arith.constant 0 : i32
    return %c0_i32, %c0_i32_0 : i32, i32
  }
  func.func @transform_9(%arg0: i32) -> (i32, i32) {
    %c0_i32 = arith.constant 0 : i32
    %c0_i32_0 = arith.constant 0 : i32
    %c0_i32_1 = arith.constant 0 : i32
    return %c0_i32, %c0_i32_0 : i32, i32
  }
  func.func @transform_10(%arg0: i32) -> (i32, i32) {
    %c0_i32 = arith.constant 0 : i32
    %c0_i32_0 = arith.constant 0 : i32
    %c0_i32_1 = arith.constant 0 : i32
    return %c0_i32, %c0_i32_0 : i32, i32
  }
  func.func @transform_11(%arg0: i32) -> (i32, i32) {
    %c0_i32 = arith.constant 0 : i32
    %c0_i32_0 = arith.constant 0 : i32
    %c0_i32_1 = arith.constant 0 : i32
    return %c0_i32, %c0_i32_0 : i32, i32
  }
  func.func @transform_12(%arg0: i32) -> (i32, i32) {
    %c0_i32 = arith.constant 0 : i32
    %c0_i32_0 = arith.constant 0 : i32
    %c0_i32_1 = arith.constant 0 : i32
    return %c0_i32, %c0_i32_0 : i32, i32
  }
  func.func @transform_13(%arg0: i32) -> (i32, i32) {
    %c0_i32 = arith.constant 0 : i32
    %c0_i32_0 = arith.constant 0 : i32
    %c0_i32_1 = arith.constant 0 : i32
    return %c0_i32, %c0_i32_0 : i32, i32
  }
  func.func @transform_14(%arg0: i32) -> (i32, i32) {
    %c0_i32 = arith.constant 0 : i32
    %c0_i32_0 = arith.constant 0 : i32
    %c0_i32_1 = arith.constant 0 : i32
    return %c0_i32, %c0_i32_0 : i32, i32
  }
  func.func @transform_15(%arg0: i32) -> (i32, i32) {
    %c0_i32 = arith.constant 0 : i32
    %c0_i32_0 = arith.constant 0 : i32
    %c0_i32_1 = arith.constant 0 : i32
    return %c0_i32, %c0_i32_0 : i32, i32
  }
  func.func @transform_16(%arg0: i32) -> (i32, i32) {
    %c0_i32 = arith.constant 0 : i32
    %c0_i32_0 = arith.constant 0 : i32
    %c0_i32_1 = arith.constant 0 : i32
    return %c0_i32, %c0_i32_0 : i32, i32
  }
  func.func @transform_17(%arg0: i32) -> (i32, i32) {
    %c0_i32 = arith.constant 0 : i32
    %c0_i32_0 = arith.constant 0 : i32
    return %arg0, %c0_i32 : i32, i32
  }
}

</mosaic_0001>

<bundles_post_ra>
// kernel: tpu_custom_call.1
= control target key start
LH: loop header
LB: loop body
LE: loop exit
PB: predicated region body
PF: predicated region fallthrough
CT: control target
= control target key end

     0   :  { %s6110_s0 = inlined_call_operand.hbm [shape: f32[512,128], index: 0, kind: input, shape index: {}]   ;;  %s6111_s1 = inlined_call_operand.vmem [shape: f32[128,256], index: 1, kind: input, shape index: {}]   ;;  %s6112_s2 = inlined_call_operand.vmem [shape: f32[1,256], index: 2, kind: input, shape index: {}]   ;;  %s6113_s3 = inlined_call_operand.hbm [shape: f32[256,128], index: 3, kind: input, shape index: {}]   ;;  %s6114_s4 = inlined_call_operand.vmem [shape: f32[1,128], index: 4, kind: input, shape index: {}]   ;;  %s6115_s5 = inlined_call_operand.vmem [shape: f32[128,64], index: 5, kind: input, shape index: {}]   ;;  %s6116_s6 = inlined_call_operand.vmem [shape: f32[1,64], index: 6, kind: input, shape index: {}]   ;;  %s6117_s7 = inlined_call_operand.vmem [shape: f32[64,32], index: 7, kind: input, shape index: {}]   ;;  %s6118_s8 = inlined_call_operand.vmem [shape: f32[1,32], index: 8, kind: input, shape index: {}]   ;;  %s6119_s9 = inlined_call_operand.vmem [shape: f32[32,64], index: 9, kind: input, shape index: {}]   ;;  %s6120_s10 = inlined_call_operand.vmem [shape: f32[1,64], index: 10, kind: input, shape index: {}]   ;;  %s6121_s11 = inlined_call_operand.hbm [shape: f32[64,128], index: 11, kind: input, shape index: {}]   ;;  %s6122_s12 = inlined_call_operand.vmem [shape: f32[1,128], index: 12, kind: input, shape index: {}]   ;;  %s6123_s13 = inlined_call_operand.hbm [shape: f32[128,256], index: 13, kind: input, shape index: {}]   ;;  %s6124_s14 = inlined_call_operand.vmem [shape: f32[1,256], index: 14, kind: input, shape index: {}]   ;;  %s6125_s15 = inlined_call_operand.hbm [shape: f32[256,128], index: 15, kind: input, shape index: {}]   ;;  %s6126_s16 = inlined_call_operand.vmem [shape: f32[1,128], index: 16, kind: input, shape index: {}]   ;;  %s6127_s17 = inlined_call_operand.hbm [shape: f32[512,128], index: 17, kind: output, shape index: {}]  }
   0x1   :  { %6144 = sst [smem:[#allocation21_spill]] %s6110_s0 }
   0x2   :  { %6145 = sst [smem:[#allocation22_spill]] %s6111_s1 }
   0x3   :  { %6146 = sst [smem:[#allocation23_spill]] %s6113_s3 }
   0x4   :  { %6147 = sst [smem:[#allocation24_spill]] %s6121_s11 }
   0x5   :  { %6148 = sst [smem:[#allocation25_spill]] %s6123_s13 }
   0x6   :  { %6149 = sst [smem:[#allocation26_spill]] %s6124_s14 }
   0x7   :  { %6150 = sst [smem:[#allocation27_spill]] %s6125_s15 }
   0x8   :  { %6151 = sst [smem:[#allocation28_spill]] %s6126_s16 }
   0x9   :  { %6152 = sst [smem:[#allocation29_spill]] %s6127_s17 }
   0xa   :  { %22 = vsyncpa [#allocation3], 0 }
   0xb   :  { %24 = vsyncpa [#allocation3 + $0x1], 0 }
   0xc   :  { %25 = vsyncpa [#allocation6], 0 }
   0xd   :  { %26 = vsyncpa [#allocation9], 0 }
   0xe   :  { %27 = vsyncpa [#allocation4], 0 }
   0xf   :  { %29 = vsyncpa [#allocation4 + $0x1], 0  ;;  %s5037_s24 = smov 0   ;;  %s5039_s25 = smov 0  }
  0x10   :  { %s5041_s26 = smov 0   ;;  %s5043_s27 = smov 0  }
  0x11 LB: > { %6153 = sst [smem:[#allocation16_spill]] %s4920_s24  ;;  %s5058_s28 = sadd.s32 4294967295, %s4932_s27   ;;  %s4932_s27 = sphi %s5043_s27, %s6187_s27   ;;  %s4928_s26 = sphi %s5041_s26, %s6189_s26   ;;  %s4924_s25 = sphi %s5039_s25, %s6191_s25   ;;  %s4920_s24 = sphi %s5037_s24, %s6190_s24  }
  0x12   : > { %6154 = sst [smem:[#allocation17_spill]] %s4928_s26  ;;  %s3488_s29 = sadd.s32 4294967294, %s4932_s27  }
  0x13   : > { %p55_p0 = scmp.ne.s32.totalorder %s4924_s25, %s4920_s24  ;;  %p6137_p1 = scmp.eq.s32.totalorder %s5058_s28, 0 }
  0x14   : > { %p421_p3 = scmp.eq.s32.totalorder %s3488_s29, 1  ;;  %p3489_p5 = scmp.ge.s32.totalorder %s4932_s27, 1 }
  0x15   : > { %p5067_p4 = por %p6137_p1, %p55_p0  ;;  %p428_p7 = scmp.lt.s32.totalorder %s4932_s27, 3 }
  0x16   : > { %p5072_p6 = por %p421_p3, %p55_p0  ;;  %s4934_s19 = smov [#allocation5]  }
  0x17   : > { %s6155_s0 = scalar_select %p5067_p4, 1, 0 }
  0x18   : > { %s6156_s30 = scalar_select %p5072_p6, 1, 0 }
  0x19   : > { %p5077_p8 = pnand %p3489_p5, %p428_p7  ;;  %s446_s1 = sshll.u32 %s4934_s19, 4  ;;  %s447_s1 = int_to_ptr.vmem [resolvable:$true] %s446_s1 }
  0x1a   : > { %6157 = sst [smem:[#allocation18_spill]] %s6156_s30  ;;  %s4935_s21 = smov [#allocation8]  }
  0x1b   : > { %s6158_s18 = scalar_select %p5077_p8, 1, 0 }
  0x1c   : > { %p4078_p9 = pneg %p5077_p8  ;;  %s496_s22 = sshll.u32 %s4935_s21, 4  ;;  %s497_s22 = int_to_ptr.vmem [resolvable:$true] %s496_s22 }
  0x1d   : > { %s4739_s23 = scalar_lea.vmem %s447_s1, 4096  ;;  %p4747_p5 = scmp.lt.s32.totalorder %s447_s1, %s447_s1 }
  0x1e   : > { %p5086_p11 = pnand %p4078_p9, %p6137_p1  ;;  %p4740_p13 = scmp.ne.s32.totalorder %s447_s1, %s4739_s23 }
  0x1f   : > { %p4748_p7 = scmp.lt.s32.totalorder %s4739_s23, %s4739_s23 }
  0x20   : > { %p4730_p12 = pneg %p5086_p11 }
  0x21   : > { %p4749_p10 = por %p4748_p7, %p4747_p5 }
  0x22   : > { %p4742_p0 = pnand %p4740_p13, %p4730_p12 }
  0x24   : > { %p4743_p3 = pneg %p4742_p0 }
  0x26   : > { %p4750_p9 = pnand %p4749_p10, %p4743_p3 }
  0x28   : > { %4753 = shalt.err (!%p4750_p9)
}
  0x29   : > { %s6133_s29 = smov 128   ;;  %s6135_s19 = smov 8  }
  0x2a   : > { %s6160_s3 = sld [smem:[#allocation23_spill]]  ;;  %s4765_s24 = scalar_lea.vmem %s497_s22, 4096 }
  0x2b   : > { %p4766_p13 = scmp.ne.s32.totalorder %s497_s22, %s4765_s24  ;;  %p4773_p10 = scmp.lt.s32.totalorder %s497_s22, %s497_s22 }
  0x2c   : > { %p4774_p3 = scmp.lt.s32.totalorder %s4765_s24, %s4765_s24 }
  0x2d   : > { %p4768_p0 = pnand %p4766_p13, %p4730_p12 }
  0x2e   : > { %p4775_p7 = por %p4774_p3, %p4773_p10 }
  0x2f   : > { %p4769_p5 = pneg %p4768_p0 }
  0x30   : > { %4081 = dma.hbm_to_vmem [thread:$0]  (!%p5086_p11), %s6160_s3, 4096, %s447_s1, [#allocation6], %s6133_s29, %s6133_s29, %s6135_s19  }
  0x31   : > { %p4776_p9 = pnand %p4775_p7, %p4769_p5 }
  0x33   : > { %4779 = shalt.err (!%p4776_p9)
}
  0x34   : > { %s4938_s23 = smov 256   ;;  %s4939_s17 = smov 16  }
  0x35   : > { %s6161_s13 = sld [smem:[#allocation25_spill]]  ;;  %s4940_s30 = smov [#allocation7]  }
  0x36   : > { %s480_s1 = sshll.u32 %s4940_s30, 4  ;;  %s4941_s21 = smov [#allocation10]   ;;  %s481_s1 = int_to_ptr.vmem [resolvable:$true] %s480_s1 }
  0x37   : > { %s512_s29 = sshll.u32 %s4941_s21, 4  ;;  %s4791_s19 = scalar_lea.vmem %s481_s1, 1024  ;;  %s513_s29 = int_to_ptr.vmem [resolvable:$true] %s512_s29 }
  0x38   : > { %p4792_p13 = scmp.ne.s32.totalorder %s481_s1, %s4791_s19  ;;  %p4799_p10 = scmp.lt.s32.totalorder %s481_s1, %s481_s1 }
  0x39   : > { %p4800_p3 = scmp.lt.s32.totalorder %s4791_s19, %s4791_s19 }
  0x3a   : > { %p4794_p0 = pnand %p4792_p13, %p4730_p12 }
  0x3b   : > { %4087 = dma.hbm_to_vmem [thread:$0]  (!%p5086_p11), %s6161_s13, 4096, %s497_s22, [#allocation9], %s4938_s23, %s4938_s23, %s4939_s17  }
  0x3c   : > { %p4795_p5 = pneg %p4794_p0  ;;  %p4801_p7 = por %p4800_p3, %p4799_p10 }
  0x3e   : > { %p4802_p9 = pnand %p4801_p7, %p4795_p5 }
  0x40   : > { %4805 = shalt.err (!%p4802_p9)
}
  0x41   : > { %s6162_s14 = smov 8   ;;  %s6163_s16 = smov 128  }
  0x42   : > { %s6164_s11 = sld [smem:[#allocation24_spill]]  ;;  %s4817_s22 = scalar_lea.vmem %s513_s29, 4096 }
  0x43   : > { %p4818_p1 = scmp.ne.s32.totalorder %s513_s29, %s4817_s22  ;;  %p4825_p2 = scmp.lt.s32.totalorder %s513_s29, %s513_s29 }
  0x44   : > { %p4826_p10 = scmp.lt.s32.totalorder %s4817_s22, %s4817_s22 }
  0x45   : > { %p4820_p13 = pnand %p4818_p1, %p4730_p12 }
  0x46   : > { %p4827_p5 = por %p4826_p10, %p4825_p2 }
  0x47   : > { %p4821_p0 = pneg %p4820_p13 }
  0x48   : > { %4084 = dma.hbm_to_vmem [thread:$0]  (!%p5086_p11), %s6164_s11, 1024, %s481_s1, [#allocation6], %s6163_s16, %s6163_s16, %s6162_s14  }
  0x49   : > { %p4828_p3 = pnand %p4827_p5, %p4821_p0 }
  0x4b   : > { %4831 = shalt.err (!%p4828_p3)
}
  0x4c   : > { %s6165_s15 = sld [smem:[#allocation27_spill]]  ;;  %s5134_s30 = sadd.s32 1, %s4932_s27  }
  0x4d   : > { %6166 = sst [smem:[#allocation19_spill]] %s5134_s30  ;;  %s39_s20 = ssub.s32 %s4932_s27, %s5134_s30 }
  0x4e   : > { %p40_p1 = scmp.eq.s32.totalorder %s39_s20, 0  ;;  %s42_s1 = sadd.s32 1, %s4928_s26 }
  0x4f   : > { %p49_p2 = scmp.ne.s32.totalorder %s4928_s26, %s4924_s25  ;;  %p50_p12 = scmp.eq.s32.totalorder %s4932_s27, 0 }
  0x50   : > { %s5143_s21 = scalar_select %p40_p1, %s4928_s26, %s42_s1  }
  0x51   : > { %p51_p7 = por %p50_p12, %p49_p2  ;;  %p6168_p9 = scmp.eq.s32.totalorder %s5058_s28, 1 }
  0x52   : > { %4090 = dma.hbm_to_vmem [thread:$0]  (!%p5086_p11), %s6165_s15, 4096, %s513_s29, [#allocation9], %s6163_s16, %s6163_s16, %s6162_s14  }
  0x53   : > { %6167 = sst [smem:[#allocation20_spill]] %s5143_s21  ;;  %p5147_p13 = por %p6168_p9, %p49_p2 }
  0x54   : > { %p4103_p0 = scmp.lt.s32.totalorder %s4932_s27, 2  ;;  %s529_s24 = sand.u32 1, %s4928_s26  }
  0x55   : > { %s6169_s17 = scalar_select %p5147_p13, 1, 0 }
  0x56   : > { %s3495_s22 = sshll.u32 %s529_s24, 8  ;;  %s3612_s29 = sshll.u32 %s4932_s27, 12 }
  0x57   : > { %s6170_s3 = sld [smem:[#allocation21_spill]]  ;;  %s533_s20 = scalar_lea.vmem [#allocation2], %s3495_s22 }
  0x58   : > { %s540_s1 = sshll.u32 %s533_s20, 4  ;;  %p5161_p11 = pnand %p4103_p0, %p51_p7  ;;  %s5159_s1 = int_to_ptr.vmem [resolvable:$true] %s540_s1 }
  0x59   : > { %s5165_s15 = scalar_lea.sflag [#allocation3], %s529_s24 }
  0x5a   : > { %p4834_p5 = pneg %p5161_p11 }
  0x5d   : > { %s5157_s11 = scalar_lea.hbm %s6170_s3, %s3612_s29  ;;  %s4837_s22 = scalar_lea.hbm %s6170_s3, 8192 }
  0x5e   : > { %s4832_s21 = scalar_lea.hbm %s5157_s11, 4096  ;;  %p4838_p2 = scmp.lt.s32.totalorder %s5157_s11, %s6170_s3 }
  0x5f   : > { %p4833_p10 = scmp.ne.s32.totalorder %s5157_s11, %s4832_s21  ;;  %p4839_p12 = scmp.lt.s32.totalorder %s4837_s22, %s4832_s21 }
  0x61   : > { %p4835_p3 = pnand %p4834_p5, %p4833_p10  ;;  %p4840_p7 = por %p4839_p12, %p4838_p2 }
  0x63   : > { %p4836_p1 = pneg %p4835_p3 }
  0x65   : > { %p4841_p9 = pnand %p4840_p7, %p4836_p1 }
  0x67   : > { %4844 = shalt.err (!%p4841_p9)
}
  0x68   : > { %s4845_s24 = scalar_lea.vmem %s5159_s1, 4096  ;;  %s4942_s26 = smov [#allocation2]  }
  0x69   : > { %p4846_p0 = scmp.ne.s32.totalorder %s5159_s1, %s4845_s24  ;;  %s4850_s30 = sshll.u32 %s4942_s26, 4  ;;  %s4851_s30 = int_to_ptr.vmem [resolvable:$false] %s4850_s30 }
  0x6a   : > { %s4852_s29 = scalar_lea.vmem %s4851_s30, 8192  ;;  %p4853_p3 = scmp.lt.s32.totalorder %s5159_s1, %s4851_s30 }
  0x6b   : > { %p4848_p6 = pnand %p4846_p0, %p4834_p5  ;;  %p4854_p13 = scmp.lt.s32.totalorder %s4852_s29, %s4845_s24 }
  0x6d   : > { %p4849_p10 = pneg %p4848_p6  ;;  %p4855_p4 = por %p4854_p13, %p4853_p3 }
  0x6f   : > { %p4856_p8 = pnand %p4855_p4, %p4849_p10 }
  0x71   : > { %4859 = shalt.err (!%p4856_p8)
}
  0x72   : > { %4094 = dma.hbm_to_vmem [thread:$0]  (!%p5161_p11), %s5157_s11, 4096, %s5159_s1, %s5165_s15, %s6163_s16, %s6163_s16, %s6162_s14  }
  0x73   : > { %p6172_p6 = scmp.ne.s32.totalorder %s6158_s18, 0 }
  0x74   : > { %s5192_s26 = sand.u32 (!%p6172_p6), 1, %s4924_s25   ;;  %p6173_p4 = scmp.ne.s32.totalorder (!%p6172_p6), %s6155_s0, 0 }
  0x75   : > { %552 = sbr.rel (%p6172_p6) target bundleno = 1985 (0x7c1), region = 88  ;;  %s3499_s30 = sshll.u32 (!%p6172_p6), %s5192_s26, 8 }
  0x76   : > { %s555_s21 = scalar_lea.sflag (!%p6172_p6), [#allocation3], %s5192_s26  ;;  %s5198_s13 = scalar_lea.vmem (!%p6172_p6), [#allocation2], %s3499_s30 }
  0x7a   : > { %4903 = dma.done.wait (%p6173_p4), %s555_s21, 4096  }
  0x7b   : > { %4905 = vsyncadd (%p6173_p4), %s555_s21, 4294963200  ;;  %p6174_p8 = scmp.eq.s32.totalorder %s5058_s28, 0 }
  0x7d   : > { %4907 = dma.done.wait (%p6174_p8), [#allocation6], 5120   ;;  %p6175_p13 = pmov %p6174_p8 }
  0x7e   : > { %p6176_p11 = pmov %p6174_p8 }
  0x7f   : > { %4909 = vsyncadd (%p6175_p13), [#allocation6], 4294962176 }
  0x80   : > { %4911 = dma.done.wait (%p6176_p11), [#allocation9], 8192   ;;  %p6177_p5 = pmov %p6174_p8 }
  0x81   : > { %v4943_v0 = vmov 0.0   ;;  %s6178_s0 = sld [smem:[#allocation22_spill]]  ;;  %v1039_v33 = vld [vmem:[#allocation5 + $0x78] sm:$0xff]  ;;  %v1038_v34 = vld [vmem:[#allocation5 + $0x70] sm:$0xff]  ;;  %v627_v35 = vld [vmem:[%s5198_s13] sm:$0xff]  ;;  %vm1615_vm0 = vcmask 523264  }
  0x82   : > { %4913 = vsyncadd (%p6177_p5), [#allocation9], 4294959104  ;;  %767 = vmatprep.mubr.f32.mxu0 %v4943_v0  ;;  %1063 = vmatprep.subr.mxu1 %v4943_v0  ;;  %v1037_v36 = vld [vmem:[#allocation5 + $0x68] sm:$0xff]  ;;  %v1036_v37 = vld [vmem:[#allocation5 + $0x60] sm:$0xff]  ;;  %vm1980_vm1 = vcmask 261120   ;;  %s6179_s21 = sld [smem:[#allocation26_spill]] }
  0x83   : > { %1064 = vmatpush1.msra.mxu1 %v1039_v33  ;;  %v628_v38 = vld [vmem:[%s5198_s13 + $0x8] sm:$0xff]  ;;  %v1035_v39 = vld [vmem:[#allocation5 + $0x58] sm:$0xff]  ;;  %v1034_v40 = vld [vmem:[#allocation5 + $0x50] sm:$0xff]  ;;  %s6180_s18 = sld [smem:[#allocation28_spill]]  ;;  %s5995_s14 = scalar_lea.vmem [#allocation11], %s3499_s30 }
  0x84   : > { %1065 = vmatprep.subr.mxu1 %v4943_v0  ;;  %v629_v41 = vld [vmem:[%s5198_s13 + $0x10] sm:$0xff]  ;;  %v1033_v42 = vld [vmem:[#allocation5 + $0x48] sm:$0xff]  ;;  %v1032_v43 = vld [vmem:[#allocation5 + $0x40] sm:$0xff]  ;;  %s3613_s30 = sshll.u32 %s5058_s28, 12  ;;  %s6181_s19 = sld [smem:[#allocation29_spill]] }
  0x85   : > { %1066 = vmatpush1.msra.mxu1 %v1038_v34  ;;  %v630_v44 = vld [vmem:[%s5198_s13 + $0x18] sm:$0xff]  ;;  %v1030_v46 = vld [vmem:[#allocation5 + $0x30] sm:$0xff]  ;;  %v631_v47 = vld [vmem:[%s5198_s13 + $0x20] sm:$0xff]  ;;  %s3364_s23 = scalar_lea.sflag [#allocation4], %s5192_s26  ;;  %p6182_p2 = scmp.ne.s32.totalorder %s6169_s17, 0 }
  0x86   : > { %1067 = vmatprep.subr.mxu1 %v4943_v0  ;;  %v1031_v45 = vld [vmem:[#allocation5 + $0x38] sm:$0xff]  ;;  %v1029_v48 = vld [vmem:[#allocation5 + $0x28] sm:$0xff]  ;;  %v1028_v49 = vld [vmem:[#allocation5 + $0x20] sm:$0xff]  ;;  %s4944_s20 = smov [#allocation11]  }
  0x87   : > { %v690_v1 = vld [vmem:[%s6178_s0 + $0xf8] sm:$0xff]  ;;  %v689_v2 = vld [vmem:[%s6178_s0 + $0xf0] sm:$0xff]  ;;  %v688_v3 = vld [vmem:[%s6178_s0 + $0xe8] sm:$0xff]  ;;  %1068 = vmatpush1.msra.mxu1 %v1037_v36  ;;  %s4864_s24 = sshll.u32 %s4944_s20, 4  ;;  %s4865_s24 = int_to_ptr.vmem [resolvable:$false] %s4864_s24 }
  0x88   : > { %703 = vmatprep.subr.mxu0 %v690_v1  ;;  %v687_v4 = vld [vmem:[%s6178_s0 + $0xe0] sm:$0xff]  ;;  %v686_v5 = vld [vmem:[%s6178_s0 + $0xd8] sm:$0xff]  ;;  %v685_v6 = vld [vmem:[%s6178_s0 + $0xd0] sm:$0xff]  ;;  %1069 = vmatprep.subr.mxu1 %v4943_v0  ;;  %s4866_s29 = scalar_lea.vmem %s4865_s24, 8192 }
  0x89   : > { %704 = vmatpush1.msra.mxu0 %v689_v2  ;;  %v684_v7 = vld [vmem:[%s6178_s0 + $0xc8] sm:$0xff]  ;;  %v683_v8 = vld [vmem:[%s6178_s0 + $0xc0] sm:$0xff]  ;;  %v682_v9 = vld [vmem:[%s6178_s0 + $0xb8] sm:$0xff]  ;;  %1070 = vmatpush1.msra.mxu1 %v1036_v37 }
  0x8a   : > { %705 = vmatprep.subr.mxu0 %v688_v3  ;;  %v681_v10 = vld [vmem:[%s6178_s0 + $0xb0] sm:$0xff]  ;;  %v680_v11 = vld [vmem:[%s6178_s0 + $0xa8] sm:$0xff]  ;;  %v679_v12 = vld [vmem:[%s6178_s0 + $0xa0] sm:$0xff]  ;;  %1071 = vmatprep.subr.mxu1 %v4943_v0  ;;  %s6063_s22 = scalar_lea.hbm %s6181_s19, %s3613_s30 }
  0x8b   : > { %706 = vmatpush1.msra.mxu0 %v687_v4  ;;  %v678_v13 = vld [vmem:[%s6178_s0 + $0x98] sm:$0xff]  ;;  %v677_v14 = vld [vmem:[%s6178_s0 + $0x90] sm:$0xff]  ;;  %v676_v15 = vld [vmem:[%s6178_s0 + $0x88] sm:$0xff]  ;;  %1072 = vmatpush1.msra.mxu1 %v1035_v39 }
  0x8c   : > { %707 = vmatprep.subr.mxu0 %v686_v5  ;;  %v675_v16 = vld [vmem:[%s6178_s0 + $0x80] sm:$0xff]  ;;  %v674_v17 = vld [vmem:[%s6178_s0 + $0x78] sm:$0xff]  ;;  %v673_v18 = vld [vmem:[%s6178_s0 + $0x70] sm:$0xff]  ;;  %1073 = vmatprep.subr.mxu1 %v4943_v0 }
  0x8d   : > { %708 = vmatpush1.msra.mxu0 %v685_v6  ;;  %v672_v19 = vld [vmem:[%s6178_s0 + $0x68] sm:$0xff]  ;;  %v671_v20 = vld [vmem:[%s6178_s0 + $0x60] sm:$0xff]  ;;  %v670_v21 = vld [vmem:[%s6178_s0 + $0x58] sm:$0xff]  ;;  %1074 = vmatpush1.msra.mxu1 %v1034_v40 }
  0x8e   : > { %709 = vmatprep.subr.mxu0 %v684_v7  ;;  %v669_v22 = vld [vmem:[%s6178_s0 + $0x50] sm:$0xff]  ;;  %v668_v23 = vld [vmem:[%s6178_s0 + $0x48] sm:$0xff]  ;;  %v667_v24 = vld [vmem:[%s6178_s0 + $0x40] sm:$0xff]  ;;  %1075 = vmatprep.subr.mxu1 %v4943_v0 }
  0x8f   : > { %710 = vmatpush1.msra.mxu0 %v683_v8  ;;  %v666_v25 = vld [vmem:[%s6178_s0 + $0x38] sm:$0xff]  ;;  %v665_v26 = vld [vmem:[%s6178_s0 + $0x30] sm:$0xff]  ;;  %v664_v27 = vld [vmem:[%s6178_s0 + $0x28] sm:$0xff]  ;;  %1076 = vmatpush1.msra.mxu1 %v1033_v42 }
  0x90   : > { %711 = vmatprep.subr.mxu0 %v682_v9  ;;  %v663_v28 = vld [vmem:[%s6178_s0 + $0x20] sm:$0xff]  ;;  %v662_v29 = vld [vmem:[%s6178_s0 + $0x18] sm:$0xff]  ;;  %v661_v30 = vld [vmem:[%s6178_s0 + $0x10] sm:$0xff]  ;;  %1077 = vmatprep.subr.mxu1 %v4943_v0 }
  0x91   : > { %712 = vmatpush1.msra.mxu0 %v681_v10  ;;  %v660_v31 = vld [vmem:[%s6178_s0 + $0x8] sm:$0xff]  ;;  %v659_v32 = vld [vmem:[%s6178_s0] sm:$0xff]  ;;  %1078 = vmatpush1.msra.mxu1 %v1032_v43  ;;  %v1027_v51 = vld [vmem:[#allocation5 + $0x18] sm:$0xff] }
  0x92   : > { %713 = vmatprep.subr.mxu0 %v680_v11  ;;  %1079 = vmatprep.subr.mxu1 %v4943_v0  ;;  %v632_v50 = vld [vmem:[%s5198_s13 + $0x28] sm:$0xff]  ;;  %v1026_v52 = vld [vmem:[#allocation5 + $0x10] sm:$0xff]  ;;  %v1024_v55 = vld [vmem:[#allocation5] sm:$0xff] }
  0x93   : > { %714 = vmatpush1.msra.mxu0 %v679_v12  ;;  %1080 = vmatpush1.msra.mxu1 %v1031_v45  ;;  %v633_v53 = vld [vmem:[%s5198_s13 + $0x30] sm:$0xff]  ;;  %v1025_v54 = vld [vmem:[#allocation5 + $0x8] sm:$0xff]  ;;  %v634_v56 = vld [vmem:[%s5198_s13 + $0x38] sm:$0xff] }
  0x94   : > { %715 = vmatprep.subr.mxu0 %v678_v13  ;;  %1081 = vmatprep.subr.mxu1 %v4943_v0  ;;  %v1055_v57 = vld [vmem:[#allocation5 + $0xf8] sm:$0xff]  ;;  %v1054_v58 = vld [vmem:[#allocation5 + $0xf0] sm:$0xff]  ;;  %v635_v59 = vld [vmem:[%s5198_s13 + $0x40] sm:$0xff] }
  0x95   : > { %716 = vmatpush1.msra.mxu0 %v677_v14  ;;  %1082 = vmatpush1.msra.mxu1 %v1030_v46  ;;  %v1053_v60 = vld [vmem:[#allocation5 + $0xe8] sm:$0xff]  ;;  %v1052_v61 = vld [vmem:[#allocation5 + $0xe0] sm:$0xff]  ;;  %v1051_v63 = vld [vmem:[#allocation5 + $0xd8] sm:$0xff] }
  0x96   : > { %717 = vmatprep.subr.mxu0 %v676_v15  ;;  %1083 = vmatprep.subr.mxu1 %v4943_v0  ;;  %v636_v62 = vld [vmem:[%s5198_s13 + $0x48] sm:$0xff]  ;;  %v1050_v1 = vld [vmem:[#allocation5 + $0xd0] sm:$0xff]  ;;  %v638_v3 = vld [vmem:[%s5198_s13 + $0x58] sm:$0xff] }
  0x97   : > { %718 = vmatpush1.msra.mxu0 %v675_v16  ;;  %1084 = vmatpush1.msra.mxu1 %v1029_v48  ;;  %v637_v2 = vld [vmem:[%s5198_s13 + $0x50] sm:$0xff]  ;;  %v639_v4 = vld [vmem:[%s5198_s13 + $0x60] sm:$0xff]  ;;  %v640_v5 = vld [vmem:[%s5198_s13 + $0x68] sm:$0xff] }
  0x98   : > { %719 = vmatprep.subr.mxu0 %v674_v17  ;;  %1085 = vmatprep.subr.mxu1 %v4943_v0  ;;  %v641_v6 = vld [vmem:[%s5198_s13 + $0x70] sm:$0xff]  ;;  %v642_v7 = vld [vmem:[%s5198_s13 + $0x78] sm:$0xff]  ;;  %v643_v8 = vld [vmem:[%s5198_s13 + $0x80] sm:$0xff] }
  0x99   : > { %720 = vmatpush1.msra.mxu0 %v673_v18  ;;  %1086 = vmatpush1.msra.mxu1 %v1028_v49  ;;  %v1049_v9 = vld [vmem:[#allocation5 + $0xc8] sm:$0xff]  ;;  %v1048_v11 = vld [vmem:[#allocation5 + $0xc0] sm:$0xff]  ;;  %v1047_v12 = vld [vmem:[#allocation5 + $0xb8] sm:$0xff] }
  0x9a   : > { %721 = vmatprep.subr.mxu0 %v672_v19  ;;  %1087 = vmatprep.subr.mxu1 %v4943_v0  ;;  %v644_v10 = vld [vmem:[%s5198_s13 + $0x88] sm:$0xff]  ;;  %v645_v13 = vld [vmem:[%s5198_s13 + $0x90] sm:$0xff]  ;;  %v646_v16 = vld [vmem:[%s5198_s13 + $0x98] sm:$0xff] }
  0x9b   : > { %722 = vmatpush1.msra.mxu0 %v671_v20  ;;  %1088 = vmatpush1.msra.mxu1 %v1027_v51  ;;  %v1046_v14 = vld [vmem:[#allocation5 + $0xb0] sm:$0xff]  ;;  %v1045_v15 = vld [vmem:[#allocation5 + $0xa8] sm:$0xff]  ;;  %v1044_v17 = vld [vmem:[#allocation5 + $0xa0] sm:$0xff] }
  0x9c   : > { %723 = vmatprep.subr.mxu0 %v670_v21  ;;  %1089 = vmatprep.subr.mxu1 %v4943_v0  ;;  %v1043_v18 = vld [vmem:[#allocation5 + $0x98] sm:$0xff]  ;;  %v647_v19 = vld [vmem:[%s5198_s13 + $0xa0] sm:$0xff]  ;;  %v1042_v20 = vld [vmem:[#allocation5 + $0x90] sm:$0xff] }
  0x9d   : > { %724 = vmatpush1.msra.mxu0 %v669_v22  ;;  %1090 = vmatpush1.msra.mxu1 %v1026_v52  ;;  %v1041_v21 = vld [vmem:[#allocation5 + $0x88] sm:$0xff]  ;;  %v658_v33 = vld [vmem:[%s5198_s13 + $0xf8] sm:$0xff]  ;;  %v1334_v36 = vld [vmem:[%s6115_s5 + $0x70] sm:$0xff] }
  0x9e   : > { %725 = vmatprep.subr.mxu0 %v668_v23  ;;  %1091 = vmatprep.subr.mxu1 %v4943_v0  ;;  %v648_v22 = vld [vmem:[%s5198_s13 + $0xa8] sm:$0xff]  ;;  %v1040_v23 = vld [vmem:[#allocation5 + $0x80] sm:$0xff]  ;;  %v1335_v34 = vld [vmem:[%s6115_s5 + $0x78] sm:$0xff] }
  0x9f   : > { %726 = vmatpush1.msra.mxu0 %v667_v24  ;;  %1092 = vmatpush1.msra.mxu1 %v1025_v54  ;;  %v649_v24 = vld [vmem:[%s5198_s13 + $0xb0] sm:$0xff]  ;;  %v691_v39 = vld [vmem:[%s6112_s2] sm:$0x3]  ;;  %v1331_v54 = vld [vmem:[%s6115_s5 + $0x58] sm:$0xff] }
  0xa0   : > { %727 = vmatprep.subr.mxu0 %v666_v25  ;;  %1093 = vmatprep.subr.mxu1 %v4943_v0  ;;  %v650_v25 = vld [vmem:[%s5198_s13 + $0xb8] sm:$0xff]  ;;  %v1332_v45 = vld [vmem:[%s6115_s5 + $0x60] sm:$0xff] }
  0xa1   : > { %728 = vmatpush1.msra.mxu0 %v665_v26  ;;  %1094 = vmatpush1.msra.mxu1 %v1024_v55  ;;  %v651_v26 = vld [vmem:[%s5198_s13 + $0xc0] sm:$0xff] }
  0xa2   : > { %729 = vmatprep.subr.mxu0 %v664_v27  ;;  %1095 = vmatprep.subr.mxu1 %v4943_v0  ;;  %v652_v27 = vld [vmem:[%s5198_s13 + $0xc8] sm:$0xff] }
  0xa3   : > { %730 = vmatpush1.msra.mxu0 %v663_v28  ;;  %1096 = vmatpush2.msra.mxu1 %v1055_v57  ;;  %v653_v28 = vld [vmem:[%s5198_s13 + $0xd0] sm:$0xff] }
  0xa4   : > { %731 = vmatprep.subr.mxu0 %v662_v29  ;;  %1097 = vmatprep.subr.mxu1 %v4943_v0  ;;  %v654_v29 = vld [vmem:[%s5198_s13 + $0xd8] sm:$0xff] }
  0xa5   : > { %732 = vmatpush1.msra.mxu0 %v661_v30  ;;  %1098 = vmatpush2.msra.mxu1 %v1054_v58  ;;  %v655_v30 = vld [vmem:[%s5198_s13 + $0xe0] sm:$0xff] }
  0xa6   : > { %733 = vmatprep.subr.mxu0 %v660_v31  ;;  %1099 = vmatprep.subr.mxu1 %v4943_v0  ;;  %v656_v31 = vld [vmem:[%s5198_s13 + $0xe8] sm:$0xff] }
  0xa7   : > { %734 = vmatpush1.msra.mxu0 %v659_v32  ;;  %1100 = vmatpush2.msra.mxu1 %v1053_v60  ;;  %v657_v32 = vld [vmem:[%s5198_s13 + $0xf0] sm:$0xff]  ;;  %s3377_s13 = sshll.u32 %s5995_s14, 4  ;;  %s6065_s13 = int_to_ptr.vmem [resolvable:$true] %s3377_s13 }
  0xa8   : > { %768 = vmatmul.mubr.f32.vlgmr.msra.gmra.mxu0 %v627_v35  ;;  %1101 = vmatprep.subr.mxu1 %v4943_v0  ;;  %v693_v35 = vlaneseq  ;;  %s4860_s28 = scalar_lea.vmem %s6065_s13, 4096  ;;  %p4867_p9 = scmp.lt.s32.totalorder %s6065_s13, %s4865_s24 }
  0xa9   : > { %773 = vmatprep.mubr.f32.mxu0 %v4943_v0  ;;  %1102 = vmatpush2.msra.mxu1 %v1052_v61  ;;  %p4861_p1 = scmp.ne.s32.totalorder %s6065_s13, %s4860_s28  ;;  %p4868_p0 = scmp.lt.s32.totalorder %s4866_s29, %s4860_s28 }
  0xaa   : > { %1103 = vmatprep.subr.mxu1 %v4943_v0  ;;  %3778 = vmatprep.subr.mxu0 %v1335_v34  ;;  %v5410_v37 = vshrl.u32 %v693_v35, 7 }
  0xab   : > { %1104 = vmatpush2.msra.mxu1 %v1051_v63  ;;  %3779 = vmatpush3.msra.mxu0 %v1335_v34  ;;  %v1330_v63 = vld [vmem:[%s6115_s5 + $0x50] sm:$0xff]  ;;  %p4862_p12 = pnand %p4861_p1, %p6182_p2  ;;  %p4869_p10 = por %p4868_p0, %p4867_p9 }
  0xac   : > { %774 = vmatmul.mubr.f32.gmra.mxu0 %v628_v38  ;;  %1105 = vmatprep.subr.mxu1 %v4943_v0  ;;  %v695_v38 = vsub.s32 0, %v5410_v37  ;;  %v699_v40 = vsub.s32 1, %v5410_v37 }
  0xad   : > { %779 = vmatprep.mubr.f32.mxu0 %v4943_v0  ;;  %1106 = vmatpush2.msra.mxu1 %v1050_v1  ;;  %v1329_v1 = vld [vmem:[%s6115_s5 + $0x48] sm:$0xff]  ;;  %p4863_p7 = pneg %p4862_p12 }
  0xae   : > { %1107 = vmatprep.subr.mxu1 %v4943_v0  ;;  %3780 = vmatprep.subr.mxu0 %v1334_v36  ;;  %v5422_v42 = vrot.slane %v691_v39, %v695_v38  ;;  %v5426_v43 = vrot.slane %v691_v39, %v699_v40 }
  0xaf   : > { %1108 = vmatpush2.msra.mxu1 %v1049_v9  ;;  %3781 = vmatpush3.msra.mxu0 %v1334_v36  ;;  %v1327_v9 = vld [vmem:[%s6115_s5 + $0x38] sm:$0xff]  ;;  %p4870_p3 = pnand %p4869_p10, %p4863_p7 }
  0xb0   : > { %780 = vmatmul.mubr.f32.gmra.mxu0 %v629_v41  ;;  %1109 = vmatprep.subr.mxu1 %v4943_v0  ;;  %v1333_v41 = vld [vmem:[%s6115_s5 + $0x68] sm:$0xff] }
  0xb1   : > { %785 = vmatprep.mubr.f32.mxu0 %v4943_v0  ;;  %1110 = vmatpush2.msra.mxu1 %v1048_v11 }
  0xb2   : > { %1111 = vmatprep.subr.mxu1 %v4943_v0  ;;  %3782 = vmatprep.subr.mxu0 %v1333_v41 }
  0xb3   : > { %1112 = vmatpush2.msra.mxu1 %v1047_v12  ;;  %3783 = vmatpush3.msra.mxu0 %v1333_v41 }
  0xb4   : > { %786 = vmatmul.mubr.f32.gmra.mxu0 %v630_v44  ;;  %1113 = vmatprep.subr.mxu1 %v4943_v0 }
  0xb5   : > { %791 = vmatprep.mubr.f32.mxu0 %v4943_v0  ;;  %1114 = vmatpush2.msra.mxu1 %v1046_v14 }
  0xb6   : > { %1115 = vmatprep.subr.mxu1 %v4943_v0  ;;  %3784 = vmatprep.subr.mxu0 %v1332_v45 }
  0xb7   : > { %1116 = vmatpush2.msra.mxu1 %v1045_v15  ;;  %3785 = vmatpush3.msra.mxu0 %v1332_v45 }
  0xb8   : > { %792 = vmatmul.mubr.f32.gmra.mxu0 %v631_v47  ;;  %1117 = vmatprep.subr.mxu1 %v4943_v0 }
  0xb9   : > { %797 = vmatprep.mubr.f32.mxu0 %v4943_v0  ;;  %1118 = vmatpush2.msra.mxu1 %v1044_v17  ;;  %v1325_v17 = vld [vmem:[%s6115_s5 + $0x28] sm:$0xff] }
  0xba   : > { %1119 = vmatprep.subr.mxu1 %v4943_v0  ;;  %3786 = vmatprep.subr.mxu0 %v1331_v54 }
  0xbb   : > { %1120 = vmatpush2.msra.mxu1 %v1043_v18  ;;  %3787 = vmatpush3.msra.mxu0 %v1331_v54 }
  0xbc   : > { %798 = vmatmul.mubr.f32.gmra.mxu0 %v632_v50  ;;  %1121 = vmatprep.subr.mxu1 %v4943_v0 }
  0xbd   : > { %803 = vmatprep.mubr.f32.mxu0 %v4943_v0  ;;  %1122 = vmatpush2.msra.mxu1 %v1042_v20 }
  0xbe   : > { %1123 = vmatprep.subr.mxu1 %v4943_v0  ;;  %3788 = vmatprep.subr.mxu0 %v1330_v63 }
  0xbf   : > { %1124 = vmatpush2.msra.mxu1 %v1041_v21  ;;  %3789 = vmatpush3.msra.mxu0 %v1330_v63  ;;  %v1324_v21 = vld [vmem:[%s6115_s5 + $0x20] sm:$0xff] }
  0xc0   : > { %804 = vmatmul.mubr.f32.gmra.mxu0 %v633_v53  ;;  %1125 = vmatprep.subr.mxu1 %v4943_v0 }
  0xc1   : > { %809 = vmatprep.mubr.f32.mxu0 %v4943_v0  ;;  %1126 = vmatpush2.msra.mxu1 %v1040_v23 }
  0xc2   : > { %3790 = vmatprep.subr.mxu0 %v1329_v1 }
  0xc3   : > { %3791 = vmatpush3.msra.mxu0 %v1329_v1 }
  0xc4   : > { %810 = vmatmul.mubr.f32.gmra.mxu0 %v634_v56 }
  0xc5   : > { %815 = vmatprep.mubr.f32.mxu0 %v4943_v0 }
  0xc8   : > { %816 = vmatmul.mubr.f32.gmra.mxu0 %v635_v59 }
  0xc9   : > { %821 = vmatprep.mubr.f32.mxu0 %v4943_v0 }
  0xcc   : > { %822 = vmatmul.mubr.f32.gmra.mxu0 %v636_v62 }
  0xcd   : > { %827 = vmatprep.mubr.f32.mxu0 %v4943_v0 }
  0xd0   : > { %828 = vmatmul.mubr.f32.gmra.mxu0 %v637_v2 }
  0xd1   : > { %833 = vmatprep.mubr.f32.mxu0 %v4943_v0 }
  0xd4   : > { %834 = vmatmul.mubr.f32.gmra.mxu0 %v638_v3 }
  0xd5   : > { %839 = vmatprep.mubr.f32.mxu0 %v4943_v0 }
  0xd8   : > { %840 = vmatmul.mubr.f32.gmra.mxu0 %v639_v4 }
  0xd9   : > { %845 = vmatprep.mubr.f32.mxu0 %v4943_v0 }
  0xdc   : > { %846 = vmatmul.mubr.f32.gmra.mxu0 %v640_v5  ;;  %v1328_v5 = vld [vmem:[%s6115_s5 + $0x40] sm:$0xff] }
  0xdd   : > { %851 = vmatprep.mubr.f32.mxu0 %v4943_v0  ;;  %3792 = vmatprep.subr.mxu0 %v1328_v5 }
  0xde   : > { %3793 = vmatpush3.msra.mxu0 %v1328_v5 }
  0xdf   : > { %3794 = vmatprep.subr.mxu0 %v1327_v9 }
  0xe0   : > { %852 = vmatmul.mubr.f32.gmra.mxu0 %v641_v6 }
  0xe1   : > { %857 = vmatprep.mubr.f32.mxu0 %v4943_v0  ;;  %3795 = vmatpush3.msra.mxu0 %v1327_v9 }
  0xe4   : > { %858 = vmatmul.mubr.f32.gmra.mxu0 %v642_v7 }
  0xe5   : > { %863 = vmatprep.mubr.f32.mxu0 %v4943_v0 }
  0xe8   : > { %864 = vmatmul.mubr.f32.gmra.mxu0 %v643_v8 }
  0xe9   : > { %869 = vmatprep.mubr.f32.mxu0 %v4943_v0 }
  0xec   : > { %870 = vmatmul.mubr.f32.gmra.mxu0 %v644_v10 }
  0xed   : > { %875 = vmatprep.mubr.f32.mxu0 %v4943_v0 }
  0xf0   : > { %876 = vmatmul.mubr.f32.gmra.mxu0 %v645_v13  ;;  %v1326_v13 = vld [vmem:[%s6115_s5 + $0x30] sm:$0xff] }
  0xf1   : > { %881 = vmatprep.mubr.f32.mxu0 %v4943_v0  ;;  %3796 = vmatprep.subr.mxu0 %v1326_v13 }
  0xf2   : > { %3797 = vmatpush3.msra.mxu0 %v1326_v13 }
  0xf3   : > { %3798 = vmatprep.subr.mxu0 %v1325_v17 }
  0xf4   : > { %882 = vmatmul.mubr.f32.gmra.mxu0 %v646_v16 }
  0xf5   : > { %887 = vmatprep.mubr.f32.mxu0 %v4943_v0  ;;  %3799 = vmatpush3.msra.mxu0 %v1325_v17 }
  0xf6   : > { %3800 = vmatprep.subr.mxu0 %v1324_v21 }
  0xf7   : > { %3801 = vmatpush3.msra.mxu0 %v1324_v21 }
  0xf8   : > { %888 = vmatmul.mubr.f32.gmra.mxu0 %v647_v19 }
  0xf9   : > { %893 = vmatprep.mubr.f32.mxu0 %v4943_v0 }
  0xfc   : > { %894 = vmatmul.mubr.f32.gmra.mxu0 %v648_v22 }
  0xfd   : > { %899 = vmatprep.mubr.f32.mxu0 %v4943_v0 }
 0x100   : > { %900 = vmatmul.mubr.f32.gmra.mxu0 %v649_v24 }
 0x101   : > { %905 = vmatprep.mubr.f32.mxu0 %v4943_v0 }
 0x104   : > { %906 = vmatmul.mubr.f32.gmra.mxu0 %v650_v25  ;;  %v1323_v25 = vld [vmem:[%s6115_s5 + $0x18] sm:$0xff] }
 0x105   : > { %911 = vmatprep.mubr.f32.mxu0 %v4943_v0  ;;  %3802 = vmatprep.subr.mxu0 %v1323_v25 }
 0x106   : > { %3803 = vmatpush3.msra.mxu0 %v1323_v25 }
 0x108   : > { %912 = vmatmul.mubr.f32.gmra.mxu0 %v651_v26 }
 0x109   : > { %917 = vmatprep.mubr.f32.mxu0 %v4943_v0 }
 0x10c   : > { %918 = vmatmul.mubr.f32.gmra.mxu0 %v652_v27 }
 0x10d   : > { %923 = vmatprep.mubr.f32.mxu0 %v4943_v0 }
 0x110   : > { %924 = vmatmul.mubr.f32.gmra.mxu0 %v653_v28 }
 0x111   : > { %929 = vmatprep.mubr.f32.mxu0 %v4943_v0 }
 0x114   : > { %930 = vmatmul.mubr.f32.gmra.mxu0 %v654_v29  ;;  %v1322_v29 = vld [vmem:[%s6115_s5 + $0x10] sm:$0xff] }
 0x115   : > { %935 = vmatprep.mubr.f32.mxu0 %v4943_v0  ;;  %3804 = vmatprep.subr.mxu0 %v1322_v29 }
 0x116   : > { %3805 = vmatpush3.msra.mxu0 %v1322_v29 }
 0x118   : > { %936 = vmatmul.mubr.f32.gmra.mxu0 %v655_v30 }
 0x119   : > { %941 = vmatprep.mubr.f32.mxu0 %v4943_v0 }
 0x11c   : > { %942 = vmatmul.mubr.f32.gmra.mxu0 %v656_v31 }
 0x11d   : > { %947 = vmatprep.mubr.f32.mxu0 %v4943_v0 }
 0x120   : > { %948 = vmatmul.mubr.f32.gmra.mxu0 %v657_v32 }
 0x121   : > { %953 = vmatprep.mubr.f32.mxu0 %v4943_v0 }
 0x124   : > { %954 = vmatmul.mubr.f32.gmra.mxu0 %v658_v33 }
 0x168   : > { %v769_v44 = vpop.f32.mrf.mxu0 }
 0x169   : > { %v770_v46 = vadd.f32 %v769_v44, %v5422_v42 }
 0x16a   : > { %v771_v47 = vpop.f32.mrf.mxu0 }
 0x16b   : > { %v772_v48 = vadd.f32 %v771_v47, %v5426_v43 }
 0x16c   : > { %v775_v49 = vpop.f32.mrf.mxu0 }
 0x16d   : > { %4152 = vtanh.f32 %v772_v48  ;;  %v776_v50 = vadd.f32 %v775_v49, %v5422_v42 }
 0x16e   : > { %4154 = vtanh.f32 %v770_v46  ;;  %v777_v51 = vpop.f32.mrf.mxu0 }
 0x16f   : > { %v778_v52 = vadd.f32 %v777_v51, %v5426_v43 }
 0x170   : > { %v781_v53 = vpop.f32.mrf.mxu0 }
 0x171   : > { %4156 = vtanh.f32 %v778_v52  ;;  %v782_v55 = vadd.f32 %v781_v53, %v5422_v42 }
 0x172   : > { %4158 = vtanh.f32 %v776_v50  ;;  %v783_v56 = vpop.f32.mrf.mxu0 }
 0x173   : > { %v784_v57 = vadd.f32 %v783_v56, %v5426_v43 }
 0x174   : > { %v787_v58 = vpop.f32.mrf.mxu0 }
 0x175   : > { %4160 = vtanh.f32 %v784_v57  ;;  %v788_v59 = vadd.f32 %v787_v58, %v5422_v42 }
 0x176   : > { %4162 = vtanh.f32 %v782_v55  ;;  %v789_v60 = vpop.f32.mrf.mxu0 }
 0x177   : > { %v790_v61 = vadd.f32 %v789_v60, %v5426_v43 }
 0x178   : > { %v793_v62 = vpop.f32.mrf.mxu0 }
 0x179   : > { %4164 = vtanh.f32 %v790_v61  ;;  %v794_v3 = vadd.f32 %v793_v62, %v5422_v42 }
 0x17a   : > { %v4153_v2 = vpop.eup %4152  ;;  %4166 = vtanh.f32 %v788_v59  ;;  %v795_v4 = vpop.f32.mrf.mxu0 }
 0x17b   : > { %v4155_v6 = vpop.eup %4154  ;;  %v796_v7 = vadd.f32 %v795_v4, %v5426_v43  ;;  %1127 = vmatprep.mubr.f32.mxu1 %v4153_v2 }
 0x17c   : > { %v799_v8 = vpop.f32.mrf.mxu0  ;;  %1128 = vmatmul.mubr.f32.vlgmr.msra.gmra.mxu1 %v4155_v6 }
 0x17d   : > { %4168 = vtanh.f32 %v796_v7  ;;  %v800_v11 = vadd.f32 %v799_v8, %v5422_v42 }
 0x17e   : > { %v4157_v10 = vpop.eup %4156  ;;  %4170 = vtanh.f32 %v794_v3  ;;  %v801_v12 = vpop.f32.mrf.mxu0 }
 0x17f   : > { %v4159_v14 = vpop.eup %4158  ;;  %v802_v15 = vadd.f32 %v801_v12, %v5426_v43  ;;  %1132 = vmatprep.mubr.f32.mxu1 %v4157_v10 }
 0x180   : > { %v805_v16 = vpop.f32.mrf.mxu0  ;;  %1133 = vmatmul.mubr.f32.gmra.mxu1 %v4159_v14 }
 0x181   : > { %4172 = vtanh.f32 %v802_v15  ;;  %v806_v19 = vadd.f32 %v805_v16, %v5422_v42 }
 0x182   : > { %v4161_v18 = vpop.eup %4160  ;;  %4174 = vtanh.f32 %v800_v11  ;;  %v807_v20 = vpop.f32.mrf.mxu0 }
 0x183   : > { %v4163_v22 = vpop.eup %4162  ;;  %v808_v23 = vadd.f32 %v807_v20, %v5426_v43  ;;  %1137 = vmatprep.mubr.f32.mxu1 %v4161_v18 }
 0x184   : > { %v811_v24 = vpop.f32.mrf.mxu0  ;;  %1138 = vmatmul.mubr.f32.gmra.mxu1 %v4163_v22 }
 0x185   : > { %4176 = vtanh.f32 %v808_v23  ;;  %v812_v27 = vadd.f32 %v811_v24, %v5422_v42 }
 0x186   : > { %v4165_v26 = vpop.eup %4164  ;;  %4178 = vtanh.f32 %v806_v19  ;;  %v813_v28 = vpop.f32.mrf.mxu0 }
 0x187   : > { %v4167_v30 = vpop.eup %4166  ;;  %v814_v31 = vadd.f32 %v813_v28, %v5426_v43  ;;  %1142 = vmatprep.mubr.f32.mxu1 %v4165_v26 }
 0x188   : > { %v817_v32 = vpop.f32.mrf.mxu0  ;;  %1143 = vmatmul.mubr.f32.gmra.mxu1 %v4167_v30 }
 0x189   : > { %4180 = vtanh.f32 %v814_v31  ;;  %v818_v34 = vadd.f32 %v817_v32, %v5422_v42 }
 0x18a   : > { %v4169_v33 = vpop.eup %4168  ;;  %4182 = vtanh.f32 %v812_v27  ;;  %v819_v35 = vpop.f32.mrf.mxu0 }
 0x18b   : > { %v4171_v36 = vpop.eup %4170  ;;  %v820_v39 = vadd.f32 %v819_v35, %v5426_v43  ;;  %1147 = vmatprep.mubr.f32.mxu1 %v4169_v33 }
 0x18c   : > { %v823_v41 = vpop.f32.mrf.mxu0  ;;  %1148 = vmatmul.mubr.f32.gmra.mxu1 %v4171_v36 }
 0x18d   : > { %4184 = vtanh.f32 %v820_v39  ;;  %v824_v45 = vadd.f32 %v823_v41, %v5422_v42 }
 0x18e   : > { %v4173_v44 = vpop.eup %4172  ;;  %4186 = vtanh.f32 %v818_v34  ;;  %v825_v46 = vpop.f32.mrf.mxu0 }
 0x18f   : > { %v4175_v47 = vpop.eup %4174  ;;  %v826_v48 = vadd.f32 %v825_v46, %v5426_v43  ;;  %1152 = vmatprep.mubr.f32.mxu1 %v4173_v44 }
 0x190   : > { %v829_v49 = vpop.f32.mrf.mxu0  ;;  %1153 = vmatmul.mubr.f32.gmra.mxu1 %v4175_v47 }
 0x191   : > { %4188 = vtanh.f32 %v826_v48  ;;  %v830_v51 = vadd.f32 %v829_v49, %v5422_v42 }
 0x192   : > { %v4177_v50 = vpop.eup %4176  ;;  %4190 = vtanh.f32 %v824_v45  ;;  %v831_v52 = vpop.f32.mrf.mxu0 }
 0x193   : > { %v4179_v53 = vpop.eup %4178  ;;  %v832_v54 = vadd.f32 %v831_v52, %v5426_v43  ;;  %1157 = vmatprep.mubr.f32.mxu1 %v4177_v50 }
 0x194   : > { %v835_v55 = vpop.f32.mrf.mxu0  ;;  %1158 = vmatmul.mubr.f32.gmra.mxu1 %v4179_v53 }
 0x195   : > { %4192 = vtanh.f32 %v832_v54  ;;  %v836_v57 = vadd.f32 %v835_v55, %v5422_v42 }
 0x196   : > { %v4181_v56 = vpop.eup %4180  ;;  %4194 = vtanh.f32 %v830_v51  ;;  %v837_v58 = vpop.f32.mrf.mxu0 }
 0x197   : > { %v4183_v59 = vpop.eup %4182  ;;  %v838_v60 = vadd.f32 %v837_v58, %v5426_v43  ;;  %1162 = vmatprep.mubr.f32.mxu1 %v4181_v56 }
 0x198   : > { %v841_v61 = vpop.f32.mrf.mxu0  ;;  %1163 = vmatmul.mubr.f32.gmra.mxu1 %v4183_v59 }
 0x199   : > { %4196 = vtanh.f32 %v838_v60  ;;  %v842_v63 = vadd.f32 %v841_v61, %v5422_v42 }
 0x19a   : > { %v4185_v62 = vpop.eup %4184  ;;  %4198 = vtanh.f32 %v836_v57  ;;  %v843_v1 = vpop.f32.mrf.mxu0 }
 0x19b   : > { %v4187_v2 = vpop.eup %4186  ;;  %v844_v3 = vadd.f32 %v843_v1, %v5426_v43  ;;  %1167 = vmatprep.mubr.f32.mxu1 %v4185_v62 }
 0x19c   : > { %v847_v4 = vpop.f32.mrf.mxu0  ;;  %1168 = vmatmul.mubr.f32.gmra.mxu1 %v4187_v2 }
 0x19d   : > { %4200 = vtanh.f32 %v844_v3  ;;  %v848_v6 = vadd.f32 %v847_v4, %v5422_v42 }
 0x19e   : > { %v4189_v5 = vpop.eup %4188  ;;  %4202 = vtanh.f32 %v842_v63  ;;  %v849_v7 = vpop.f32.mrf.mxu0 }
 0x19f   : > { %v4191_v8 = vpop.eup %4190  ;;  %v850_v9 = vadd.f32 %v849_v7, %v5426_v43  ;;  %1172 = vmatprep.mubr.f32.mxu1 %v4189_v5 }
 0x1a0   : > { %v853_v10 = vpop.f32.mrf.mxu0  ;;  %1173 = vmatmul.mubr.f32.gmra.mxu1 %v4191_v8 }
 0x1a1   : > { %4204 = vtanh.f32 %v850_v9  ;;  %v854_v12 = vadd.f32 %v853_v10, %v5422_v42 }
 0x1a2   : > { %v4193_v11 = vpop.eup %4192  ;;  %4206 = vtanh.f32 %v848_v6  ;;  %v855_v13 = vpop.f32.mrf.mxu0  ;;  %v1321_v6 = vld [vmem:[%s6115_s5 + $0x8] sm:$0xff] }
 0x1a3   : > { %v4195_v14 = vpop.eup %4194  ;;  %v856_v15 = vadd.f32 %v855_v13, %v5426_v43  ;;  %1177 = vmatprep.mubr.f32.mxu1 %v4193_v11  ;;  %3806 = vmatprep.subr.mxu0 %v1321_v6 }
 0x1a4   : > { %v859_v16 = vpop.f32.mrf.mxu0  ;;  %1178 = vmatmul.mubr.f32.gmra.mxu1 %v4195_v14  ;;  %3807 = vmatpush3.msra.mxu0 %v1321_v6 }
 0x1a5   : > { %4208 = vtanh.f32 %v856_v15  ;;  %v860_v18 = vadd.f32 %v859_v16, %v5422_v42 }
 0x1a6   : > { %v4197_v17 = vpop.eup %4196  ;;  %4210 = vtanh.f32 %v854_v12  ;;  %v861_v19 = vpop.f32.mrf.mxu0 }
 0x1a7   : > { %v4199_v20 = vpop.eup %4198  ;;  %v862_v21 = vadd.f32 %v861_v19, %v5426_v43  ;;  %1182 = vmatprep.mubr.f32.mxu1 %v4197_v17  ;;  %v1320_v19 = vld [vmem:[%s6115_s5] sm:$0xff] }
 0x1a8   : > { %v865_v22 = vpop.f32.mrf.mxu0  ;;  %1183 = vmatmul.mubr.f32.gmra.mxu1 %v4199_v20  ;;  %3808 = vmatprep.subr.mxu0 %v1320_v19 }
 0x1a9   : > { %4212 = vtanh.f32 %v862_v21  ;;  %v866_v24 = vadd.f32 %v865_v22, %v5422_v42  ;;  %3809 = vmatpush3.msra.mxu0 %v1320_v19 }
 0x1aa   : > { %v4201_v23 = vpop.eup %4200  ;;  %4214 = vtanh.f32 %v860_v18  ;;  %v867_v25 = vpop.f32.mrf.mxu0 }
 0x1ab   : > { %v4203_v26 = vpop.eup %4202  ;;  %v868_v27 = vadd.f32 %v867_v25, %v5426_v43  ;;  %1187 = vmatprep.mubr.f32.mxu1 %v4201_v23 }
 0x1ac   : > { %v871_v28 = vpop.f32.mrf.mxu0  ;;  %1188 = vmatmul.mubr.f32.gmra.mxu1 %v4203_v26 }
 0x1ad   : > { %4216 = vtanh.f32 %v868_v27  ;;  %v872_v30 = vadd.f32 %v871_v28, %v5422_v42 }
 0x1ae   : > { %v4205_v29 = vpop.eup %4204  ;;  %4218 = vtanh.f32 %v866_v24  ;;  %v873_v31 = vpop.f32.mrf.mxu0 }
 0x1af   : > { %v4207_v32 = vpop.eup %4206  ;;  %v874_v33 = vadd.f32 %v873_v31, %v5426_v43  ;;  %1192 = vmatprep.mubr.f32.mxu1 %v4205_v29 }
 0x1b0   : > { %v877_v34 = vpop.f32.mrf.mxu0  ;;  %1193 = vmatmul.mubr.f32.gmra.mxu1 %v4207_v32 }
 0x1b1   : > { %4220 = vtanh.f32 %v874_v33  ;;  %v878_v36 = vadd.f32 %v877_v34, %v5422_v42 }
 0x1b2   : > { %v4209_v35 = vpop.eup %4208  ;;  %4222 = vtanh.f32 %v872_v30  ;;  %v879_v39 = vpop.f32.mrf.mxu0 }
 0x1b3   : > { %v4211_v41 = vpop.eup %4210  ;;  %v880_v44 = vadd.f32 %v879_v39, %v5426_v43  ;;  %1197 = vmatprep.mubr.f32.mxu1 %v4209_v35 }
 0x1b4   : > { %v883_v45 = vpop.f32.mrf.mxu0  ;;  %1198 = vmatmul.mubr.f32.gmra.mxu1 %v4211_v41 }
 0x1b5   : > { %4224 = vtanh.f32 %v880_v44  ;;  %v884_v47 = vadd.f32 %v883_v45, %v5422_v42 }
 0x1b6   : > { %v4213_v46 = vpop.eup %4212  ;;  %4226 = vtanh.f32 %v878_v36  ;;  %v885_v48 = vpop.f32.mrf.mxu0 }
 0x1b7   : > { %v4215_v49 = vpop.eup %4214  ;;  %v886_v50 = vadd.f32 %v885_v48, %v5426_v43  ;;  %1202 = vmatprep.mubr.f32.mxu1 %v4213_v46 }
 0x1b8   : > { %v889_v51 = vpop.f32.mrf.mxu0  ;;  %1203 = vmatmul.mubr.f32.gmra.mxu1 %v4215_v49 }
 0x1b9   : > { %4228 = vtanh.f32 %v886_v50  ;;  %v890_v53 = vadd.f32 %v889_v51, %v5422_v42 }
 0x1ba   : > { %v4217_v52 = vpop.eup %4216  ;;  %4230 = vtanh.f32 %v884_v47  ;;  %v891_v54 = vpop.f32.mrf.mxu0 }
 0x1bb   : > { %v4219_v55 = vpop.eup %4218  ;;  %v892_v56 = vadd.f32 %v891_v54, %v5426_v43  ;;  %1207 = vmatprep.mubr.f32.mxu1 %v4217_v52 }
 0x1bc   : > { %v895_v57 = vpop.f32.mrf.mxu0  ;;  %1208 = vmatmul.mubr.f32.gmra.mxu1 %v4219_v55 }
 0x1bd   : > { %4232 = vtanh.f32 %v892_v56  ;;  %v896_v59 = vadd.f32 %v895_v57, %v5422_v42 }
 0x1be   : > { %v4221_v58 = vpop.eup %4220  ;;  %4234 = vtanh.f32 %v890_v53  ;;  %v897_v60 = vpop.f32.mrf.mxu0 }
 0x1bf   : > { %v4223_v61 = vpop.eup %4222  ;;  %v898_v62 = vadd.f32 %v897_v60, %v5426_v43  ;;  %1212 = vmatprep.mubr.f32.mxu1 %v4221_v58 }
 0x1c0   : > { %v901_v63 = vpop.f32.mrf.mxu0  ;;  %1213 = vmatmul.mubr.f32.gmra.mxu1 %v4223_v61 }
 0x1c1   : > { %4236 = vtanh.f32 %v898_v62  ;;  %v902_v2 = vadd.f32 %v901_v63, %v5422_v42 }
 0x1c2   : > { %v4225_v1 = vpop.eup %4224  ;;  %4238 = vtanh.f32 %v896_v59  ;;  %v903_v3 = vpop.f32.mrf.mxu0 }
 0x1c3   : > { %v4227_v4 = vpop.eup %4226  ;;  %v904_v5 = vadd.f32 %v903_v3, %v5426_v43  ;;  %1217 = vmatprep.mubr.f32.mxu1 %v4225_v1 }
 0x1c4   : > { %v907_v7 = vpop.f32.mrf.mxu0  ;;  %1218 = vmatmul.mubr.f32.gmra.mxu1 %v4227_v4 }
 0x1c5   : > { %4240 = vtanh.f32 %v904_v5  ;;  %v908_v9 = vadd.f32 %v907_v7, %v5422_v42 }
 0x1c6   : > { %v4229_v8 = vpop.eup %4228  ;;  %4242 = vtanh.f32 %v902_v2  ;;  %v909_v10 = vpop.f32.mrf.mxu0 }
 0x1c7   : > { %v4231_v11 = vpop.eup %4230  ;;  %v910_v12 = vadd.f32 %v909_v10, %v5426_v43  ;;  %1222 = vmatprep.mubr.f32.mxu1 %v4229_v8 }
 0x1c8   : > { %v913_v13 = vpop.f32.mrf.mxu0  ;;  %1223 = vmatmul.mubr.f32.gmra.mxu1 %v4231_v11 }
 0x1c9   : > { %4244 = vtanh.f32 %v910_v12  ;;  %v914_v15 = vadd.f32 %v913_v13, %v5422_v42 }
 0x1ca   : > { %v4233_v14 = vpop.eup %4232  ;;  %4246 = vtanh.f32 %v908_v9  ;;  %v915_v16 = vpop.f32.mrf.mxu0 }
 0x1cb   : > { %v4235_v17 = vpop.eup %4234  ;;  %v916_v18 = vadd.f32 %v915_v16, %v5426_v43  ;;  %1227 = vmatprep.mubr.f32.mxu1 %v4233_v14  ;;  %v1607_v16 = vld [vmem:[%s6117_s7 + $0x38] sm:$0xff] }
 0x1cc   : > { %v919_v20 = vpop.f32.mrf.mxu0  ;;  %1228 = vmatmul.mubr.f32.gmra.mxu1 %v4235_v17  ;;  %4042 = vmatprep.subr.mxu1 %v1607_v16 }
 0x1cd   : > { %4248 = vtanh.f32 %v916_v18  ;;  %v920_v22 = vadd.f32 %v919_v20, %v5422_v42  ;;  %3858 = vmatprep.subr.mxu0 %v1607_v16  ;;  %4050 = vmatpush3.msra.mxu1 %v1607_v16 }
 0x1ce   : > { %v4237_v21 = vpop.eup %4236  ;;  %4250 = vtanh.f32 %v914_v15  ;;  %v921_v23 = vpop.f32.mrf.mxu0 }
 0x1cf   : > { %v4239_v24 = vpop.eup %4238  ;;  %v922_v25 = vadd.f32 %v921_v23, %v5426_v43  ;;  %1232 = vmatprep.mubr.f32.mxu1 %v4237_v21  ;;  %v1606_v23 = vld [vmem:[%s6117_s7 + $0x30] sm:$0xff] }
 0x1d0   : > { %v925_v26 = vpop.f32.mrf.mxu0  ;;  %1233 = vmatmul.mubr.f32.gmra.mxu1 %v4239_v24  ;;  %4043 = vmatprep.subr.mxu1 %v1606_v23 }
 0x1d1   : > { %4252 = vtanh.f32 %v922_v25  ;;  %v926_v28 = vadd.f32 %v925_v26, %v5422_v42  ;;  %4051 = vmatpush3.msra.mxu1 %v1606_v23  ;;  %v1605_v25 = vld [vmem:[%s6117_s7 + $0x28] sm:$0xff] }
 0x1d2   : > { %v4241_v27 = vpop.eup %4240  ;;  %4254 = vtanh.f32 %v920_v22  ;;  %v927_v29 = vpop.f32.mrf.mxu0  ;;  %4044 = vmatprep.subr.mxu1 %v1605_v25 }
 0x1d3   : > { %v4243_v30 = vpop.eup %4242  ;;  %v928_v31 = vadd.f32 %v927_v29, %v5426_v43  ;;  %1237 = vmatprep.mubr.f32.mxu1 %v4241_v27  ;;  %4052 = vmatpush3.msra.mxu1 %v1605_v25  ;;  %v1604_v29 = vld [vmem:[%s6117_s7 + $0x20] sm:$0xff] }
 0x1d4   : > { %v931_v32 = vpop.f32.mrf.mxu0  ;;  %1238 = vmatmul.mubr.f32.gmra.mxu1 %v4243_v30  ;;  %4045 = vmatprep.subr.mxu1 %v1604_v29 }
 0x1d5   : > { %4256 = vtanh.f32 %v928_v31  ;;  %v932_v34 = vadd.f32 %v931_v32, %v5422_v42  ;;  %4053 = vmatpush3.msra.mxu1 %v1604_v29  ;;  %v1603_v31 = vld [vmem:[%s6117_s7 + $0x18] sm:$0xff] }
 0x1d6   : > { %v4245_v33 = vpop.eup %4244  ;;  %4258 = vtanh.f32 %v926_v28  ;;  %v933_v35 = vpop.f32.mrf.mxu0  ;;  %4046 = vmatprep.subr.mxu1 %v1603_v31 }
 0x1d7   : > { %v4247_v36 = vpop.eup %4246  ;;  %v934_v39 = vadd.f32 %v933_v35, %v5426_v43  ;;  %1242 = vmatprep.mubr.f32.mxu1 %v4245_v33  ;;  %4054 = vmatpush3.msra.mxu1 %v1603_v31  ;;  %v1602_v35 = vld [vmem:[%s6117_s7 + $0x10] sm:$0xff] }
 0x1d8   : > { %v937_v41 = vpop.f32.mrf.mxu0  ;;  %1243 = vmatmul.mubr.f32.gmra.mxu1 %v4247_v36  ;;  %4047 = vmatprep.subr.mxu1 %v1602_v35 }
 0x1d9   : > { %4260 = vtanh.f32 %v934_v39  ;;  %v938_v45 = vadd.f32 %v937_v41, %v5422_v42  ;;  %4055 = vmatpush3.msra.mxu1 %v1602_v35 }
 0x1da   : > { %v4249_v44 = vpop.eup %4248  ;;  %4262 = vtanh.f32 %v932_v34  ;;  %v939_v46 = vpop.f32.mrf.mxu0 }
 0x1db   : > { %v4251_v47 = vpop.eup %4250  ;;  %v940_v48 = vadd.f32 %v939_v46, %v5426_v43  ;;  %1247 = vmatprep.mubr.f32.mxu1 %v4249_v44 }
 0x1dc   : > { %v943_v49 = vpop.f32.mrf.mxu0  ;;  %1248 = vmatmul.mubr.f32.gmra.mxu1 %v4251_v47 }
 0x1dd   : > { %4264 = vtanh.f32 %v940_v48  ;;  %v944_v51 = vadd.f32 %v943_v49, %v5422_v42 }
 0x1de   : > { %v4253_v50 = vpop.eup %4252  ;;  %4266 = vtanh.f32 %v938_v45  ;;  %v945_v52 = vpop.f32.mrf.mxu0 }
 0x1df   : > { %v4255_v53 = vpop.eup %4254  ;;  %v946_v54 = vadd.f32 %v945_v52, %v5426_v43  ;;  %1252 = vmatprep.mubr.f32.mxu1 %v4253_v50 }
 0x1e0   : > { %v949_v55 = vpop.f32.mrf.mxu0  ;;  %1253 = vmatmul.mubr.f32.gmra.mxu1 %v4255_v53 }
 0x1e1   : > { %4268 = vtanh.f32 %v946_v54  ;;  %v950_v57 = vadd.f32 %v949_v55, %v5422_v42 }
 0x1e2   : > { %v4257_v56 = vpop.eup %4256  ;;  %4270 = vtanh.f32 %v944_v51  ;;  %v951_v58 = vpop.f32.mrf.mxu0 }
 0x1e3   : > { %v4259_v59 = vpop.eup %4258  ;;  %v952_v60 = vadd.f32 %v951_v58, %v5426_v43  ;;  %1257 = vmatprep.mubr.f32.mxu1 %v4257_v56 }
 0x1e4   : > { %v955_v61 = vpop.f32.mrf.mxu0  ;;  %1258 = vmatmul.mubr.f32.gmra.mxu1 %v4259_v59 }
 0x1e5   : > { %4272 = vtanh.f32 %v952_v60  ;;  %v956_v63 = vadd.f32 %v955_v61, %v5422_v42 }
 0x1e6   : > { %v4261_v62 = vpop.eup %4260  ;;  %4274 = vtanh.f32 %v950_v57  ;;  %v957_v1 = vpop.f32.mrf.mxu0 }
 0x1e7   : > { %v4263_v2 = vpop.eup %4262  ;;  %v958_v3 = vadd.f32 %v957_v1, %v5426_v43  ;;  %1262 = vmatprep.mubr.f32.mxu1 %v4261_v62  ;;  %v5534_v43 = vld [vmem:[%s6114_s4] ss:$0 sm:$0xff] }
 0x1e8   : > { %1263 = vmatmul.mubr.f32.gmra.mxu1 %v4263_v2 }
 0x1e9   : > { %4276 = vtanh.f32 %v958_v3 }
 0x1ea   : > { %v4265_v4 = vpop.eup %4264  ;;  %4278 = vtanh.f32 %v956_v63 }
 0x1eb   : > { %v4267_v5 = vpop.eup %4266  ;;  %1267 = vmatprep.mubr.f32.mxu1 %v4265_v4 }
 0x1ec   : > { %1268 = vmatmul.mubr.f32.gmra.mxu1 %v4267_v5 }
 0x1ee   : > { %v4269_v6 = vpop.eup %4268 }
 0x1ef   : > { %v4271_v7 = vpop.eup %4270  ;;  %1272 = vmatprep.mubr.f32.mxu1 %v4269_v6 }
 0x1f0   : > { %1273 = vmatmul.mubr.f32.gmra.mxu1 %v4271_v7 }
 0x1f2   : > { %v4273_v8 = vpop.eup %4272 }
 0x1f3   : > { %v4275_v9 = vpop.eup %4274  ;;  %1277 = vmatprep.mubr.f32.mxu1 %v4273_v8 }
 0x1f4   : > { %1278 = vmatmul.mubr.f32.gmra.mxu1 %v4275_v9 }
 0x1f6   : > { %v4277_v42 = vpop.eup %4276 }
 0x1f7   : > { %v4279_v10 = vpop.eup %4278  ;;  %1282 = vmatprep.mubr.f32.mxu1 %v4277_v42 }
 0x1f8   : > { %1283 = vmatmul.mubr.f32.gmra.mxu1 %v4279_v10 }
 0x23c   : > { %v1129_v11 = vpop.f32.mrf.mxu1 }
 0x23d   : > { %v1130_v12 = vadd.f32 %v5534_v43, %v1129_v11 }
 0x23e   : > { %v1131_v13 = vpop.f32.mrf.mxu1 }
 0x23f   : > { %4280 = vtanh.f32 %v1130_v12 }
 0x240   : > { %v1134_v14 = vpop.f32.mrf.mxu1 }
 0x241   : > { %v1135_v15 = vadd.f32 %v5534_v43, %v1134_v14 }
 0x242   : > { %v1136_v17 = vpop.f32.mrf.mxu1 }
 0x243   : > { %4282 = vtanh.f32 %v1135_v15 }
 0x244   : > { %v1139_v18 = vpop.f32.mrf.mxu1 }
 0x245   : > { %v1140_v19 = vadd.f32 %v5534_v43, %v1139_v18 }
 0x246   : > { %v1141_v20 = vpop.f32.mrf.mxu1 }
 0x247   : > { %4284 = vtanh.f32 %v1140_v19 }
 0x248   : > { %v1144_v21 = vpop.f32.mrf.mxu1 }
 0x249   : > { %v1145_v22 = vadd.f32 %v5534_v43, %v1144_v21 }
 0x24a   : > { %v1146_v24 = vpop.f32.mrf.mxu1 }
 0x24b   : > { %4286 = vtanh.f32 %v1145_v22 }
 0x24c   : > { %v4281_v26 = vpop.eup %4280  ;;  %v1149_v27 = vpop.f32.mrf.mxu1 }
 0x24d   : > { %v1150_v28 = vadd.f32 %v5534_v43, %v1149_v27  ;;  %3810 = vmatprep.mubr.f32.mxu0 %v4281_v26 }
 0x24e   : > { %v1151_v30 = vpop.f32.mrf.mxu1 }
 0x24f   : > { %4288 = vtanh.f32 %v1150_v28 }
 0x250   : > { %v4283_v32 = vpop.eup %4282  ;;  %v1154_v33 = vpop.f32.mrf.mxu1 }
 0x251   : > { %v1155_v34 = vadd.f32 %v5534_v43, %v1154_v33  ;;  %3811 = vmatmul.mubr.f32.vlgmr.msra.gmra.mxu0 %v4283_v32 }
 0x252   : > { %v1156_v36 = vpop.f32.mrf.mxu1  ;;  %3859 = vmatpush3.msra.mxu0 %v1607_v16 }
 0x253   : > { %4290 = vtanh.f32 %v1155_v34  ;;  %3860 = vmatprep.subr.mxu0 %v1606_v23 }
 0x254   : > { %v4285_v39 = vpop.eup %4284  ;;  %v1159_v41 = vpop.f32.mrf.mxu1  ;;  %3861 = vmatpush3.msra.mxu0 %v1606_v23 }
 0x255   : > { %v1160_v44 = vadd.f32 %v5534_v43, %v1159_v41  ;;  %3813 = vmatprep.mubr.f32.mxu0 %v4285_v39  ;;  %3862 = vmatprep.subr.mxu0 %v1605_v25 }
 0x256   : > { %v1161_v45 = vpop.f32.mrf.mxu1  ;;  %3863 = vmatpush3.msra.mxu0 %v1605_v25 }
 0x257   : > { %4292 = vtanh.f32 %v1160_v44  ;;  %3864 = vmatprep.subr.mxu0 %v1604_v29 }
 0x258   : > { %v4287_v46 = vpop.eup %4286  ;;  %v1164_v47 = vpop.f32.mrf.mxu1  ;;  %3865 = vmatpush3.msra.mxu0 %v1604_v29 }
 0x259   : > { %v1165_v48 = vadd.f32 %v5534_v43, %v1164_v47  ;;  %3814 = vmatmul.mubr.f32.gmra.mxu0 %v4287_v46  ;;  %3866 = vmatprep.subr.mxu0 %v1603_v31 }
 0x25a   : > { %v1166_v49 = vpop.f32.mrf.mxu1  ;;  %3867 = vmatpush3.msra.mxu0 %v1603_v31 }
 0x25b   : > { %4294 = vtanh.f32 %v1165_v48  ;;  %3868 = vmatprep.subr.mxu0 %v1602_v35 }
 0x25c   : > { %v4289_v50 = vpop.eup %4288  ;;  %v1169_v51 = vpop.f32.mrf.mxu1  ;;  %3869 = vmatpush3.msra.mxu0 %v1602_v35 }
 0x25d   : > { %v1170_v52 = vadd.f32 %v5534_v43, %v1169_v51  ;;  %3816 = vmatprep.mubr.f32.mxu0 %v4289_v50  ;;  %v1601_v51 = vld [vmem:[%s6117_s7 + $0x8] sm:$0xff] }
 0x25e   : > { %v1171_v53 = vpop.f32.mrf.mxu1  ;;  %3870 = vmatprep.subr.mxu0 %v1601_v51  ;;  %4048 = vmatprep.subr.mxu1 %v1601_v51 }
 0x25f   : > { %4296 = vtanh.f32 %v1170_v52  ;;  %3871 = vmatpush3.msra.mxu0 %v1601_v51  ;;  %4056 = vmatpush3.msra.mxu1 %v1601_v51 }
 0x260   : > { %v4291_v54 = vpop.eup %4290  ;;  %v1174_v55 = vpop.f32.mrf.mxu1 }
 0x261   : > { %v1175_v56 = vadd.f32 %v5534_v43, %v1174_v55  ;;  %3817 = vmatmul.mubr.f32.gmra.mxu0 %v4291_v54 }
 0x262   : > { %v1176_v57 = vpop.f32.mrf.mxu1 }
 0x263   : > { %4298 = vtanh.f32 %v1175_v56 }
 0x264   : > { %v4293_v58 = vpop.eup %4292  ;;  %v1179_v59 = vpop.f32.mrf.mxu1 }
 0x265   : > { %v1180_v60 = vadd.f32 %v5534_v43, %v1179_v59  ;;  %3819 = vmatprep.mubr.f32.mxu0 %v4293_v58 }
 0x266   : > { %v1181_v61 = vpop.f32.mrf.mxu1 }
 0x267   : > { %4300 = vtanh.f32 %v1180_v60  ;;  %v1600_v60 = vld [vmem:[%s6117_s7] sm:$0xff] }
 0x268   : > { %v4295_v62 = vpop.eup %4294  ;;  %v1184_v63 = vpop.f32.mrf.mxu1  ;;  %3872 = vmatprep.subr.mxu0 %v1600_v60  ;;  %4049 = vmatprep.subr.mxu1 %v1600_v60 }
 0x269   : > { %v1185_v1 = vadd.f32 %v5534_v43, %v1184_v63  ;;  %3820 = vmatmul.mubr.f32.gmra.mxu0 %v4295_v62  ;;  %4057 = vmatpush3.msra.mxu1 %v1600_v60 }
 0x26a   : > { %v1186_v2 = vpop.f32.mrf.mxu1  ;;  %3873 = vmatpush3.msra.mxu0 %v1600_v60 }
 0x26b   : > { %4302 = vtanh.f32 %v1185_v1 }
 0x26c   : > { %v4297_v3 = vpop.eup %4296  ;;  %v1189_v4 = vpop.f32.mrf.mxu1 }
 0x26d   : > { %v1190_v5 = vadd.f32 %v5534_v43, %v1189_v4  ;;  %3822 = vmatprep.mubr.f32.mxu0 %v4297_v3 }
 0x26e   : > { %v1191_v6 = vpop.f32.mrf.mxu1 }
 0x26f   : > { %4304 = vtanh.f32 %v1190_v5 }
 0x270   : > { %v4299_v7 = vpop.eup %4298  ;;  %v1194_v8 = vpop.f32.mrf.mxu1 }
 0x271   : > { %v1195_v9 = vadd.f32 %v5534_v43, %v1194_v8  ;;  %3823 = vmatmul.mubr.f32.gmra.mxu0 %v4299_v7 }
 0x272   : > { %v1196_v42 = vpop.f32.mrf.mxu1 }
 0x273   : > { %4306 = vtanh.f32 %v1195_v9 }
 0x274   : > { %v4301_v10 = vpop.eup %4300  ;;  %v1199_v11 = vpop.f32.mrf.mxu1 }
 0x275   : > { %v1200_v12 = vadd.f32 %v5534_v43, %v1199_v11  ;;  %3825 = vmatprep.mubr.f32.mxu0 %v4301_v10 }
 0x276   : > { %v1201_v13 = vpop.f32.mrf.mxu1 }
 0x277   : > { %4308 = vtanh.f32 %v1200_v12 }
 0x278   : > { %v4303_v14 = vpop.eup %4302  ;;  %v1204_v15 = vpop.f32.mrf.mxu1 }
 0x279   : > { %v1205_v16 = vadd.f32 %v5534_v43, %v1204_v15  ;;  %3826 = vmatmul.mubr.f32.gmra.mxu0 %v4303_v14 }
 0x27a   : > { %v1206_v17 = vpop.f32.mrf.mxu1 }
 0x27b   : > { %4310 = vtanh.f32 %v1205_v16 }
 0x27c   : > { %v4305_v18 = vpop.eup %4304  ;;  %v1209_v19 = vpop.f32.mrf.mxu1 }
 0x27d   : > { %v1210_v20 = vadd.f32 %v5534_v43, %v1209_v19  ;;  %3828 = vmatprep.mubr.f32.mxu0 %v4305_v18 }
 0x27e   : > { %v1211_v21 = vpop.f32.mrf.mxu1 }
 0x27f   : > { %4312 = vtanh.f32 %v1210_v20 }
 0x280   : > { %v4307_v22 = vpop.eup %4306  ;;  %v1214_v23 = vpop.f32.mrf.mxu1 }
 0x281   : > { %v1215_v24 = vadd.f32 %v5534_v43, %v1214_v23  ;;  %3829 = vmatmul.mubr.f32.gmra.mxu0 %v4307_v22 }
 0x282   : > { %v1216_v25 = vpop.f32.mrf.mxu1 }
 0x283   : > { %4314 = vtanh.f32 %v1215_v24 }
 0x284   : > { %v4309_v26 = vpop.eup %4308  ;;  %v1219_v27 = vpop.f32.mrf.mxu1 }
 0x285   : > { %v1220_v28 = vadd.f32 %v5534_v43, %v1219_v27  ;;  %3831 = vmatprep.mubr.f32.mxu0 %v4309_v26 }
 0x286   : > { %v1221_v29 = vpop.f32.mrf.mxu1 }
 0x287   : > { %4316 = vtanh.f32 %v1220_v28  ;;  %v5595_v29 = vld [vmem:[%s6116_s6] ss:$0 sm:$0xff] }
 0x288   : > { %v4311_v30 = vpop.eup %4310  ;;  %v1224_v31 = vpop.f32.mrf.mxu1 }
 0x289   : > { %v1225_v32 = vadd.f32 %v5534_v43, %v1224_v31  ;;  %3832 = vmatmul.mubr.f32.gmra.mxu0 %v4311_v30 }
 0x28a   : > { %v1226_v33 = vpop.f32.mrf.mxu1 }
 0x28b   : > { %4318 = vtanh.f32 %v1225_v32 }
 0x28c   : > { %v4313_v34 = vpop.eup %4312  ;;  %v1229_v35 = vpop.f32.mrf.mxu1 }
 0x28d   : > { %v1230_v36 = vadd.f32 %v5534_v43, %v1229_v35  ;;  %3834 = vmatprep.mubr.f32.mxu0 %v4313_v34 }
 0x28e   : > { %v1231_v39 = vpop.f32.mrf.mxu1 }
 0x28f   : > { %4320 = vtanh.f32 %v1230_v36 }
 0x290   : > { %v4315_v41 = vpop.eup %4314  ;;  %v1234_v44 = vpop.f32.mrf.mxu1 }
 0x291   : > { %v1235_v45 = vadd.f32 %v5534_v43, %v1234_v44  ;;  %3835 = vmatmul.mubr.f32.gmra.mxu0 %v4315_v41 }
 0x292   : > { %v1236_v46 = vpop.f32.mrf.mxu1 }
 0x293   : > { %4322 = vtanh.f32 %v1235_v45 }
 0x294   : > { %v4317_v47 = vpop.eup %4316  ;;  %v1239_v48 = vpop.f32.mrf.mxu1 }
 0x295   : > { %v1240_v49 = vadd.f32 %v5534_v43, %v1239_v48  ;;  %3837 = vmatprep.mubr.f32.mxu0 %v4317_v47 }
 0x296   : > { %v1241_v50 = vpop.f32.mrf.mxu1 }
 0x297   : > { %4324 = vtanh.f32 %v1240_v49 }
 0x298   : > { %v4319_v52 = vpop.eup %4318  ;;  %v1244_v53 = vpop.f32.mrf.mxu1 }
 0x299   : > { %v1245_v54 = vadd.f32 %v5534_v43, %v1244_v53  ;;  %3838 = vmatmul.mubr.f32.gmra.mxu0 %v4319_v52 }
 0x29a   : > { %v1246_v55 = vpop.f32.mrf.mxu1 }
 0x29b   : > { %4326 = vtanh.f32 %v1245_v54 }
 0x29c   : > { %v4321_v56 = vpop.eup %4320  ;;  %v1249_v57 = vpop.f32.mrf.mxu1 }
 0x29d   : > { %v1250_v58 = vadd.f32 %v5534_v43, %v1249_v57  ;;  %3840 = vmatprep.mubr.f32.mxu0 %v4321_v56 }
 0x29e   : > { %v1251_v59 = vpop.f32.mrf.mxu1 }
 0x29f   : > { %4328 = vtanh.f32 %v1250_v58 }
 0x2a0   : > { %v4323_v61 = vpop.eup %4322  ;;  %v1254_v62 = vpop.f32.mrf.mxu1 }
 0x2a1   : > { %v1255_v63 = vadd.f32 %v5534_v43, %v1254_v62  ;;  %3841 = vmatmul.mubr.f32.gmra.mxu0 %v4323_v61 }
 0x2a2   : > { %v1256_v1 = vpop.f32.mrf.mxu1 }
 0x2a3   : > { %4330 = vtanh.f32 %v1255_v63 }
 0x2a4   : > { %v4325_v2 = vpop.eup %4324  ;;  %v1259_v3 = vpop.f32.mrf.mxu1 }
 0x2a5   : > { %v1260_v4 = vadd.f32 %v5534_v43, %v1259_v3  ;;  %3843 = vmatprep.mubr.f32.mxu0 %v4325_v2 }
 0x2a6   : > { %v1261_v5 = vpop.f32.mrf.mxu1 }
 0x2a7   : > { %4332 = vtanh.f32 %v1260_v4 }
 0x2a8   : > { %v4327_v6 = vpop.eup %4326  ;;  %v1264_v7 = vpop.f32.mrf.mxu1 }
 0x2a9   : > { %v1265_v8 = vadd.f32 %v5534_v43, %v1264_v7  ;;  %3844 = vmatmul.mubr.f32.gmra.mxu0 %v4327_v6 }
 0x2aa   : > { %v1266_v9 = vpop.f32.mrf.mxu1 }
 0x2ab   : > { %4334 = vtanh.f32 %v1265_v8 }
 0x2ac   : > { %v4329_v42 = vpop.eup %4328  ;;  %v1269_v10 = vpop.f32.mrf.mxu1 }
 0x2ad   : > { %v1270_v11 = vadd.f32 %v5534_v43, %v1269_v10  ;;  %3846 = vmatprep.mubr.f32.mxu0 %v4329_v42 }
 0x2ae   : > { %v1271_v12 = vpop.f32.mrf.mxu1 }
 0x2af   : > { %4336 = vtanh.f32 %v1270_v11 }
 0x2b0   : > { %v4331_v13 = vpop.eup %4330  ;;  %v1274_v14 = vpop.f32.mrf.mxu1 }
 0x2b1   : > { %v1275_v15 = vadd.f32 %v5534_v43, %v1274_v14  ;;  %3847 = vmatmul.mubr.f32.gmra.mxu0 %v4331_v13 }
 0x2b2   : > { %v1276_v16 = vpop.f32.mrf.mxu1 }
 0x2b3   : > { %4338 = vtanh.f32 %v1275_v15 }
 0x2b4   : > { %v4333_v17 = vpop.eup %4332  ;;  %v1279_v18 = vpop.f32.mrf.mxu1 }
 0x2b5   : > { %v1280_v19 = vadd.f32 %v5534_v43, %v1279_v18  ;;  %3849 = vmatprep.mubr.f32.mxu0 %v4333_v17 }
 0x2b6   : > { %v1281_v20 = vpop.f32.mrf.mxu1 }
 0x2b7   : > { %4340 = vtanh.f32 %v1280_v19 }
 0x2b8   : > { %v4335_v21 = vpop.eup %4334  ;;  %v1284_v22 = vpop.f32.mrf.mxu1 }
 0x2b9   : > { %v1285_v23 = vadd.f32 %v5534_v43, %v1284_v22  ;;  %3850 = vmatmul.mubr.f32.gmra.mxu0 %v4335_v21 }
 0x2ba   : > { %v1286_v24 = vpop.f32.mrf.mxu1 }
 0x2bb   : > { %4342 = vtanh.f32 %v1285_v23 }
 0x2bc   : > { %v4337_v25 = vpop.eup %4336 }
 0x2bd   : > { %3852 = vmatprep.mubr.f32.mxu0 %v4337_v25 }
 0x2c0   : > { %v4339_v26 = vpop.eup %4338 }
 0x2c1   : > { %3853 = vmatmul.mubr.f32.gmra.mxu0 %v4339_v26 }
 0x2c4   : > { %v4341_v27 = vpop.eup %4340 }
 0x2c5   : > { %3855 = vmatprep.mubr.f32.mxu0 %v4341_v27 }
 0x2c8   : > { %v4343_v28 = vpop.eup %4342 }
 0x2c9   : > { %3856 = vmatmul.mubr.f32.gmra.mxu0 %v4343_v28 }
 0x311   : > { %v3812_v30 = vpop.f32.mrf.mxu0 }
 0x312   : > { %v1415_v31 = vadd.f32 %v3812_v30, %v5595_v29 }
 0x313   : > { %v1409_v43 = vpop.f32.mrf.mxu0 }
 0x314   : > { %v1410_v32 = vadd.f32 %v5595_v29, %v1409_v43 }
 0x316   : > { %4344 = vtanh.f32 %v1410_v32 }
 0x317   : > { %4346 = vtanh.f32 %v1415_v31 }
 0x319   : > { %v3815_v33 = vpop.f32.mrf.mxu0 }
 0x31a   : > { %v1425_v34 = vadd.f32 %v3815_v33, %v5595_v29  ;;  %v1972_v33 = vld [vmem:[%s6119_s9 + $0x18] sm:$0xff] }
 0x31b   : > { %v1419_v35 = vpop.f32.mrf.mxu0  ;;  %3922 = vmatprep.subr.mxu0 %v1972_v33 }
 0x31c   : > { %v1420_v36 = vadd.f32 %v5595_v29, %v1419_v35 }
 0x31e   : > { %4348 = vtanh.f32 %v1420_v36 }
 0x31f   : > { %4350 = vtanh.f32 %v1425_v34  ;;  %v1971_v34 = vld [vmem:[%s6119_s9 + $0x10] sm:$0xff] }
 0x321   : > { %v3818_v39 = vpop.f32.mrf.mxu0 }
 0x322   : > { %v1435_v44 = vadd.f32 %v3818_v39, %v5595_v29 }
 0x323   : > { %v4345_v41 = vpop.eup %4344  ;;  %v1429_v45 = vpop.f32.mrf.mxu0 }
 0x324   : > { %v4347_v46 = vpop.eup %4346  ;;  %v1430_v47 = vadd.f32 %v5595_v29, %v1429_v45  ;;  %3874 = vmatprep.mubr.msk.f32.mxu0 %vm1615_vm0, %v4345_v41 }
 0x325   : > { %3875 = vmatmul.mubr.msk.f32.vlgmr.msra.gmra.mxu0 %vm1615_vm0, %v4347_v46  ;;  %v1970_v46 = vld [vmem:[%s6119_s9 + $0x8] sm:$0xff] }
 0x326   : > { %4352 = vtanh.f32 %v1430_v47  ;;  %3923 = vmatpush3.msra.mxu0 %v1972_v33  ;;  %v1969_v47 = vld [vmem:[%s6119_s9] sm:$0xff] }
 0x327   : > { %4354 = vtanh.f32 %v1435_v44  ;;  %3924 = vmatprep.subr.mxu0 %v1971_v34 }
 0x328   : > { %3925 = vmatpush3.msra.mxu0 %v1971_v34 }
 0x329   : > { %v3821_v48 = vpop.f32.mrf.mxu0  ;;  %3926 = vmatprep.subr.mxu0 %v1970_v46 }
 0x32a   : > { %v1445_v50 = vadd.f32 %v3821_v48, %v5595_v29  ;;  %3927 = vmatpush3.msra.mxu0 %v1970_v46 }
 0x32b   : > { %v4349_v49 = vpop.eup %4348  ;;  %v1439_v51 = vpop.f32.mrf.mxu0  ;;  %3928 = vmatprep.subr.mxu0 %v1969_v47 }
 0x32c   : > { %v4351_v52 = vpop.eup %4350  ;;  %v1440_v53 = vadd.f32 %v5595_v29, %v1439_v51  ;;  %3877 = vmatprep.mubr.msk.f32.mxu0 %vm1615_vm0, %v4349_v49  ;;  %3929 = vmatpush3.msra.mxu0 %v1969_v47 }
 0x32d   : > { %3878 = vmatmul.mubr.msk.f32.gmra.mxu0 %vm1615_vm0, %v4351_v52 }
 0x32e   : > { %4356 = vtanh.f32 %v1440_v53 }
 0x32f   : > { %4358 = vtanh.f32 %v1445_v50 }
 0x331   : > { %v3824_v54 = vpop.f32.mrf.mxu0 }
 0x332   : > { %v1455_v56 = vadd.f32 %v3824_v54, %v5595_v29 }
 0x333   : > { %v4353_v55 = vpop.eup %4352  ;;  %v1449_v57 = vpop.f32.mrf.mxu0 }
 0x334   : > { %v4355_v58 = vpop.eup %4354  ;;  %v1450_v59 = vadd.f32 %v5595_v29, %v1449_v57  ;;  %3880 = vmatprep.mubr.msk.f32.mxu0 %vm1615_vm0, %v4353_v55 }
 0x335   : > { %3881 = vmatmul.mubr.msk.f32.gmra.mxu0 %vm1615_vm0, %v4355_v58 }
 0x336   : > { %4360 = vtanh.f32 %v1450_v59 }
 0x337   : > { %4362 = vtanh.f32 %v1455_v56 }
 0x339   : > { %v3827_v60 = vpop.f32.mrf.mxu0 }
 0x33a   : > { %v1465_v62 = vadd.f32 %v3827_v60, %v5595_v29 }
 0x33b   : > { %v4357_v61 = vpop.eup %4356  ;;  %v1459_v63 = vpop.f32.mrf.mxu0 }
 0x33c   : > { %v4359_v1 = vpop.eup %4358  ;;  %v1460_v2 = vadd.f32 %v5595_v29, %v1459_v63  ;;  %3883 = vmatprep.mubr.msk.f32.mxu0 %vm1615_vm0, %v4357_v61 }
 0x33d   : > { %3884 = vmatmul.mubr.msk.f32.gmra.mxu0 %vm1615_vm0, %v4359_v1 }
 0x33e   : > { %4364 = vtanh.f32 %v1460_v2 }
 0x33f   : > { %4366 = vtanh.f32 %v1465_v62 }
 0x341   : > { %v3830_v3 = vpop.f32.mrf.mxu0 }
 0x342   : > { %v1475_v5 = vadd.f32 %v3830_v3, %v5595_v29 }
 0x343   : > { %v4361_v4 = vpop.eup %4360  ;;  %v1469_v6 = vpop.f32.mrf.mxu0 }
 0x344   : > { %v4363_v7 = vpop.eup %4362  ;;  %v1470_v8 = vadd.f32 %v5595_v29, %v1469_v6  ;;  %3886 = vmatprep.mubr.msk.f32.mxu1 %vm1615_vm0, %v4361_v4 }
 0x345   : > { %3887 = vmatmul.mubr.msk.f32.vlgmr.msra.gmra.mxu1 %vm1615_vm0, %v4363_v7 }
 0x346   : > { %4368 = vtanh.f32 %v1470_v8 }
 0x347   : > { %4370 = vtanh.f32 %v1475_v5 }
 0x349   : > { %v3833_v9 = vpop.f32.mrf.mxu0 }
 0x34a   : > { %v1485_v10 = vadd.f32 %v3833_v9, %v5595_v29 }
 0x34b   : > { %v4365_v42 = vpop.eup %4364  ;;  %v1479_v11 = vpop.f32.mrf.mxu0 }
 0x34c   : > { %v4367_v12 = vpop.eup %4366  ;;  %v1480_v13 = vadd.f32 %v5595_v29, %v1479_v11  ;;  %3889 = vmatprep.mubr.msk.f32.mxu1 %vm1615_vm0, %v4365_v42 }
 0x34d   : > { %3890 = vmatmul.mubr.msk.f32.gmra.mxu1 %vm1615_vm0, %v4367_v12 }
 0x34e   : > { %4372 = vtanh.f32 %v1480_v13 }
 0x34f   : > { %4374 = vtanh.f32 %v1485_v10 }
 0x351   : > { %v3836_v14 = vpop.f32.mrf.mxu0 }
 0x352   : > { %v1495_v16 = vadd.f32 %v3836_v14, %v5595_v29 }
 0x353   : > { %v4369_v15 = vpop.eup %4368  ;;  %v1489_v17 = vpop.f32.mrf.mxu0 }
 0x354   : > { %v4371_v18 = vpop.eup %4370  ;;  %v1490_v19 = vadd.f32 %v5595_v29, %v1489_v17  ;;  %3892 = vmatprep.mubr.msk.f32.mxu1 %vm1615_vm0, %v4369_v15 }
 0x355   : > { %3893 = vmatmul.mubr.msk.f32.gmra.mxu1 %vm1615_vm0, %v4371_v18 }
 0x356   : > { %4376 = vtanh.f32 %v1490_v19  ;;  %v2341_v19 = vld [vmem:[#allocation7 + $0x38] sm:$0xff] }
 0x357   : > { %4378 = vtanh.f32 %v1495_v16  ;;  %3978 = vmatprep.subr.mxu1 %v2341_v19 }
 0x358   : > { %3979 = vmatpush3.msra.mxu1 %v2341_v19  ;;  %v2336_v19 = vld [vmem:[#allocation7 + $0x10] sm:$0xff] }
 0x359   : > { %v3839_v20 = vpop.f32.mrf.mxu0 }
 0x35a   : > { %v1505_v22 = vadd.f32 %v3839_v20, %v5595_v29  ;;  %v2340_v20 = vld [vmem:[#allocation7 + $0x30] sm:$0xff] }
 0x35b   : > { %v4373_v21 = vpop.eup %4372  ;;  %v1499_v23 = vpop.f32.mrf.mxu0  ;;  %3980 = vmatprep.subr.mxu1 %v2340_v20 }
 0x35c   : > { %v4375_v24 = vpop.eup %4374  ;;  %v1500_v25 = vadd.f32 %v5595_v29, %v1499_v23  ;;  %3895 = vmatprep.mubr.msk.f32.mxu1 %vm1615_vm0, %v4373_v21  ;;  %v2339_v21 = vld [vmem:[#allocation7 + $0x28] sm:$0xff]  ;;  %3981 = vmatpush3.msra.mxu1 %v2340_v20  ;;  %v2338_v23 = vld [vmem:[#allocation7 + $0x20] sm:$0xff] }
 0x35d   : > { %3896 = vmatmul.mubr.msk.f32.gmra.mxu1 %vm1615_vm0, %v4375_v24  ;;  %3982 = vmatprep.subr.mxu1 %v2339_v21 }
 0x35e   : > { %4380 = vtanh.f32 %v1500_v25  ;;  %3983 = vmatpush3.msra.mxu1 %v2339_v21  ;;  %v2335_v21 = vld [vmem:[#allocation7 + $0x8] sm:$0xff] }
 0x35f   : > { %4382 = vtanh.f32 %v1505_v22  ;;  %3984 = vmatprep.subr.mxu1 %v2338_v23 }
 0x360   : > { %3985 = vmatpush3.msra.mxu1 %v2338_v23 }
 0x361   : > { %v3842_v26 = vpop.f32.mrf.mxu0 }
 0x362   : > { %v1515_v28 = vadd.f32 %v3842_v26, %v5595_v29 }
 0x363   : > { %v4377_v27 = vpop.eup %4376  ;;  %v1509_v30 = vpop.f32.mrf.mxu0 }
 0x364   : > { %v4379_v31 = vpop.eup %4378  ;;  %v1510_v43 = vadd.f32 %v5595_v29, %v1509_v30  ;;  %3898 = vmatprep.mubr.msk.f32.mxu1 %vm1615_vm0, %v4377_v27  ;;  %v2337_v27 = vld [vmem:[#allocation7 + $0x18] sm:$0xff] }
 0x365   : > { %3899 = vmatmul.mubr.msk.f32.gmra.mxu1 %vm1615_vm0, %v4379_v31  ;;  %3986 = vmatprep.subr.mxu1 %v2337_v27 }
 0x366   : > { %4384 = vtanh.f32 %v1510_v43  ;;  %3987 = vmatpush3.msra.mxu1 %v2337_v27 }
 0x367   : > { %4386 = vtanh.f32 %v1515_v28  ;;  %3988 = vmatprep.subr.mxu1 %v2336_v19 }
 0x368   : > { %3989 = vmatpush3.msra.mxu1 %v2336_v19 }
 0x369   : > { %v3845_v32 = vpop.f32.mrf.mxu0  ;;  %3990 = vmatprep.subr.mxu1 %v2335_v21 }
 0x36a   : > { %v1525_v36 = vadd.f32 %v3845_v32, %v5595_v29  ;;  %3991 = vmatpush3.msra.mxu1 %v2335_v21  ;;  %v2723_v21 = vld [vmem:[#allocation8 + $0xa8] sm:$0xff] }
 0x36b   : > { %v4381_v35 = vpop.eup %4380  ;;  %v1519_v39 = vpop.f32.mrf.mxu0 }
 0x36c   : > { %v4383_v41 = vpop.eup %4382  ;;  %v1520_v44 = vadd.f32 %v5595_v29, %v1519_v39  ;;  %3901 = vmatprep.mubr.msk.f32.mxu1 %vm1615_vm0, %v4381_v35 }
 0x36d   : > { %3902 = vmatmul.mubr.msk.f32.gmra.mxu1 %vm1615_vm0, %v4383_v41 }
 0x36e   : > { %4388 = vtanh.f32 %v1520_v44 }
 0x36f   : > { %4390 = vtanh.f32 %v1525_v36 }
 0x371   : > { %v3848_v45 = vpop.f32.mrf.mxu0 }
 0x372   : > { %v1535_v49 = vadd.f32 %v3848_v45, %v5595_v29 }
 0x373   : > { %v4385_v48 = vpop.eup %4384  ;;  %v1529_v50 = vpop.f32.mrf.mxu0 }
 0x374   : > { %v4387_v51 = vpop.eup %4386  ;;  %v1530_v52 = vadd.f32 %v5595_v29, %v1529_v50  ;;  %3904 = vmatprep.mubr.msk.f32.mxu1 %vm1615_vm0, %v4385_v48 }
 0x375   : > { %3905 = vmatmul.mubr.msk.f32.gmra.mxu1 %vm1615_vm0, %v4387_v51 }
 0x376   : > { %4392 = vtanh.f32 %v1530_v52 }
 0x377   : > { %4394 = vtanh.f32 %v1535_v49 }
 0x379   : > { %v3851_v53 = vpop.f32.mrf.mxu0 }
 0x37a   : > { %v1545_v55 = vadd.f32 %v3851_v53, %v5595_v29 }
 0x37b   : > { %v4389_v54 = vpop.eup %4388  ;;  %v1539_v56 = vpop.f32.mrf.mxu0 }
 0x37c   : > { %v4391_v57 = vpop.eup %4390  ;;  %v1540_v58 = vadd.f32 %v5595_v29, %v1539_v56  ;;  %3907 = vmatprep.mubr.msk.f32.mxu1 %vm1615_vm0, %v4389_v54 }
 0x37d   : > { %3908 = vmatmul.mubr.msk.f32.gmra.mxu1 %vm1615_vm0, %v4391_v57 }
 0x37e   : > { %4396 = vtanh.f32 %v1540_v58 }
 0x37f   : > { %4398 = vtanh.f32 %v1545_v55 }
 0x381   : > { %v3854_v59 = vpop.f32.mrf.mxu0 }
 0x382   : > { %v1555_v61 = vadd.f32 %v3854_v59, %v5595_v29 }
 0x383   : > { %v4393_v60 = vpop.eup %4392  ;;  %v1549_v62 = vpop.f32.mrf.mxu0 }
 0x384   : > { %v4395_v63 = vpop.eup %4394  ;;  %v1550_v1 = vadd.f32 %v5595_v29, %v1549_v62  ;;  %3910 = vmatprep.mubr.msk.f32.mxu1 %vm1615_vm0, %v4393_v60 }
 0x385   : > { %3911 = vmatmul.mubr.msk.f32.gmra.mxu1 %vm1615_vm0, %v4395_v63 }
 0x386   : > { %4400 = vtanh.f32 %v1550_v1 }
 0x387   : > { %4402 = vtanh.f32 %v1555_v61 }
 0x389   : > { %v3857_v2 = vpop.f32.mrf.mxu0 }
 0x38a   : > { %v1565_v4 = vadd.f32 %v3857_v2, %v5595_v29 }
 0x38b   : > { %v4397_v3 = vpop.eup %4396  ;;  %v1559_v5 = vpop.f32.mrf.mxu0 }
 0x38c   : > { %v4399_v6 = vpop.eup %4398  ;;  %v1560_v7 = vadd.f32 %v5595_v29, %v1559_v5  ;;  %3913 = vmatprep.mubr.msk.f32.mxu1 %vm1615_vm0, %v4397_v3  ;;  %v5676_v29 = vld [vmem:[%s6118_s8] ss:$0 sm:$0xff] }
 0x38d   : > { %3914 = vmatmul.mubr.msk.f32.gmra.mxu1 %vm1615_vm0, %v4399_v6 }
 0x38e   : > { %4404 = vtanh.f32 %v1560_v7 }
 0x38f   : > { %4406 = vtanh.f32 %v1565_v4 }
 0x393   : > { %v4401_v8 = vpop.eup %4400 }
 0x394   : > { %v4403_v9 = vpop.eup %4402  ;;  %3916 = vmatprep.mubr.msk.f32.mxu1 %vm1615_vm0, %v4401_v8 }
 0x395   : > { %3917 = vmatmul.mubr.msk.f32.gmra.mxu1 %vm1615_vm0, %v4403_v9 }
 0x39b   : > { %v4405_v42 = vpop.eup %4404 }
 0x39c   : > { %v4407_v10 = vpop.eup %4406  ;;  %3919 = vmatprep.mubr.msk.f32.mxu1 %vm1615_vm0, %v4405_v42 }
 0x39d   : > { %3920 = vmatmul.mubr.msk.f32.gmra.mxu1 %vm1615_vm0, %v4407_v10 }
 0x3e5   : > { %v3876_v11 = vpop.f32.mrf.mxu0 }
 0x3e6   : > { %v1784_v12 = vadd.f32 %v3876_v11, %v5676_v29 }
 0x3e7   : > { %v1778_v13 = vpop.f32.mrf.mxu0 }
 0x3e8   : > { %v1779_v14 = vadd.f32 %v5676_v29, %v1778_v13 }
 0x3ea   : > { %4408 = vtanh.f32 %v1779_v14 }
 0x3eb   : > { %4410 = vtanh.f32 %v1784_v12 }
 0x3ed   : > { %v3879_v15 = vpop.f32.mrf.mxu0 }
 0x3ee   : > { %v1794_v16 = vadd.f32 %v3879_v15, %v5676_v29 }
 0x3ef   : > { %v1788_v17 = vpop.f32.mrf.mxu0 }
 0x3f0   : > { %v1789_v18 = vadd.f32 %v5676_v29, %v1788_v17 }
 0x3f2   : > { %4412 = vtanh.f32 %v1789_v18 }
 0x3f3   : > { %4414 = vtanh.f32 %v1794_v16 }
 0x3f5   : > { %v3882_v22 = vpop.f32.mrf.mxu0 }
 0x3f6   : > { %v1804_v25 = vadd.f32 %v3882_v22, %v5676_v29 }
 0x3f7   : > { %v4409_v24 = vpop.eup %4408  ;;  %v1798_v26 = vpop.f32.mrf.mxu0 }
 0x3f8   : > { %v4411_v28 = vpop.eup %4410  ;;  %v1799_v30 = vadd.f32 %v5676_v29, %v1798_v26  ;;  %3930 = vmatprep.mubr.msk.f32.mxu0 %vm1980_vm1, %v4409_v24 }
 0x3f9   : > { %3931 = vmatmul.mubr.msk.f32.vlgmr.msra.gmra.mxu0 %vm1980_vm1, %v4411_v28  ;;  %v2334_v28 = vld [vmem:[#allocation7] sm:$0xff] }
 0x3fa   : > { %4416 = vtanh.f32 %v1799_v30  ;;  %3992 = vmatprep.subr.mxu1 %v2334_v28 }
 0x3fb   : > { %4418 = vtanh.f32 %v1804_v25  ;;  %3993 = vmatpush3.msra.mxu1 %v2334_v28 }
 0x3fc   : > { %3106 = vmatprep.subr.mxu1 %v4943_v0 }
 0x3fd   : > { %v3885_v31 = vpop.f32.mrf.mxu0 }
 0x3fe   : > { %v1814_v32 = vadd.f32 %v3885_v31, %v5676_v29 }
 0x3ff   : > { %v4413_v43 = vpop.eup %4412  ;;  %v1808_v33 = vpop.f32.mrf.mxu0 }
 0x400   : > { %v4415_v34 = vpop.eup %4414  ;;  %v1809_v35 = vadd.f32 %v5676_v29, %v1808_v33  ;;  %3933 = vmatprep.mubr.msk.f32.mxu0 %vm1980_vm1, %v4413_v43 }
 0x401   : > { %3934 = vmatmul.mubr.msk.f32.gmra.mxu0 %vm1980_vm1, %v4415_v34 }
 0x402   : > { %4420 = vtanh.f32 %v1809_v35 }
 0x403   : > { %4422 = vtanh.f32 %v1814_v32 }
 0x405   : > { %v3888_v36 = vpop.f32.mrf.mxu1 }
 0x406   : > { %v1824_v41 = vadd.f32 %v3888_v36, %v5676_v29 }
 0x407   : > { %v4417_v39 = vpop.eup %4416  ;;  %v1818_v44 = vpop.f32.mrf.mxu1 }
 0x408   : > { %v4419_v45 = vpop.eup %4418  ;;  %v1819_v46 = vadd.f32 %v5676_v29, %v1818_v44  ;;  %3936 = vmatprep.mubr.msk.f32.mxu0 %vm1980_vm1, %v4417_v39 }
 0x409   : > { %3937 = vmatmul.mubr.msk.f32.gmra.mxu0 %vm1980_vm1, %v4419_v45 }
 0x40a   : > { %4424 = vtanh.f32 %v1819_v46 }
 0x40b   : > { %4426 = vtanh.f32 %v1824_v41 }
 0x40d   : > { %v3891_v47 = vpop.f32.mrf.mxu1 }
 0x40e   : > { %v1834_v49 = vadd.f32 %v3891_v47, %v5676_v29 }
 0x40f   : > { %v4421_v48 = vpop.eup %4420  ;;  %v1828_v50 = vpop.f32.mrf.mxu1 }
 0x410   : > { %v4423_v51 = vpop.eup %4422  ;;  %v1829_v52 = vadd.f32 %v5676_v29, %v1828_v50  ;;  %3939 = vmatprep.mubr.msk.f32.mxu0 %vm1980_vm1, %v4421_v48 }
 0x411   : > { %3940 = vmatmul.mubr.msk.f32.gmra.mxu0 %vm1980_vm1, %v4423_v51 }
 0x412   : > { %4428 = vtanh.f32 %v1829_v52 }
 0x413   : > { %4430 = vtanh.f32 %v1834_v49 }
 0x415   : > { %v3894_v53 = vpop.f32.mrf.mxu1 }
 0x416   : > { %v1844_v55 = vadd.f32 %v3894_v53, %v5676_v29 }
 0x417   : > { %v4425_v54 = vpop.eup %4424  ;;  %v1838_v56 = vpop.f32.mrf.mxu1 }
 0x418   : > { %v4427_v57 = vpop.eup %4426  ;;  %v1839_v58 = vadd.f32 %v5676_v29, %v1838_v56  ;;  %3942 = vmatprep.mubr.msk.f32.mxu0 %vm1980_vm1, %v4425_v54 }
 0x419   : > { %3943 = vmatmul.mubr.msk.f32.gmra.mxu0 %vm1980_vm1, %v4427_v57 }
 0x41a   : > { %4432 = vtanh.f32 %v1839_v58 }
 0x41b   : > { %4434 = vtanh.f32 %v1844_v55 }
 0x41d   : > { %v3897_v59 = vpop.f32.mrf.mxu1 }
 0x41e   : > { %v1854_v61 = vadd.f32 %v3897_v59, %v5676_v29 }
 0x41f   : > { %v4429_v60 = vpop.eup %4428  ;;  %v1848_v62 = vpop.f32.mrf.mxu1 }
 0x420   : > { %v4431_v63 = vpop.eup %4430  ;;  %v1849_v1 = vadd.f32 %v5676_v29, %v1848_v62  ;;  %3945 = vmatprep.mubr.msk.f32.mxu0 %vm1980_vm1, %v4429_v60 }
 0x421   : > { %3946 = vmatmul.mubr.msk.f32.gmra.mxu0 %vm1980_vm1, %v4431_v63 }
 0x422   : > { %4436 = vtanh.f32 %v1849_v1 }
 0x423   : > { %4438 = vtanh.f32 %v1854_v61 }
 0x425   : > { %v3900_v2 = vpop.f32.mrf.mxu1 }
 0x426   : > { %v1864_v4 = vadd.f32 %v3900_v2, %v5676_v29 }
 0x427   : > { %v4433_v3 = vpop.eup %4432  ;;  %v1858_v5 = vpop.f32.mrf.mxu1 }
 0x428   : > { %v4435_v6 = vpop.eup %4434  ;;  %v1859_v7 = vadd.f32 %v5676_v29, %v1858_v5  ;;  %3948 = vmatprep.mubr.msk.f32.mxu0 %vm1980_vm1, %v4433_v3 }
 0x429   : > { %3949 = vmatmul.mubr.msk.f32.gmra.mxu0 %vm1980_vm1, %v4435_v6  ;;  %v2733_v6 = vld [vmem:[#allocation8 + $0xf8] sm:$0xff] }
 0x42a   : > { %4440 = vtanh.f32 %v1859_v7  ;;  %v2732_v7 = vld [vmem:[#allocation8 + $0xf0] sm:$0xff]  ;;  %2746 = vmatprep.subr.mxu0 %v2733_v6 }
 0x42b   : > { %4442 = vtanh.f32 %v1864_v4  ;;  %2747 = vmatpush1.msra.mxu0 %v2732_v7 }
 0x42d   : > { %v3903_v8 = vpop.f32.mrf.mxu1 }
 0x42e   : > { %v1874_v42 = vadd.f32 %v3903_v8, %v5676_v29  ;;  %v2731_v8 = vld [vmem:[#allocation8 + $0xe8] sm:$0xff] }
 0x42f   : > { %v4437_v9 = vpop.eup %4436  ;;  %v1868_v10 = vpop.f32.mrf.mxu1  ;;  %2748 = vmatprep.subr.mxu0 %v2731_v8 }
 0x430   : > { %v4439_v11 = vpop.eup %4438  ;;  %v1869_v12 = vadd.f32 %v5676_v29, %v1868_v10  ;;  %3951 = vmatprep.mubr.msk.f32.mxu0 %vm1980_vm1, %v4437_v9  ;;  %v2730_v9 = vld [vmem:[#allocation8 + $0xe0] sm:$0xff]  ;;  %v2728_v10 = vld [vmem:[#allocation8 + $0xd0] sm:$0xff] }
 0x431   : > { %3952 = vmatmul.mubr.msk.f32.gmra.mxu0 %vm1980_vm1, %v4439_v11 }
 0x432   : > { %4444 = vtanh.f32 %v1869_v12  ;;  %2749 = vmatpush1.msra.mxu0 %v2730_v9  ;;  %v2727_v12 = vld [vmem:[#allocation8 + $0xc8] sm:$0xff] }
 0x433   : > { %4446 = vtanh.f32 %v1874_v42  ;;  %v2729_v42 = vld [vmem:[#allocation8 + $0xd8] sm:$0xff] }
 0x434   : > { %2750 = vmatprep.subr.mxu0 %v2729_v42 }
 0x435   : > { %v3906_v13 = vpop.f32.mrf.mxu1  ;;  %2751 = vmatpush1.msra.mxu0 %v2728_v10 }
 0x436   : > { %v1884_v15 = vadd.f32 %v3906_v13, %v5676_v29  ;;  %v2726_v13 = vld [vmem:[#allocation8 + $0xc0] sm:$0xff]  ;;  %2752 = vmatprep.subr.mxu0 %v2727_v12 }
 0x437   : > { %v4441_v14 = vpop.eup %4440  ;;  %v1878_v16 = vpop.f32.mrf.mxu1  ;;  %2753 = vmatpush1.msra.mxu0 %v2726_v13 }
 0x438   : > { %v4443_v17 = vpop.eup %4442  ;;  %v1879_v18 = vadd.f32 %v5676_v29, %v1878_v16  ;;  %3954 = vmatprep.mubr.msk.f32.mxu0 %vm1980_vm1, %v4441_v14 }
 0x439   : > { %3955 = vmatmul.mubr.msk.f32.gmra.mxu0 %vm1980_vm1, %v4443_v17  ;;  %v2725_v17 = vld [vmem:[#allocation8 + $0xb8] sm:$0xff] }
 0x43a   : > { %4448 = vtanh.f32 %v1879_v18  ;;  %2754 = vmatprep.subr.mxu0 %v2725_v17 }
 0x43b   : > { %4450 = vtanh.f32 %v1884_v15 }
 0x43d   : > { %v3909_v20 = vpop.f32.mrf.mxu1 }
 0x43e   : > { %v1894_v23 = vadd.f32 %v3909_v20, %v5676_v29  ;;  %v2724_v20 = vld [vmem:[#allocation8 + $0xb0] sm:$0xff] }
 0x43f   : > { %v4445_v22 = vpop.eup %4444  ;;  %v1888_v24 = vpop.f32.mrf.mxu1  ;;  %2755 = vmatpush1.msra.mxu0 %v2724_v20 }
 0x440   : > { %v4447_v25 = vpop.eup %4446  ;;  %v1889_v26 = vadd.f32 %v5676_v29, %v1888_v24  ;;  %3957 = vmatprep.mubr.msk.f32.mxu0 %vm1980_vm1, %v4445_v22  ;;  %v2722_v22 = vld [vmem:[#allocation8 + $0xa0] sm:$0xff]  ;;  %2756 = vmatprep.subr.mxu0 %v2723_v21  ;;  %v2720_v24 = vld [vmem:[#allocation8 + $0x90] sm:$0xff] }
 0x441   : > { %3958 = vmatmul.mubr.msk.f32.gmra.mxu0 %vm1980_vm1, %v4447_v25 }
 0x442   : > { %4452 = vtanh.f32 %v1889_v26  ;;  %2757 = vmatpush1.msra.mxu0 %v2722_v22  ;;  %v2719_v26 = vld [vmem:[#allocation8 + $0x88] sm:$0xff] }
 0x443   : > { %4454 = vtanh.f32 %v1894_v23  ;;  %v2721_v23 = vld [vmem:[#allocation8 + $0x98] sm:$0xff] }
 0x444   : > { %2758 = vmatprep.subr.mxu0 %v2721_v23 }
 0x445   : > { %v3912_v27 = vpop.f32.mrf.mxu1  ;;  %2759 = vmatpush1.msra.mxu0 %v2720_v24 }
 0x446   : > { %v1904_v31 = vadd.f32 %v3912_v27, %v5676_v29  ;;  %v2718_v27 = vld [vmem:[#allocation8 + $0x80] sm:$0xff]  ;;  %2760 = vmatprep.subr.mxu0 %v2719_v26  ;;  %v2708_v26 = vld [vmem:[#allocation8 + $0x30] sm:$0xff] }
 0x447   : > { %v4449_v30 = vpop.eup %4448  ;;  %v1898_v43 = vpop.f32.mrf.mxu1  ;;  %2761 = vmatpush1.msra.mxu0 %v2718_v27  ;;  %v2707_v27 = vld [vmem:[#allocation8 + $0x28] sm:$0xff] }
 0x448   : > { %v4451_v32 = vpop.eup %4450  ;;  %v1899_v33 = vadd.f32 %v5676_v29, %v1898_v43  ;;  %3960 = vmatprep.mubr.msk.f32.mxu0 %vm1980_vm1, %v4449_v30  ;;  %v2717_v43 = vld [vmem:[#allocation8 + $0x78] sm:$0xff] }
 0x449   : > { %3961 = vmatmul.mubr.msk.f32.gmra.mxu0 %vm1980_vm1, %v4451_v32  ;;  %2762 = vmatprep.subr.mxu0 %v2717_v43  ;;  %v2706_v43 = vld [vmem:[#allocation8 + $0x20] sm:$0xff] }
 0x44a   : > { %4456 = vtanh.f32 %v1899_v33 }
 0x44b   : > { %4458 = vtanh.f32 %v1904_v31 }
 0x44d   : > { %v3915_v34 = vpop.f32.mrf.mxu1 }
 0x44e   : > { %v1914_v36 = vadd.f32 %v3915_v34, %v5676_v29  ;;  %v2716_v34 = vld [vmem:[#allocation8 + $0x70] sm:$0xff] }
 0x44f   : > { %v4453_v35 = vpop.eup %4452  ;;  %v1908_v39 = vpop.f32.mrf.mxu1  ;;  %2763 = vmatpush1.msra.mxu0 %v2716_v34 }
 0x450   : > { %v4455_v41 = vpop.eup %4454  ;;  %v1909_v44 = vadd.f32 %v5676_v29, %v1908_v39  ;;  %3963 = vmatprep.mubr.msk.f32.mxu0 %vm1980_vm1, %v4453_v35  ;;  %v2715_v35 = vld [vmem:[#allocation8 + $0x68] sm:$0xff]  ;;  %v2713_v39 = vld [vmem:[#allocation8 + $0x58] sm:$0xff] }
 0x451   : > { %3964 = vmatmul.mubr.msk.f32.gmra.mxu0 %vm1980_vm1, %v4455_v41  ;;  %2764 = vmatprep.subr.mxu0 %v2715_v35  ;;  %v2712_v41 = vld [vmem:[#allocation8 + $0x50] sm:$0xff]  ;;  %v2705_v35 = vld [vmem:[#allocation8 + $0x18] sm:$0xff] }
 0x452   : > { %4460 = vtanh.f32 %v1909_v44 }
 0x453   : > { %4462 = vtanh.f32 %v1914_v36  ;;  %v2714_v36 = vld [vmem:[#allocation8 + $0x60] sm:$0xff] }
 0x454   : > { %2765 = vmatpush1.msra.mxu0 %v2714_v36  ;;  %v2704_v36 = vld [vmem:[#allocation8 + $0x10] sm:$0xff] }
 0x455   : > { %v3918_v45 = vpop.f32.mrf.mxu1  ;;  %2766 = vmatprep.subr.mxu0 %v2713_v39  ;;  %v2703_v39 = vld [vmem:[#allocation8 + $0x8] sm:$0xff] }
 0x456   : > { %v1924_v47 = vadd.f32 %v3918_v45, %v5676_v29  ;;  %v2711_v45 = vld [vmem:[#allocation8 + $0x48] sm:$0xff]  ;;  %2767 = vmatpush1.msra.mxu0 %v2712_v41 }
 0x457   : > { %v4457_v46 = vpop.eup %4456  ;;  %v1918_v48 = vpop.f32.mrf.mxu1  ;;  %2768 = vmatprep.subr.mxu0 %v2711_v45 }
 0x458   : > { %v4459_v49 = vpop.eup %4458  ;;  %v1919_v50 = vadd.f32 %v5676_v29, %v1918_v48  ;;  %3966 = vmatprep.mubr.msk.f32.mxu0 %vm1980_vm1, %v4457_v46  ;;  %v2710_v46 = vld [vmem:[#allocation8 + $0x40] sm:$0xff] }
 0x459   : > { %3967 = vmatmul.mubr.msk.f32.gmra.mxu0 %vm1980_vm1, %v4459_v49 }
 0x45a   : > { %4464 = vtanh.f32 %v1919_v50  ;;  %2769 = vmatpush1.msra.mxu0 %v2710_v46  ;;  %v2702_v46 = vld [vmem:[#allocation8] sm:$0xff] }
 0x45b   : > { %4466 = vtanh.f32 %v1924_v47 }
 0x45d   : > { %v3921_v51 = vpop.f32.mrf.mxu1 }
 0x45e   : > { %v1934_v53 = vadd.f32 %v3921_v51, %v5676_v29 }
 0x45f   : > { %v4461_v52 = vpop.eup %4460  ;;  %v1928_v54 = vpop.f32.mrf.mxu1 }
 0x460   : > { %v4463_v55 = vpop.eup %4462  ;;  %v1929_v56 = vadd.f32 %v5676_v29, %v1928_v54  ;;  %3969 = vmatprep.mubr.msk.f32.mxu0 %vm1980_vm1, %v4461_v52  ;;  %v5747_v29 = vld [vmem:[%s6120_s10] ss:$0 sm:$0xff] }
 0x461   : > { %3970 = vmatmul.mubr.msk.f32.gmra.mxu0 %vm1980_vm1, %v4463_v55 }
 0x462   : > { %4468 = vtanh.f32 %v1929_v56 }
 0x463   : > { %4470 = vtanh.f32 %v1934_v53 }
 0x467   : > { %v4465_v57 = vpop.eup %4464 }
 0x468   : > { %v4467_v58 = vpop.eup %4466  ;;  %3972 = vmatprep.mubr.msk.f32.mxu0 %vm1980_vm1, %v4465_v57 }
 0x469   : > { %3973 = vmatmul.mubr.msk.f32.gmra.mxu0 %vm1980_vm1, %v4467_v58 }
 0x46f   : > { %v4469_v59 = vpop.eup %4468 }
 0x470   : > { %v4471_v60 = vpop.eup %4470  ;;  %3975 = vmatprep.mubr.msk.f32.mxu0 %vm1980_vm1, %v4469_v59 }
 0x471   : > { %3976 = vmatmul.mubr.msk.f32.gmra.mxu0 %vm1980_vm1, %v4471_v60 }
 0x472   : > { %2810 = vmatprep.mubr.f32.mxu0 %v4943_v0 }
 0x4b9   : > { %v3932_v61 = vpop.f32.mrf.mxu0 }
 0x4ba   : > { %v2149_v62 = vadd.f32 %v3932_v61, %v5747_v29 }
 0x4bb   : > { %v2143_v63 = vpop.f32.mrf.mxu0 }
 0x4bc   : > { %v2144_v1 = vadd.f32 %v5747_v29, %v2143_v63 }
 0x4be   : > { %4472 = vtanh.f32 %v2144_v1 }
 0x4bf   : > { %4474 = vtanh.f32 %v2149_v62 }
 0x4c1   : > { %v3935_v2 = vpop.f32.mrf.mxu0 }
 0x4c2   : > { %v2159_v3 = vadd.f32 %v3935_v2, %v5747_v29 }
 0x4c3   : > { %v2153_v4 = vpop.f32.mrf.mxu0 }
 0x4c4   : > { %v2154_v5 = vadd.f32 %v5747_v29, %v2153_v4 }
 0x4c6   : > { %4476 = vtanh.f32 %v2154_v5 }
 0x4c7   : > { %4478 = vtanh.f32 %v2159_v3 }
 0x4c9   : > { %v3938_v11 = vpop.f32.mrf.mxu0 }
 0x4ca   : > { %v2169_v15 = vadd.f32 %v3938_v11, %v5747_v29 }
 0x4cb   : > { %v4473_v14 = vpop.eup %4472  ;;  %v2163_v16 = vpop.f32.mrf.mxu0 }
 0x4cc   : > { %v4475_v18 = vpop.eup %4474  ;;  %v2164_v19 = vadd.f32 %v5747_v29, %v2163_v16  ;;  %3994 = vmatprep.mubr.msk.f32.mxu1 %vm1615_vm0, %v4473_v14 }
 0x4cd   : > { %3995 = vmatmul.mubr.msk.f32.vlgmr.msra.gmra.mxu1 %vm1615_vm0, %v4475_v18 }
 0x4ce   : > { %4480 = vtanh.f32 %v2164_v19 }
 0x4cf   : > { %4482 = vtanh.f32 %v2169_v15 }
 0x4d1   : > { %v3941_v25 = vpop.f32.mrf.mxu0 }
 0x4d2   : > { %v2179_v30 = vadd.f32 %v3941_v25, %v5747_v29  ;;  %v2709_v25 = vld [vmem:[#allocation8 + $0x38] sm:$0xff] }
 0x4d3   : > { %v4477_v28 = vpop.eup %4476  ;;  %v2173_v31 = vpop.f32.mrf.mxu0  ;;  %2770 = vmatprep.subr.mxu0 %v2709_v25 }
 0x4d4   : > { %v4479_v32 = vpop.eup %4478  ;;  %v2174_v33 = vadd.f32 %v5747_v29, %v2173_v31  ;;  %3997 = vmatprep.mubr.msk.f32.mxu1 %vm1615_vm0, %v4477_v28  ;;  %2771 = vmatpush1.msra.mxu0 %v2708_v26  ;;  %v3077_v26 = vld [vmem:[#allocation10 + $0x50] sm:$0xff] }
 0x4d5   : > { %3998 = vmatmul.mubr.msk.f32.gmra.mxu1 %vm1615_vm0, %v4479_v32  ;;  %2772 = vmatprep.subr.mxu0 %v2707_v27 }
 0x4d6   : > { %4484 = vtanh.f32 %v2174_v33  ;;  %2773 = vmatpush1.msra.mxu0 %v2706_v43 }
 0x4d7   : > { %4486 = vtanh.f32 %v2179_v30  ;;  %2774 = vmatprep.subr.mxu0 %v2705_v35 }
 0x4d8   : > { %2775 = vmatpush1.msra.mxu0 %v2704_v36  ;;  %v3073_v36 = vld [vmem:[#allocation10 + $0x30] sm:$0xff] }
 0x4d9   : > { %v3944_v44 = vpop.f32.mrf.mxu0  ;;  %2776 = vmatprep.subr.mxu0 %v2703_v39 }
 0x4da   : > { %v2189_v48 = vadd.f32 %v3944_v44, %v5747_v29  ;;  %2777 = vmatpush1.msra.mxu0 %v2702_v46 }
 0x4db   : > { %v4481_v47 = vpop.eup %4480  ;;  %v2183_v49 = vpop.f32.mrf.mxu0 }
 0x4dc   : > { %v4483_v50 = vpop.eup %4482  ;;  %v2184_v51 = vadd.f32 %v5747_v29, %v2183_v49  ;;  %4000 = vmatprep.mubr.msk.f32.mxu1 %vm1615_vm0, %v4481_v47 }
 0x4dd   : > { %4001 = vmatmul.mubr.msk.f32.gmra.mxu1 %vm1615_vm0, %v4483_v50 }
 0x4de   : > { %4488 = vtanh.f32 %v2184_v51 }
 0x4df   : > { %4490 = vtanh.f32 %v2189_v48 }
 0x4e1   : > { %v3947_v52 = vpop.f32.mrf.mxu0 }
 0x4e2   : > { %v2199_v54 = vadd.f32 %v3947_v52, %v5747_v29 }
 0x4e3   : > { %v4485_v53 = vpop.eup %4484  ;;  %v2193_v55 = vpop.f32.mrf.mxu0 }
 0x4e4   : > { %v4487_v56 = vpop.eup %4486  ;;  %v2194_v57 = vadd.f32 %v5747_v29, %v2193_v55  ;;  %4003 = vmatprep.mubr.msk.f32.mxu1 %vm1615_vm0, %v4485_v53 }
 0x4e5   : > { %4004 = vmatmul.mubr.msk.f32.gmra.mxu1 %vm1615_vm0, %v4487_v56 }
 0x4e6   : > { %4492 = vtanh.f32 %v2194_v57 }
 0x4e7   : > { %4494 = vtanh.f32 %v2199_v54 }
 0x4e9   : > { %v3950_v58 = vpop.f32.mrf.mxu0 }
 0x4ea   : > { %v2209_v60 = vadd.f32 %v3950_v58, %v5747_v29 }
 0x4eb   : > { %v4489_v59 = vpop.eup %4488  ;;  %v2203_v61 = vpop.f32.mrf.mxu0 }
 0x4ec   : > { %v4491_v62 = vpop.eup %4490  ;;  %v2204_v63 = vadd.f32 %v5747_v29, %v2203_v61  ;;  %4006 = vmatprep.mubr.msk.f32.mxu1 %vm1615_vm0, %v4489_v59 }
 0x4ed   : > { %4007 = vmatmul.mubr.msk.f32.gmra.mxu1 %vm1615_vm0, %v4491_v62 }
 0x4ee   : > { %4496 = vtanh.f32 %v2204_v63 }
 0x4ef   : > { %4498 = vtanh.f32 %v2209_v60 }
 0x4f1   : > { %v3953_v1 = vpop.f32.mrf.mxu0 }
 0x4f2   : > { %v2219_v3 = vadd.f32 %v3953_v1, %v5747_v29 }
 0x4f3   : > { %v4493_v2 = vpop.eup %4492  ;;  %v2213_v4 = vpop.f32.mrf.mxu0 }
 0x4f4   : > { %v4495_v5 = vpop.eup %4494  ;;  %v2214_v6 = vadd.f32 %v5747_v29, %v2213_v4  ;;  %4009 = vmatprep.mubr.msk.f32.mxu1 %vm1615_vm0, %v4493_v2 }
 0x4f5   : > { %4010 = vmatmul.mubr.msk.f32.gmra.mxu1 %vm1615_vm0, %v4495_v5 }
 0x4f6   : > { %4500 = vtanh.f32 %v2214_v6 }
 0x4f7   : > { %4502 = vtanh.f32 %v2219_v3 }
 0x4f9   : > { %v3956_v7 = vpop.f32.mrf.mxu0 }
 0x4fa   : > { %v2229_v9 = vadd.f32 %v3956_v7, %v5747_v29 }
 0x4fb   : > { %v4497_v8 = vpop.eup %4496  ;;  %v2223_v42 = vpop.f32.mrf.mxu0 }
 0x4fc   : > { %v4499_v10 = vpop.eup %4498  ;;  %v2224_v11 = vadd.f32 %v5747_v29, %v2223_v42  ;;  %4012 = vmatprep.mubr.msk.f32.mxu1 %vm1615_vm0, %v4497_v8 }
 0x4fd   : > { %4013 = vmatmul.mubr.msk.f32.gmra.mxu1 %vm1615_vm0, %v4499_v10 }
 0x4fe   : > { %4504 = vtanh.f32 %v2224_v11 }
 0x4ff   : > { %4506 = vtanh.f32 %v2229_v9 }
 0x501   : > { %v3959_v12 = vpop.f32.mrf.mxu0 }
 0x502   : > { %v2239_v14 = vadd.f32 %v3959_v12, %v5747_v29 }
 0x503   : > { %v4501_v13 = vpop.eup %4500  ;;  %v2233_v15 = vpop.f32.mrf.mxu0 }
 0x504   : > { %v4503_v16 = vpop.eup %4502  ;;  %v2234_v17 = vadd.f32 %v5747_v29, %v2233_v15  ;;  %4015 = vmatprep.mubr.msk.f32.mxu1 %vm1615_vm0, %v4501_v13  ;;  %v3082_v15 = vld [vmem:[#allocation10 + $0x78] sm:$0xff] }
 0x505   : > { %4016 = vmatmul.mubr.msk.f32.gmra.mxu1 %vm1615_vm0, %v4503_v16  ;;  %v3081_v16 = vld [vmem:[#allocation10 + $0x70] sm:$0xff] }
 0x506   : > { %4508 = vtanh.f32 %v2234_v17  ;;  %3107 = vmatpush1.msra.mxu1 %v3082_v15 }
 0x507   : > { %4510 = vtanh.f32 %v2239_v14  ;;  %3108 = vmatprep.subr.mxu1 %v4943_v0 }
 0x508   : > { %3109 = vmatpush1.msra.mxu1 %v3081_v16 }
 0x509   : > { %v3962_v18 = vpop.f32.mrf.mxu0  ;;  %3110 = vmatprep.subr.mxu1 %v4943_v0 }
 0x50a   : > { %v2249_v20 = vadd.f32 %v3962_v18, %v5747_v29  ;;  %v3080_v18 = vld [vmem:[#allocation10 + $0x68] sm:$0xff] }
 0x50b   : > { %v4505_v19 = vpop.eup %4504  ;;  %v2243_v21 = vpop.f32.mrf.mxu0  ;;  %3111 = vmatpush1.msra.mxu1 %v3080_v18 }
 0x50c   : > { %v4507_v22 = vpop.eup %4506  ;;  %v2244_v23 = vadd.f32 %v5747_v29, %v2243_v21  ;;  %4018 = vmatprep.mubr.msk.f32.mxu1 %vm1615_vm0, %v4505_v19  ;;  %3112 = vmatprep.subr.mxu1 %v4943_v0 }
 0x50d   : > { %4019 = vmatmul.mubr.msk.f32.gmra.mxu1 %vm1615_vm0, %v4507_v22  ;;  %v3079_v22 = vld [vmem:[#allocation10 + $0x60] sm:$0xff] }
 0x50e   : > { %4512 = vtanh.f32 %v2244_v23  ;;  %3113 = vmatpush1.msra.mxu1 %v3079_v22 }
 0x50f   : > { %4514 = vtanh.f32 %v2249_v20  ;;  %3114 = vmatprep.subr.mxu1 %v4943_v0 }
 0x511   : > { %v3965_v24 = vpop.f32.mrf.mxu0 }
 0x512   : > { %v2259_v30 = vadd.f32 %v3965_v24, %v5747_v29  ;;  %v3078_v24 = vld [vmem:[#allocation10 + $0x58] sm:$0xff] }
 0x513   : > { %v4509_v28 = vpop.eup %4508  ;;  %v2253_v31 = vpop.f32.mrf.mxu0  ;;  %3115 = vmatpush1.msra.mxu1 %v3078_v24 }
 0x514   : > { %v4511_v32 = vpop.eup %4510  ;;  %v2254_v33 = vadd.f32 %v5747_v29, %v2253_v31  ;;  %4021 = vmatprep.mubr.msk.f32.mxu1 %vm1615_vm0, %v4509_v28  ;;  %3116 = vmatprep.subr.mxu1 %v4943_v0  ;;  %v3076_v28 = vld [vmem:[#allocation10 + $0x48] sm:$0xff] }
 0x515   : > { %4022 = vmatmul.mubr.msk.f32.gmra.mxu1 %vm1615_vm0, %v4511_v32  ;;  %v3075_v32 = vld [vmem:[#allocation10 + $0x40] sm:$0xff] }
 0x516   : > { %4516 = vtanh.f32 %v2254_v33  ;;  %3117 = vmatpush1.msra.mxu1 %v3077_v26 }
 0x517   : > { %4518 = vtanh.f32 %v2259_v30  ;;  %3118 = vmatprep.subr.mxu1 %v4943_v0 }
 0x518   : > { %3119 = vmatpush1.msra.mxu1 %v3076_v28 }
 0x519   : > { %v3968_v34 = vpop.f32.mrf.mxu0  ;;  %3120 = vmatprep.subr.mxu1 %v4943_v0 }
 0x51a   : > { %v2269_v44 = vadd.f32 %v3968_v34, %v5747_v29  ;;  %v3074_v34 = vld [vmem:[#allocation10 + $0x38] sm:$0xff]  ;;  %3121 = vmatpush1.msra.mxu1 %v3075_v32  ;;  %v3091_v32 = vld [vmem:[#allocation10 + $0xc0] sm:$0xff] }
 0x51b   : > { %v4513_v41 = vpop.eup %4512  ;;  %v2263_v45 = vpop.f32.mrf.mxu0  ;;  %3122 = vmatprep.subr.mxu1 %v4943_v0 }
 0x51c   : > { %v4515_v47 = vpop.eup %4514  ;;  %v2264_v48 = vadd.f32 %v5747_v29, %v2263_v45  ;;  %4024 = vmatprep.mubr.msk.f32.mxu1 %vm1615_vm0, %v4513_v41  ;;  %3123 = vmatpush1.msra.mxu1 %v3074_v34  ;;  %v3072_v41 = vld [vmem:[#allocation10 + $0x28] sm:$0xff]  ;;  %v3090_v34 = vld [vmem:[#allocation10 + $0xb8] sm:$0xff] }
 0x51d   : > { %4025 = vmatmul.mubr.msk.f32.gmra.mxu1 %vm1615_vm0, %v4515_v47  ;;  %3124 = vmatprep.subr.mxu1 %v4943_v0  ;;  %v3071_v47 = vld [vmem:[#allocation10 + $0x20] sm:$0xff] }
 0x51e   : > { %4520 = vtanh.f32 %v2264_v48  ;;  %3125 = vmatpush1.msra.mxu1 %v3073_v36  ;;  %v3089_v36 = vld [vmem:[#allocation10 + $0xb0] sm:$0xff] }
 0x51f   : > { %4522 = vtanh.f32 %v2269_v44  ;;  %3126 = vmatprep.subr.mxu1 %v4943_v0 }
 0x520   : > { %3127 = vmatpush1.msra.mxu1 %v3072_v41 }
 0x521   : > { %v3971_v49 = vpop.f32.mrf.mxu0  ;;  %3128 = vmatprep.subr.mxu1 %v4943_v0 }
 0x522   : > { %v2279_v51 = vadd.f32 %v3971_v49, %v5747_v29  ;;  %v3070_v49 = vld [vmem:[#allocation10 + $0x18] sm:$0xff]  ;;  %3129 = vmatpush1.msra.mxu1 %v3071_v47  ;;  %v3087_v47 = vld [vmem:[#allocation10 + $0xa0] sm:$0xff] }
 0x523   : > { %v4517_v50 = vpop.eup %4516  ;;  %v2273_v52 = vpop.f32.mrf.mxu0  ;;  %3130 = vmatprep.subr.mxu1 %v4943_v0 }
 0x524   : > { %v4519_v53 = vpop.eup %4518  ;;  %v2274_v54 = vadd.f32 %v5747_v29, %v2273_v52  ;;  %4027 = vmatprep.mubr.msk.f32.mxu1 %vm1615_vm0, %v4517_v50  ;;  %3131 = vmatpush1.msra.mxu1 %v3070_v49  ;;  %v3086_v49 = vld [vmem:[#allocation10 + $0x98] sm:$0xff] }
 0x525   : > { %4028 = vmatmul.mubr.msk.f32.gmra.mxu1 %vm1615_vm0, %v4519_v53  ;;  %3132 = vmatprep.subr.mxu1 %v4943_v0  ;;  %v3068_v53 = vld [vmem:[#allocation10 + $0x8] sm:$0xff] }
 0x526   : > { %4524 = vtanh.f32 %v2274_v54 }
 0x527   : > { %4526 = vtanh.f32 %v2279_v51  ;;  %v3069_v51 = vld [vmem:[#allocation10 + $0x10] sm:$0xff] }
 0x528   : > { %3133 = vmatpush1.msra.mxu1 %v3069_v51  ;;  %v3085_v51 = vld [vmem:[#allocation10 + $0x90] sm:$0xff] }
 0x529   : > { %v3974_v55 = vpop.f32.mrf.mxu0  ;;  %3134 = vmatprep.subr.mxu1 %v4943_v0 }
 0x52a   : > { %v2289_v57 = vadd.f32 %v3974_v55, %v5747_v29  ;;  %3135 = vmatpush1.msra.mxu1 %v3068_v53 }
 0x52b   : > { %v4521_v56 = vpop.eup %4520  ;;  %v2283_v58 = vpop.f32.mrf.mxu0  ;;  %3136 = vmatprep.subr.mxu1 %v4943_v0 }
 0x52c   : > { %v4523_v59 = vpop.eup %4522  ;;  %v2284_v60 = vadd.f32 %v5747_v29, %v2283_v58  ;;  %4030 = vmatprep.mubr.msk.f32.mxu1 %vm1615_vm0, %v4521_v56 }
 0x52d   : > { %4031 = vmatmul.mubr.msk.f32.gmra.mxu1 %vm1615_vm0, %v4523_v59  ;;  %v3098_v59 = vld [vmem:[#allocation10 + $0xf8] sm:$0xff] }
 0x52e   : > { %4528 = vtanh.f32 %v2284_v60 }
 0x52f   : > { %4530 = vtanh.f32 %v2289_v57  ;;  %v3067_v57 = vld [vmem:[#allocation10] sm:$0xff] }
 0x530   : > { %3137 = vmatpush1.msra.mxu1 %v3067_v57  ;;  %v3083_v57 = vld [vmem:[#allocation10 + $0x80] sm:$0xff] }
 0x531   : > { %v3977_v61 = vpop.f32.mrf.mxu0  ;;  %3138 = vmatprep.subr.mxu1 %v4943_v0 }
 0x532   : > { %v2299_v63 = vadd.f32 %v3977_v61, %v5747_v29  ;;  %v3097_v61 = vld [vmem:[#allocation10 + $0xf0] sm:$0xff]  ;;  %3139 = vmatpush2.msra.mxu1 %v3098_v59 }
 0x533   : > { %v4525_v62 = vpop.eup %4524  ;;  %v2293_v1 = vpop.f32.mrf.mxu0  ;;  %3140 = vmatprep.subr.mxu1 %v4943_v0 }
 0x534   : > { %v4527_v2 = vpop.eup %4526  ;;  %v2294_v3 = vadd.f32 %v5747_v29, %v2293_v1  ;;  %4033 = vmatprep.mubr.msk.f32.mxu1 %vm1615_vm0, %v4525_v62  ;;  %v5816_v29 = vld [vmem:[%s6122_s12] ss:$0 sm:$0xff]  ;;  %3141 = vmatpush2.msra.mxu1 %v3097_v61 }
 0x535   : > { %4034 = vmatmul.mubr.msk.f32.gmra.mxu1 %vm1615_vm0, %v4527_v2  ;;  %3142 = vmatprep.subr.mxu1 %v4943_v0 }
 0x536   : > { %4532 = vtanh.f32 %v2294_v3 }
 0x537   : > { %4534 = vtanh.f32 %v2299_v63  ;;  %v3096_v63 = vld [vmem:[#allocation10 + $0xe8] sm:$0xff] }
 0x538   : > { %3143 = vmatpush2.msra.mxu1 %v3096_v63 }
 0x539   : > { %3144 = vmatprep.subr.mxu1 %v4943_v0 }
 0x53b   : > { %v4529_v4 = vpop.eup %4528 }
 0x53c   : > { %v4531_v5 = vpop.eup %4530  ;;  %4036 = vmatprep.mubr.msk.f32.mxu1 %vm1615_vm0, %v4529_v4  ;;  %v3095_v4 = vld [vmem:[#allocation10 + $0xe0] sm:$0xff] }
 0x53d   : > { %4037 = vmatmul.mubr.msk.f32.gmra.mxu1 %vm1615_vm0, %v4531_v5 }
 0x53e   : > { %3145 = vmatpush2.msra.mxu1 %v3095_v4 }
 0x53f   : > { %3146 = vmatprep.subr.mxu1 %v4943_v0 }
 0x543   : > { %v4533_v6 = vpop.eup %4532 }
 0x544   : > { %v4535_v7 = vpop.eup %4534  ;;  %4039 = vmatprep.mubr.msk.f32.mxu1 %vm1615_vm0, %v4533_v6  ;;  %v3094_v6 = vld [vmem:[#allocation10 + $0xd8] sm:$0xff] }
 0x545   : > { %4040 = vmatmul.mubr.msk.f32.gmra.mxu1 %vm1615_vm0, %v4535_v7 }
 0x546   : > { %3147 = vmatpush2.msra.mxu1 %v3094_v6 }
 0x547   : > { %3148 = vmatprep.subr.mxu1 %v4943_v0 }
 0x58d   : > { %v3996_v8 = vpop.f32.mrf.mxu1 }
 0x58e   : > { %v2517_v10 = vadd.f32 %v3996_v8, %v5816_v29  ;;  %v3093_v8 = vld [vmem:[#allocation10 + $0xd0] sm:$0xff] }
 0x58f   : > { %v2511_v9 = vpop.f32.mrf.mxu1  ;;  %3149 = vmatpush2.msra.mxu1 %v3093_v8 }
 0x590   : > { %v2512_v42 = vadd.f32 %v5816_v29, %v2511_v9  ;;  %3150 = vmatprep.subr.mxu1 %v4943_v0 }
 0x592   : > { %4536 = vtanh.f32 %v2512_v42 }
 0x593   : > { %4538 = vtanh.f32 %v2517_v10 }
 0x595   : > { %v3999_v11 = vpop.f32.mrf.mxu1 }
 0x596   : > { %v2527_v14 = vadd.f32 %v3999_v11, %v5816_v29 }
 0x597   : > { %v2521_v12 = vpop.f32.mrf.mxu1 }
 0x598   : > { %v2522_v13 = vadd.f32 %v5816_v29, %v2521_v12 }
 0x59a   : > { %4540 = vtanh.f32 %v2522_v13 }
 0x59b   : > { %4542 = vtanh.f32 %v2527_v14 }
 0x59d   : > { %v4002_v17 = vpop.f32.mrf.mxu1 }
 0x59e   : > { %v2537_v23 = vadd.f32 %v4002_v17, %v5816_v29 }
 0x59f   : > { %v4537_v19 = vpop.eup %4536  ;;  %v2531_v20 = vpop.f32.mrf.mxu1 }
 0x5a0   : > { %v2532_v21 = vadd.f32 %v5816_v29, %v2531_v20  ;;  %2811 = vmatmul.mubr.f32.vlgmr.msra.gmra.mxu0 %v4537_v19  ;;  %v4539_v25 = vpop.eup %4538 }
 0x5a1   : > { %2816 = vmatprep.mubr.f32.mxu0 %v4943_v0 }
 0x5a2   : > { %4544 = vtanh.f32 %v2532_v21 }
 0x5a3   : > { %4546 = vtanh.f32 %v2537_v23 }
 0x5a4   : > { %2817 = vmatmul.mubr.f32.gmra.mxu0 %v4539_v25 }
 0x5a5   : > { %v4005_v27 = vpop.f32.mrf.mxu1  ;;  %2822 = vmatprep.mubr.f32.mxu0 %v4943_v0 }
 0x5a6   : > { %v2547_v33 = vadd.f32 %v4005_v27, %v5816_v29 }
 0x5a7   : > { %v4541_v30 = vpop.eup %4540  ;;  %v2541_v31 = vpop.f32.mrf.mxu1 }
 0x5a8   : > { %v2542_v43 = vadd.f32 %v5816_v29, %v2541_v31  ;;  %2823 = vmatmul.mubr.f32.gmra.mxu0 %v4541_v30  ;;  %v4543_v35 = vpop.eup %4542  ;;  %v3092_v31 = vld [vmem:[#allocation10 + $0xc8] sm:$0xff] }
 0x5a9   : > { %2828 = vmatprep.mubr.f32.mxu0 %v4943_v0  ;;  %3151 = vmatpush2.msra.mxu1 %v3092_v31 }
 0x5aa   : > { %4548 = vtanh.f32 %v2542_v43  ;;  %3152 = vmatprep.subr.mxu1 %v4943_v0 }
 0x5ab   : > { %4550 = vtanh.f32 %v2547_v33  ;;  %3153 = vmatpush2.msra.mxu1 %v3091_v32 }
 0x5ac   : > { %2829 = vmatmul.mubr.f32.gmra.mxu0 %v4543_v35  ;;  %3154 = vmatprep.subr.mxu1 %v4943_v0 }
 0x5ad   : > { %v4008_v39 = vpop.f32.mrf.mxu1  ;;  %2834 = vmatprep.mubr.f32.mxu0 %v4943_v0  ;;  %3155 = vmatpush2.msra.mxu1 %v3090_v34 }
 0x5ae   : > { %v2557_v48 = vadd.f32 %v4008_v39, %v5816_v29  ;;  %3156 = vmatprep.subr.mxu1 %v4943_v0 }
 0x5af   : > { %v4545_v44 = vpop.eup %4544  ;;  %v2551_v45 = vpop.f32.mrf.mxu1  ;;  %3157 = vmatpush2.msra.mxu1 %v3089_v36 }
 0x5b0   : > { %v2552_v46 = vadd.f32 %v5816_v29, %v2551_v45  ;;  %2835 = vmatmul.mubr.f32.gmra.mxu0 %v4545_v44  ;;  %v4547_v50 = vpop.eup %4546  ;;  %3158 = vmatprep.subr.mxu1 %v4943_v0  ;;  %v3088_v45 = vld [vmem:[#allocation10 + $0xa8] sm:$0xff] }
 0x5b1   : > { %2840 = vmatprep.mubr.f32.mxu0 %v4943_v0  ;;  %3159 = vmatpush2.msra.mxu1 %v3088_v45 }
 0x5b2   : > { %4552 = vtanh.f32 %v2552_v46  ;;  %3160 = vmatprep.subr.mxu1 %v4943_v0 }
 0x5b3   : > { %4554 = vtanh.f32 %v2557_v48  ;;  %3161 = vmatpush2.msra.mxu1 %v3087_v47 }
 0x5b4   : > { %2841 = vmatmul.mubr.f32.gmra.mxu0 %v4547_v50  ;;  %3162 = vmatprep.subr.mxu1 %v4943_v0 }
 0x5b5   : > { %v4011_v52 = vpop.f32.mrf.mxu1  ;;  %2846 = vmatprep.mubr.f32.mxu0 %v4943_v0  ;;  %3163 = vmatpush2.msra.mxu1 %v3086_v49 }
 0x5b6   : > { %v2567_v58 = vadd.f32 %v4011_v52, %v5816_v29  ;;  %3164 = vmatprep.subr.mxu1 %v4943_v0 }
 0x5b7   : > { %v4549_v54 = vpop.eup %4548  ;;  %v2561_v55 = vpop.f32.mrf.mxu1  ;;  %3165 = vmatpush2.msra.mxu1 %v3085_v51 }
 0x5b8   : > { %v2562_v56 = vadd.f32 %v5816_v29, %v2561_v55  ;;  %2847 = vmatmul.mubr.f32.gmra.mxu0 %v4549_v54  ;;  %v4551_v60 = vpop.eup %4550  ;;  %3166 = vmatprep.subr.mxu1 %v4943_v0  ;;  %v3084_v55 = vld [vmem:[#allocation10 + $0x88] sm:$0xff] }
 0x5b9   : > { %2852 = vmatprep.mubr.f32.mxu0 %v4943_v0  ;;  %3167 = vmatpush2.msra.mxu1 %v3084_v55 }
 0x5ba   : > { %4556 = vtanh.f32 %v2562_v56  ;;  %3168 = vmatprep.subr.mxu1 %v4943_v0 }
 0x5bb   : > { %4558 = vtanh.f32 %v2567_v58  ;;  %3169 = vmatpush2.msra.mxu1 %v3083_v57 }
 0x5bc   : > { %2853 = vmatmul.mubr.f32.gmra.mxu0 %v4551_v60 }
 0x5bd   : > { %v4014_v62 = vpop.f32.mrf.mxu1  ;;  %2858 = vmatprep.mubr.f32.mxu0 %v4943_v0 }
 0x5be   : > { %v2577_v5 = vadd.f32 %v4014_v62, %v5816_v29 }
 0x5bf   : > { %v4553_v1 = vpop.eup %4552  ;;  %v2571_v2 = vpop.f32.mrf.mxu1 }
 0x5c0   : > { %v2572_v3 = vadd.f32 %v5816_v29, %v2571_v2  ;;  %2859 = vmatmul.mubr.f32.gmra.mxu0 %v4553_v1  ;;  %v4555_v7 = vpop.eup %4554 }
 0x5c1   : > { %2864 = vmatprep.mubr.f32.mxu0 %v4943_v0 }
 0x5c2   : > { %4560 = vtanh.f32 %v2572_v3 }
 0x5c3   : > { %4562 = vtanh.f32 %v2577_v5 }
 0x5c4   : > { %2865 = vmatmul.mubr.f32.gmra.mxu0 %v4555_v7 }
 0x5c5   : > { %v4017_v9 = vpop.f32.mrf.mxu1  ;;  %2870 = vmatprep.mubr.f32.mxu0 %v4943_v0 }
 0x5c6   : > { %v2587_v12 = vadd.f32 %v4017_v9, %v5816_v29 }
 0x5c7   : > { %v4557_v42 = vpop.eup %4556  ;;  %v2581_v10 = vpop.f32.mrf.mxu1 }
 0x5c8   : > { %v2582_v11 = vadd.f32 %v5816_v29, %v2581_v10  ;;  %2871 = vmatmul.mubr.f32.gmra.mxu0 %v4557_v42  ;;  %v4559_v13 = vpop.eup %4558 }
 0x5c9   : > { %2876 = vmatprep.mubr.f32.mxu0 %v4943_v0 }
 0x5ca   : > { %4564 = vtanh.f32 %v2582_v11 }
 0x5cb   : > { %4566 = vtanh.f32 %v2587_v12 }
 0x5cc   : > { %2877 = vmatmul.mubr.f32.gmra.mxu0 %v4559_v13 }
 0x5cd   : > { %v4020_v14 = vpop.f32.mrf.mxu1  ;;  %2882 = vmatprep.mubr.f32.mxu0 %v4943_v0 }
 0x5ce   : > { %v2597_v18 = vadd.f32 %v4020_v14, %v5816_v29 }
 0x5cf   : > { %v4561_v15 = vpop.eup %4560  ;;  %v2591_v16 = vpop.f32.mrf.mxu1 }
 0x5d0   : > { %v2592_v17 = vadd.f32 %v5816_v29, %v2591_v16  ;;  %2883 = vmatmul.mubr.f32.gmra.mxu0 %v4561_v15  ;;  %v4563_v19 = vpop.eup %4562 }
 0x5d1   : > { %2888 = vmatprep.mubr.f32.mxu0 %v4943_v0 }
 0x5d2   : > { %4568 = vtanh.f32 %v2592_v17 }
 0x5d3   : > { %4570 = vtanh.f32 %v2597_v18 }
 0x5d4   : > { %2889 = vmatmul.mubr.f32.gmra.mxu0 %v4563_v19 }
 0x5d5   : > { %v4023_v20 = vpop.f32.mrf.mxu1  ;;  %2894 = vmatprep.mubr.f32.mxu0 %v4943_v0 }
 0x5d6   : > { %v2607_v24 = vadd.f32 %v4023_v20, %v5816_v29 }
 0x5d7   : > { %v4565_v21 = vpop.eup %4564  ;;  %v2601_v22 = vpop.f32.mrf.mxu1 }
 0x5d8   : > { %v2602_v23 = vadd.f32 %v5816_v29, %v2601_v22  ;;  %2895 = vmatmul.mubr.f32.gmra.mxu0 %v4565_v21  ;;  %v4567_v25 = vpop.eup %4566 }
 0x5d9   : > { %2900 = vmatprep.mubr.f32.mxu0 %v4943_v0 }
 0x5da   : > { %4572 = vtanh.f32 %v2602_v23 }
 0x5db   : > { %4574 = vtanh.f32 %v2607_v24 }
 0x5dc   : > { %2901 = vmatmul.mubr.f32.gmra.mxu0 %v4567_v25 }
 0x5dd   : > { %v4026_v26 = vpop.f32.mrf.mxu1  ;;  %2906 = vmatprep.mubr.f32.mxu0 %v4943_v0 }
 0x5de   : > { %v2617_v43 = vadd.f32 %v4026_v26, %v5816_v29 }
 0x5df   : > { %v4569_v27 = vpop.eup %4568  ;;  %v2611_v28 = vpop.f32.mrf.mxu1 }
 0x5e0   : > { %v2612_v30 = vadd.f32 %v5816_v29, %v2611_v28  ;;  %2907 = vmatmul.mubr.f32.gmra.mxu0 %v4569_v27  ;;  %v4571_v33 = vpop.eup %4570 }
 0x5e1   : > { %2912 = vmatprep.mubr.f32.mxu0 %v4943_v0 }
 0x5e2   : > { %4576 = vtanh.f32 %v2612_v30 }
 0x5e3   : > { %4578 = vtanh.f32 %v2617_v43 }
 0x5e4   : > { %2913 = vmatmul.mubr.f32.gmra.mxu0 %v4571_v33 }
 0x5e5   : > { %v4029_v35 = vpop.f32.mrf.mxu1  ;;  %2918 = vmatprep.mubr.f32.mxu0 %v4943_v0 }
 0x5e6   : > { %v2627_v46 = vadd.f32 %v4029_v35, %v5816_v29 }
 0x5e7   : > { %v4573_v39 = vpop.eup %4572  ;;  %v2621_v41 = vpop.f32.mrf.mxu1 }
 0x5e8   : > { %v2622_v44 = vadd.f32 %v5816_v29, %v2621_v41  ;;  %2919 = vmatmul.mubr.f32.gmra.mxu0 %v4573_v39  ;;  %v4575_v48 = vpop.eup %4574 }
 0x5e9   : > { %2924 = vmatprep.mubr.f32.mxu0 %v4943_v0 }
 0x5ea   : > { %4580 = vtanh.f32 %v2622_v44 }
 0x5eb   : > { %4582 = vtanh.f32 %v2627_v46 }
 0x5ec   : > { %2925 = vmatmul.mubr.f32.gmra.mxu0 %v4575_v48 }
 0x5ed   : > { %v4032_v50 = vpop.f32.mrf.mxu1  ;;  %2930 = vmatprep.mubr.f32.mxu0 %v4943_v0 }
 0x5ee   : > { %v2637_v56 = vadd.f32 %v4032_v50, %v5816_v29 }
 0x5ef   : > { %v4577_v52 = vpop.eup %4576  ;;  %v2631_v53 = vpop.f32.mrf.mxu1 }
 0x5f0   : > { %v2632_v54 = vadd.f32 %v5816_v29, %v2631_v53  ;;  %2931 = vmatmul.mubr.f32.gmra.mxu0 %v4577_v52  ;;  %v4579_v58 = vpop.eup %4578 }
 0x5f1   : > { %2936 = vmatprep.mubr.f32.mxu0 %v4943_v0 }
 0x5f2   : > { %4584 = vtanh.f32 %v2632_v54 }
 0x5f3   : > { %4586 = vtanh.f32 %v2637_v56 }
 0x5f4   : > { %2937 = vmatmul.mubr.f32.gmra.mxu0 %v4579_v58 }
 0x5f5   : > { %v4035_v59 = vpop.f32.mrf.mxu1  ;;  %2942 = vmatprep.mubr.f32.mxu0 %v4943_v0 }
 0x5f6   : > { %v2647_v63 = vadd.f32 %v4035_v59, %v5816_v29 }
 0x5f7   : > { %v4581_v60 = vpop.eup %4580  ;;  %v2641_v61 = vpop.f32.mrf.mxu1 }
 0x5f8   : > { %v2642_v62 = vadd.f32 %v5816_v29, %v2641_v61  ;;  %2943 = vmatmul.mubr.f32.gmra.mxu0 %v4581_v60  ;;  %v4583_v1 = vpop.eup %4582 }
 0x5f9   : > { %2948 = vmatprep.mubr.f32.mxu0 %v4943_v0 }
 0x5fa   : > { %4588 = vtanh.f32 %v2642_v62 }
 0x5fb   : > { %4590 = vtanh.f32 %v2647_v63 }
 0x5fc   : > { %2949 = vmatmul.mubr.f32.gmra.mxu0 %v4583_v1 }
 0x5fd   : > { %v4038_v2 = vpop.f32.mrf.mxu1  ;;  %2954 = vmatprep.mubr.f32.mxu0 %v4943_v0 }
 0x5fe   : > { %v2657_v6 = vadd.f32 %v4038_v2, %v5816_v29 }
 0x5ff   : > { %v4585_v3 = vpop.eup %4584  ;;  %v2651_v4 = vpop.f32.mrf.mxu1 }
 0x600   : > { %v2652_v5 = vadd.f32 %v5816_v29, %v2651_v4  ;;  %2955 = vmatmul.mubr.f32.gmra.mxu0 %v4585_v3  ;;  %v4587_v7 = vpop.eup %4586 }
 0x601   : > { %2960 = vmatprep.mubr.f32.mxu0 %v4943_v0 }
 0x602   : > { %4592 = vtanh.f32 %v2652_v5 }
 0x603   : > { %4594 = vtanh.f32 %v2657_v6 }
 0x604   : > { %2961 = vmatmul.mubr.f32.gmra.mxu0 %v4587_v7 }
 0x605   : > { %v4041_v8 = vpop.f32.mrf.mxu1  ;;  %2966 = vmatprep.mubr.f32.mxu0 %v4943_v0 }
 0x606   : > { %v2667_v11 = vadd.f32 %v4041_v8, %v5816_v29 }
 0x607   : > { %v4589_v9 = vpop.eup %4588  ;;  %v2661_v42 = vpop.f32.mrf.mxu1 }
 0x608   : > { %v2662_v10 = vadd.f32 %v5816_v29, %v2661_v42  ;;  %2967 = vmatmul.mubr.f32.gmra.mxu0 %v4589_v9  ;;  %v4591_v12 = vpop.eup %4590  ;;  %v2734_v29 = vld [vmem:[%s6179_s21] sm:$0x3] }
 0x609   : > { %2972 = vmatprep.mubr.f32.mxu0 %v4943_v0  ;;  %v5917_v17 = vrot.slane %v2734_v29, %v695_v38  ;;  %v5921_v18 = vrot.slane %v2734_v29, %v699_v40 }
 0x60a   : > { %4596 = vtanh.f32 %v2662_v10 }
 0x60b   : > { %4598 = vtanh.f32 %v2667_v11 }
 0x60c   : > { %2973 = vmatmul.mubr.f32.gmra.mxu0 %v4591_v12 }
 0x60d   : > { %2978 = vmatprep.mubr.f32.mxu0 %v4943_v0 }
 0x60f   : > { %v4593_v13 = vpop.eup %4592 }
 0x610   : > { %2979 = vmatmul.mubr.f32.gmra.mxu0 %v4593_v13  ;;  %v4595_v14 = vpop.eup %4594 }
 0x611   : > { %2984 = vmatprep.mubr.f32.mxu0 %v4943_v0 }
 0x614   : > { %2985 = vmatmul.mubr.f32.gmra.mxu0 %v4595_v14 }
 0x615   : > { %2990 = vmatprep.mubr.f32.mxu0 %v4943_v0 }
 0x617   : > { %v4597_v15 = vpop.eup %4596 }
 0x618   : > { %2991 = vmatmul.mubr.f32.gmra.mxu0 %v4597_v15  ;;  %v4599_v16 = vpop.eup %4598 }
 0x619   : > { %2996 = vmatprep.mubr.f32.mxu0 %v4943_v0 }
 0x61c   : > { %2997 = vmatmul.mubr.f32.gmra.mxu0 %v4599_v16 }
 0x660   : > { %v2812_v19 = vpop.f32.mrf.mxu0 }
 0x661   : > { %v2813_v20 = vadd.f32 %v2812_v19, %v5917_v17 }
 0x662   : > { %v2814_v21 = vpop.f32.mrf.mxu0 }
 0x663   : > { %v2815_v0 = vadd.f32 %v2814_v21, %v5921_v18 }
 0x664   : > { %v2818_v22 = vpop.f32.mrf.mxu0 }
 0x665   : > { %4600 = vtanh.f32 %v2815_v0  ;;  %v2819_v23 = vadd.f32 %v2818_v22, %v5917_v17 }
 0x666   : > { %4602 = vtanh.f32 %v2813_v20  ;;  %v2820_v24 = vpop.f32.mrf.mxu0 }
 0x667   : > { %v2821_v25 = vadd.f32 %v2820_v24, %v5921_v18 }
 0x668   : > { %v2824_v38 = vpop.f32.mrf.mxu0 }
 0x669   : > { %4604 = vtanh.f32 %v2821_v25  ;;  %v2825_v37 = vadd.f32 %v2824_v38, %v5917_v17 }
 0x66a   : > { %4606 = vtanh.f32 %v2819_v23  ;;  %v2826_v40 = vpop.f32.mrf.mxu0 }
 0x66b   : > { %v2827_v26 = vadd.f32 %v2826_v40, %v5921_v18 }
 0x66c   : > { %v2830_v27 = vpop.f32.mrf.mxu0 }
 0x66d   : > { %4608 = vtanh.f32 %v2827_v26  ;;  %v2831_v28 = vadd.f32 %v2830_v27, %v5917_v17 }
 0x66e   : > { %4610 = vtanh.f32 %v2825_v37  ;;  %v2832_v30 = vpop.f32.mrf.mxu0 }
 0x66f   : > { %v2833_v31 = vadd.f32 %v2832_v30, %v5921_v18 }
 0x670   : > { %v2836_v43 = vpop.f32.mrf.mxu0 }
 0x671   : > { %4612 = vtanh.f32 %v2833_v31  ;;  %v2837_v33 = vadd.f32 %v2836_v43, %v5917_v17 }
 0x672   : > { %v4601_v32 = vpop.eup %4600  ;;  %4614 = vtanh.f32 %v2831_v28  ;;  %v2838_v34 = vpop.f32.mrf.mxu0 }
 0x673   : > { %v4603_v35 = vpop.eup %4602  ;;  %v2839_v36 = vadd.f32 %v2838_v34, %v5921_v18  ;;  %3170 = vmatprep.mubr.f32.mxu1 %v4601_v32 }
 0x674   : > { %v2842_v39 = vpop.f32.mrf.mxu0  ;;  %3171 = vmatmul.mubr.f32.vlgmr.msra.gmra.mxu1 %v4603_v35 }
 0x675   : > { %4616 = vtanh.f32 %v2839_v36  ;;  %v2843_v44 = vadd.f32 %v2842_v39, %v5917_v17 }
 0x676   : > { %v4605_v41 = vpop.eup %4604  ;;  %4618 = vtanh.f32 %v2837_v33  ;;  %v2844_v45 = vpop.f32.mrf.mxu0 }
 0x677   : > { %v4607_v46 = vpop.eup %4606  ;;  %v2845_v47 = vadd.f32 %v2844_v45, %v5921_v18  ;;  %3175 = vmatprep.mubr.f32.mxu1 %v4605_v41 }
 0x678   : > { %v2848_v48 = vpop.f32.mrf.mxu0  ;;  %3176 = vmatmul.mubr.f32.gmra.mxu1 %v4607_v46 }
 0x679   : > { %4620 = vtanh.f32 %v2845_v47  ;;  %v2849_v50 = vadd.f32 %v2848_v48, %v5917_v17 }
 0x67a   : > { %v4609_v49 = vpop.eup %4608  ;;  %4622 = vtanh.f32 %v2843_v44  ;;  %v2850_v51 = vpop.f32.mrf.mxu0 }
 0x67b   : > { %v4611_v52 = vpop.eup %4610  ;;  %v2851_v53 = vadd.f32 %v2850_v51, %v5921_v18  ;;  %3180 = vmatprep.mubr.f32.mxu1 %v4609_v49 }
 0x67c   : > { %v2854_v54 = vpop.f32.mrf.mxu0  ;;  %3181 = vmatmul.mubr.f32.gmra.mxu1 %v4611_v52 }
 0x67d   : > { %4624 = vtanh.f32 %v2851_v53  ;;  %v2855_v56 = vadd.f32 %v2854_v54, %v5917_v17 }
 0x67e   : > { %v4613_v55 = vpop.eup %4612  ;;  %4626 = vtanh.f32 %v2849_v50  ;;  %v2856_v57 = vpop.f32.mrf.mxu0 }
 0x67f   : > { %v4615_v58 = vpop.eup %4614  ;;  %v2857_v59 = vadd.f32 %v2856_v57, %v5921_v18  ;;  %3185 = vmatprep.mubr.f32.mxu1 %v4613_v55 }
 0x680   : > { %v2860_v60 = vpop.f32.mrf.mxu0  ;;  %3186 = vmatmul.mubr.f32.gmra.mxu1 %v4615_v58 }
 0x681   : > { %4628 = vtanh.f32 %v2857_v59  ;;  %v2861_v62 = vadd.f32 %v2860_v60, %v5917_v17 }
 0x682   : > { %v4617_v61 = vpop.eup %4616  ;;  %4630 = vtanh.f32 %v2855_v56  ;;  %v2862_v63 = vpop.f32.mrf.mxu0 }
 0x683   : > { %v4619_v1 = vpop.eup %4618  ;;  %v2863_v2 = vadd.f32 %v2862_v63, %v5921_v18  ;;  %3190 = vmatprep.mubr.f32.mxu1 %v4617_v61 }
 0x684   : > { %v2866_v3 = vpop.f32.mrf.mxu0  ;;  %3191 = vmatmul.mubr.f32.gmra.mxu1 %v4619_v1 }
 0x685   : > { %4632 = vtanh.f32 %v2863_v2  ;;  %v2867_v5 = vadd.f32 %v2866_v3, %v5917_v17 }
 0x686   : > { %v4621_v4 = vpop.eup %4620  ;;  %4634 = vtanh.f32 %v2861_v62  ;;  %v2868_v6 = vpop.f32.mrf.mxu0 }
 0x687   : > { %v4623_v7 = vpop.eup %4622  ;;  %v2869_v8 = vadd.f32 %v2868_v6, %v5921_v18  ;;  %3195 = vmatprep.mubr.f32.mxu1 %v4621_v4 }
 0x688   : > { %v2872_v9 = vpop.f32.mrf.mxu0  ;;  %3196 = vmatmul.mubr.f32.gmra.mxu1 %v4623_v7 }
 0x689   : > { %4636 = vtanh.f32 %v2869_v8  ;;  %v2873_v10 = vadd.f32 %v2872_v9, %v5917_v17 }
 0x68a   : > { %v4625_v42 = vpop.eup %4624  ;;  %4638 = vtanh.f32 %v2867_v5  ;;  %v2874_v11 = vpop.f32.mrf.mxu0 }
 0x68b   : > { %v4627_v12 = vpop.eup %4626  ;;  %v2875_v13 = vadd.f32 %v2874_v11, %v5921_v18  ;;  %3200 = vmatprep.mubr.f32.mxu1 %v4625_v42 }
 0x68c   : > { %v2878_v14 = vpop.f32.mrf.mxu0  ;;  %3201 = vmatmul.mubr.f32.gmra.mxu1 %v4627_v12 }
 0x68d   : > { %4640 = vtanh.f32 %v2875_v13  ;;  %v2879_v16 = vadd.f32 %v2878_v14, %v5917_v17 }
 0x68e   : > { %v4629_v15 = vpop.eup %4628  ;;  %4642 = vtanh.f32 %v2873_v10  ;;  %v2880_v29 = vpop.f32.mrf.mxu0 }
 0x68f   : > { %v4631_v19 = vpop.eup %4630  ;;  %v2881_v20 = vadd.f32 %v2880_v29, %v5921_v18  ;;  %3205 = vmatprep.mubr.f32.mxu1 %v4629_v15 }
 0x690   : > { %v2884_v21 = vpop.f32.mrf.mxu0  ;;  %3206 = vmatmul.mubr.f32.gmra.mxu1 %v4631_v19 }
 0x691   : > { %4644 = vtanh.f32 %v2881_v20  ;;  %v2885_v22 = vadd.f32 %v2884_v21, %v5917_v17 }
 0x692   : > { %v4633_v0 = vpop.eup %4632  ;;  %4646 = vtanh.f32 %v2879_v16  ;;  %v2886_v23 = vpop.f32.mrf.mxu0 }
 0x693   : > { %v4635_v24 = vpop.eup %4634  ;;  %v2887_v25 = vadd.f32 %v2886_v23, %v5921_v18  ;;  %3210 = vmatprep.mubr.f32.mxu1 %v4633_v0 }
 0x694   : > { %v2890_v38 = vpop.f32.mrf.mxu0  ;;  %3211 = vmatmul.mubr.f32.gmra.mxu1 %v4635_v24 }
 0x695   : > { %4648 = vtanh.f32 %v2887_v25  ;;  %v2891_v40 = vadd.f32 %v2890_v38, %v5917_v17 }
 0x696   : > { %v4637_v37 = vpop.eup %4636  ;;  %4650 = vtanh.f32 %v2885_v22  ;;  %v2892_v26 = vpop.f32.mrf.mxu0 }
 0x697   : > { %v4639_v27 = vpop.eup %4638  ;;  %v2893_v28 = vadd.f32 %v2892_v26, %v5921_v18  ;;  %3215 = vmatprep.mubr.f32.mxu1 %v4637_v37 }
 0x698   : > { %v2896_v30 = vpop.f32.mrf.mxu0  ;;  %3216 = vmatmul.mubr.f32.gmra.mxu1 %v4639_v27 }
 0x699   : > { %4652 = vtanh.f32 %v2893_v28  ;;  %v2897_v43 = vadd.f32 %v2896_v30, %v5917_v17 }
 0x69a   : > { %v4641_v31 = vpop.eup %4640  ;;  %4654 = vtanh.f32 %v2891_v40  ;;  %v2898_v32 = vpop.f32.mrf.mxu0 }
 0x69b   : > { %v4643_v33 = vpop.eup %4642  ;;  %v2899_v34 = vadd.f32 %v2898_v32, %v5921_v18  ;;  %3220 = vmatprep.mubr.f32.mxu1 %v4641_v31 }
 0x69c   : > { %v2902_v35 = vpop.f32.mrf.mxu0  ;;  %3221 = vmatmul.mubr.f32.gmra.mxu1 %v4643_v33 }
 0x69d   : > { %4656 = vtanh.f32 %v2899_v34  ;;  %v2903_v39 = vadd.f32 %v2902_v35, %v5917_v17 }
 0x69e   : > { %v4645_v36 = vpop.eup %4644  ;;  %4658 = vtanh.f32 %v2897_v43  ;;  %v2904_v41 = vpop.f32.mrf.mxu0 }
 0x69f   : > { %v4647_v44 = vpop.eup %4646  ;;  %v2905_v45 = vadd.f32 %v2904_v41, %v5921_v18  ;;  %3225 = vmatprep.mubr.f32.mxu1 %v4645_v36 }
 0x6a0   : > { %v2908_v46 = vpop.f32.mrf.mxu0  ;;  %3226 = vmatmul.mubr.f32.gmra.mxu1 %v4647_v44 }
 0x6a1   : > { %4660 = vtanh.f32 %v2905_v45  ;;  %v2909_v48 = vadd.f32 %v2908_v46, %v5917_v17 }
 0x6a2   : > { %v4649_v47 = vpop.eup %4648  ;;  %4662 = vtanh.f32 %v2903_v39  ;;  %v2910_v49 = vpop.f32.mrf.mxu0 }
 0x6a3   : > { %v4651_v50 = vpop.eup %4650  ;;  %v2911_v51 = vadd.f32 %v2910_v49, %v5921_v18  ;;  %3230 = vmatprep.mubr.f32.mxu1 %v4649_v47 }
 0x6a4   : > { %v2914_v52 = vpop.f32.mrf.mxu0  ;;  %3231 = vmatmul.mubr.f32.gmra.mxu1 %v4651_v50 }
 0x6a5   : > { %4664 = vtanh.f32 %v2911_v51  ;;  %v2915_v54 = vadd.f32 %v2914_v52, %v5917_v17 }
 0x6a6   : > { %v4653_v53 = vpop.eup %4652  ;;  %4666 = vtanh.f32 %v2909_v48  ;;  %v2916_v55 = vpop.f32.mrf.mxu0 }
 0x6a7   : > { %v4655_v56 = vpop.eup %4654  ;;  %v2917_v57 = vadd.f32 %v2916_v55, %v5921_v18  ;;  %3235 = vmatprep.mubr.f32.mxu1 %v4653_v53 }
 0x6a8   : > { %v2920_v58 = vpop.f32.mrf.mxu0  ;;  %3236 = vmatmul.mubr.f32.gmra.mxu1 %v4655_v56 }
 0x6a9   : > { %4668 = vtanh.f32 %v2917_v57  ;;  %v2921_v60 = vadd.f32 %v2920_v58, %v5917_v17 }
 0x6aa   : > { %v4657_v59 = vpop.eup %4656  ;;  %4670 = vtanh.f32 %v2915_v54  ;;  %v2922_v61 = vpop.f32.mrf.mxu0 }
 0x6ab   : > { %v4659_v62 = vpop.eup %4658  ;;  %v2923_v63 = vadd.f32 %v2922_v61, %v5921_v18  ;;  %3240 = vmatprep.mubr.f32.mxu1 %v4657_v59 }
 0x6ac   : > { %v2926_v1 = vpop.f32.mrf.mxu0  ;;  %3241 = vmatmul.mubr.f32.gmra.mxu1 %v4659_v62 }
 0x6ad   : > { %4672 = vtanh.f32 %v2923_v63  ;;  %v2927_v3 = vadd.f32 %v2926_v1, %v5917_v17 }
 0x6ae   : > { %v4661_v2 = vpop.eup %4660  ;;  %4674 = vtanh.f32 %v2921_v60  ;;  %v2928_v4 = vpop.f32.mrf.mxu0 }
 0x6af   : > { %v4663_v5 = vpop.eup %4662  ;;  %v2929_v6 = vadd.f32 %v2928_v4, %v5921_v18  ;;  %3245 = vmatprep.mubr.f32.mxu1 %v4661_v2 }
 0x6b0   : > { %v2932_v7 = vpop.f32.mrf.mxu0  ;;  %3246 = vmatmul.mubr.f32.gmra.mxu1 %v4663_v5 }
 0x6b1   : > { %4676 = vtanh.f32 %v2929_v6  ;;  %v2933_v9 = vadd.f32 %v2932_v7, %v5917_v17 }
 0x6b2   : > { %v4665_v8 = vpop.eup %4664  ;;  %4678 = vtanh.f32 %v2927_v3  ;;  %v2934_v42 = vpop.f32.mrf.mxu0 }
 0x6b3   : > { %v4667_v10 = vpop.eup %4666  ;;  %v2935_v11 = vadd.f32 %v2934_v42, %v5921_v18  ;;  %3250 = vmatprep.mubr.f32.mxu1 %v4665_v8 }
 0x6b4   : > { %v2938_v12 = vpop.f32.mrf.mxu0  ;;  %3251 = vmatmul.mubr.f32.gmra.mxu1 %v4667_v10 }
 0x6b5   : > { %4680 = vtanh.f32 %v2935_v11  ;;  %v2939_v14 = vadd.f32 %v2938_v12, %v5917_v17 }
 0x6b6   : > { %v4669_v13 = vpop.eup %4668  ;;  %4682 = vtanh.f32 %v2933_v9  ;;  %v2940_v15 = vpop.f32.mrf.mxu0 }
 0x6b7   : > { %v4671_v16 = vpop.eup %4670  ;;  %v2941_v29 = vadd.f32 %v2940_v15, %v5921_v18  ;;  %3255 = vmatprep.mubr.f32.mxu1 %v4669_v13 }
 0x6b8   : > { %v2944_v19 = vpop.f32.mrf.mxu0  ;;  %3256 = vmatmul.mubr.f32.gmra.mxu1 %v4671_v16 }
 0x6b9   : > { %4684 = vtanh.f32 %v2941_v29  ;;  %v2945_v21 = vadd.f32 %v2944_v19, %v5917_v17 }
 0x6ba   : > { %v4673_v20 = vpop.eup %4672  ;;  %4686 = vtanh.f32 %v2939_v14  ;;  %v2946_v0 = vpop.f32.mrf.mxu0 }
 0x6bb   : > { %v4675_v22 = vpop.eup %4674  ;;  %v2947_v23 = vadd.f32 %v2946_v0, %v5921_v18  ;;  %3260 = vmatprep.mubr.f32.mxu1 %v4673_v20 }
 0x6bc   : > { %v2950_v24 = vpop.f32.mrf.mxu0  ;;  %3261 = vmatmul.mubr.f32.gmra.mxu1 %v4675_v22 }
 0x6bd   : > { %4688 = vtanh.f32 %v2947_v23  ;;  %v2951_v38 = vadd.f32 %v2950_v24, %v5917_v17 }
 0x6be   : > { %v4677_v25 = vpop.eup %4676  ;;  %4690 = vtanh.f32 %v2945_v21  ;;  %v2952_v37 = vpop.f32.mrf.mxu0 }
 0x6bf   : > { %v4679_v40 = vpop.eup %4678  ;;  %v2953_v26 = vadd.f32 %v2952_v37, %v5921_v18  ;;  %3265 = vmatprep.mubr.f32.mxu1 %v4677_v25 }
 0x6c0   : > { %v2956_v27 = vpop.f32.mrf.mxu0  ;;  %3266 = vmatmul.mubr.f32.gmra.mxu1 %v4679_v40 }
 0x6c1   : > { %4692 = vtanh.f32 %v2953_v26  ;;  %v2957_v30 = vadd.f32 %v2956_v27, %v5917_v17 }
 0x6c2   : > { %v4681_v28 = vpop.eup %4680  ;;  %4694 = vtanh.f32 %v2951_v38  ;;  %v2958_v31 = vpop.f32.mrf.mxu0 }
 0x6c3   : > { %v4683_v43 = vpop.eup %4682  ;;  %v2959_v32 = vadd.f32 %v2958_v31, %v5921_v18  ;;  %3270 = vmatprep.mubr.f32.mxu1 %v4681_v28 }
 0x6c4   : > { %v2962_v33 = vpop.f32.mrf.mxu0  ;;  %3271 = vmatmul.mubr.f32.gmra.mxu1 %v4683_v43 }
 0x6c5   : > { %4696 = vtanh.f32 %v2959_v32  ;;  %v2963_v35 = vadd.f32 %v2962_v33, %v5917_v17 }
 0x6c6   : > { %v4685_v34 = vpop.eup %4684  ;;  %4698 = vtanh.f32 %v2957_v30  ;;  %v2964_v36 = vpop.f32.mrf.mxu0 }
 0x6c7   : > { %v4687_v39 = vpop.eup %4686  ;;  %v2965_v41 = vadd.f32 %v2964_v36, %v5921_v18  ;;  %3275 = vmatprep.mubr.f32.mxu1 %v4685_v34 }
 0x6c8   : > { %v2968_v44 = vpop.f32.mrf.mxu0  ;;  %3276 = vmatmul.mubr.f32.gmra.mxu1 %v4687_v39 }
 0x6c9   : > { %4700 = vtanh.f32 %v2965_v41  ;;  %v2969_v46 = vadd.f32 %v2968_v44, %v5917_v17 }
 0x6ca   : > { %v4689_v45 = vpop.eup %4688  ;;  %4702 = vtanh.f32 %v2963_v35  ;;  %v2970_v47 = vpop.f32.mrf.mxu0 }
 0x6cb   : > { %v4691_v48 = vpop.eup %4690  ;;  %v2971_v49 = vadd.f32 %v2970_v47, %v5921_v18  ;;  %3280 = vmatprep.mubr.f32.mxu1 %v4689_v45 }
 0x6cc   : > { %v2974_v50 = vpop.f32.mrf.mxu0  ;;  %3281 = vmatmul.mubr.f32.gmra.mxu1 %v4691_v48 }
 0x6cd   : > { %4704 = vtanh.f32 %v2971_v49  ;;  %v2975_v52 = vadd.f32 %v2974_v50, %v5917_v17 }
 0x6ce   : > { %v4693_v51 = vpop.eup %4692  ;;  %4706 = vtanh.f32 %v2969_v46  ;;  %v2976_v53 = vpop.f32.mrf.mxu0 }
 0x6cf   : > { %v4695_v54 = vpop.eup %4694  ;;  %v2977_v55 = vadd.f32 %v2976_v53, %v5921_v18  ;;  %3285 = vmatprep.mubr.f32.mxu1 %v4693_v51 }
 0x6d0   : > { %v2980_v56 = vpop.f32.mrf.mxu0  ;;  %3286 = vmatmul.mubr.f32.gmra.mxu1 %v4695_v54 }
 0x6d1   : > { %4708 = vtanh.f32 %v2977_v55  ;;  %v2981_v58 = vadd.f32 %v2980_v56, %v5917_v17 }
 0x6d2   : > { %v4697_v57 = vpop.eup %4696  ;;  %4710 = vtanh.f32 %v2975_v52  ;;  %v2982_v59 = vpop.f32.mrf.mxu0 }
 0x6d3   : > { %v4699_v60 = vpop.eup %4698  ;;  %v2983_v61 = vadd.f32 %v2982_v59, %v5921_v18  ;;  %3290 = vmatprep.mubr.f32.mxu1 %v4697_v57 }
 0x6d4   : > { %v2986_v62 = vpop.f32.mrf.mxu0  ;;  %3291 = vmatmul.mubr.f32.gmra.mxu1 %v4699_v60 }
 0x6d5   : > { %4712 = vtanh.f32 %v2983_v61  ;;  %v2987_v1 = vadd.f32 %v2986_v62, %v5917_v17 }
 0x6d6   : > { %v4701_v63 = vpop.eup %4700  ;;  %4714 = vtanh.f32 %v2981_v58  ;;  %v2988_v2 = vpop.f32.mrf.mxu0 }
 0x6d7   : > { %v4703_v3 = vpop.eup %4702  ;;  %v2989_v4 = vadd.f32 %v2988_v2, %v5921_v18  ;;  %3295 = vmatprep.mubr.f32.mxu1 %v4701_v63 }
 0x6d8   : > { %v2992_v5 = vpop.f32.mrf.mxu0  ;;  %3296 = vmatmul.mubr.f32.gmra.mxu1 %v4703_v3 }
 0x6d9   : > { %4716 = vtanh.f32 %v2989_v4  ;;  %v2993_v7 = vadd.f32 %v2992_v5, %v5917_v17 }
 0x6da   : > { %v4705_v6 = vpop.eup %4704  ;;  %4718 = vtanh.f32 %v2987_v1  ;;  %v2994_v8 = vpop.f32.mrf.mxu0 }
 0x6db   : > { %v4707_v9 = vpop.eup %4706  ;;  %v2995_v42 = vadd.f32 %v2994_v8, %v5921_v18  ;;  %3300 = vmatprep.mubr.f32.mxu1 %v4705_v6 }
 0x6dc   : > { %v2998_v10 = vpop.f32.mrf.mxu0  ;;  %3301 = vmatmul.mubr.f32.gmra.mxu1 %v4707_v9 }
 0x6dd   : > { %4720 = vtanh.f32 %v2995_v42  ;;  %v2999_v12 = vadd.f32 %v2998_v10, %v5917_v17 }
 0x6de   : > { %v4709_v11 = vpop.eup %4708  ;;  %4722 = vtanh.f32 %v2993_v7  ;;  %v3000_v13 = vpop.f32.mrf.mxu0 }
 0x6df   : > { %v4711_v14 = vpop.eup %4710  ;;  %v3001_v15 = vadd.f32 %v3000_v13, %v5921_v18  ;;  %3305 = vmatprep.mubr.f32.mxu1 %v4709_v11  ;;  %v5990_v18 = vld [vmem:[%s6180_s18] ss:$0 sm:$0xff] }
 0x6e0   : > { %3306 = vmatmul.mubr.f32.gmra.mxu1 %v4711_v14 }
 0x6e1   : > { %4724 = vtanh.f32 %v3001_v15 }
 0x6e2   : > { %v4713_v16 = vpop.eup %4712  ;;  %4726 = vtanh.f32 %v2999_v12 }
 0x6e3   : > { %v4715_v29 = vpop.eup %4714  ;;  %3310 = vmatprep.mubr.f32.mxu1 %v4713_v16 }
 0x6e4   : > { %3311 = vmatmul.mubr.f32.gmra.mxu1 %v4715_v29 }
 0x6e6   : > { %v4717_v19 = vpop.eup %4716 }
 0x6e7   : > { %v4719_v20 = vpop.eup %4718  ;;  %3315 = vmatprep.mubr.f32.mxu1 %v4717_v19 }
 0x6e8   : > { %3316 = vmatmul.mubr.f32.gmra.mxu1 %v4719_v20 }
 0x6ea   : > { %v4721_v21 = vpop.eup %4720 }
 0x6eb   : > { %v4723_v0 = vpop.eup %4722  ;;  %3320 = vmatprep.mubr.f32.mxu1 %v4721_v21 }
 0x6ec   : > { %3321 = vmatmul.mubr.f32.gmra.mxu1 %v4723_v0 }
 0x6ee   : > { %v4725_v17 = vpop.eup %4724 }
 0x6ef   : > { %v4727_v22 = vpop.eup %4726  ;;  %3325 = vmatprep.mubr.f32.mxu1 %v4725_v17 }
 0x6f0   : > { %3326 = vmatmul.mubr.f32.gmra.mxu1 %v4727_v22 }
 0x734   : > { %v3172_v23 = vpop.f32.mrf.mxu1 }
 0x735   : > { %v3173_v24 = vadd.f32 %v5990_v18, %v3172_v23 }
 0x736   : > { %v3174_v25 = vpop.f32.mrf.mxu1 }
 0x737   : > { %3331 = vst [vmem:[%s5995_s14] sm:$0xff] %v3173_v24 }
 0x738   : > { %v3177_v38 = vpop.f32.mrf.mxu1 }
 0x739   : > { %v3178_v37 = vadd.f32 %v5990_v18, %v3177_v38 }
 0x73a   : > { %v3179_v40 = vpop.f32.mrf.mxu1 }
 0x73b   : > { %3332 = vst [vmem:[%s5995_s14 + $0x8] sm:$0xff] %v3178_v37 }
 0x73c   : > { %v3182_v26 = vpop.f32.mrf.mxu1 }
 0x73d   : > { %v3183_v27 = vadd.f32 %v5990_v18, %v3182_v26 }
 0x73e   : > { %v3184_v28 = vpop.f32.mrf.mxu1 }
 0x73f   : > { %3333 = vst [vmem:[%s5995_s14 + $0x10] sm:$0xff] %v3183_v27 }
 0x740   : > { %v3187_v30 = vpop.f32.mrf.mxu1 }
 0x741   : > { %v3188_v31 = vadd.f32 %v5990_v18, %v3187_v30 }
 0x742   : > { %v3189_v43 = vpop.f32.mrf.mxu1 }
 0x743   : > { %3334 = vst [vmem:[%s5995_s14 + $0x18] sm:$0xff] %v3188_v31 }
 0x744   : > { %v3192_v32 = vpop.f32.mrf.mxu1 }
 0x745   : > { %v3193_v33 = vadd.f32 %v5990_v18, %v3192_v32 }
 0x746   : > { %v3194_v34 = vpop.f32.mrf.mxu1 }
 0x747   : > { %3335 = vst [vmem:[%s5995_s14 + $0x20] sm:$0xff] %v3193_v33 }
 0x748   : > { %v3197_v35 = vpop.f32.mrf.mxu1 }
 0x749   : > { %v3198_v36 = vadd.f32 %v5990_v18, %v3197_v35 }
 0x74a   : > { %v3199_v39 = vpop.f32.mrf.mxu1 }
 0x74b   : > { %3336 = vst [vmem:[%s5995_s14 + $0x28] sm:$0xff] %v3198_v36 }
 0x74c   : > { %v3202_v41 = vpop.f32.mrf.mxu1 }
 0x74d   : > { %v3203_v44 = vadd.f32 %v5990_v18, %v3202_v41 }
 0x74e   : > { %v3204_v45 = vpop.f32.mrf.mxu1 }
 0x74f   : > { %3337 = vst [vmem:[%s5995_s14 + $0x30] sm:$0xff] %v3203_v44 }
 0x750   : > { %v3207_v46 = vpop.f32.mrf.mxu1 }
 0x751   : > { %v3208_v47 = vadd.f32 %v5990_v18, %v3207_v46 }
 0x752   : > { %v3209_v48 = vpop.f32.mrf.mxu1 }
 0x753   : > { %3338 = vst [vmem:[%s5995_s14 + $0x38] sm:$0xff] %v3208_v47 }
 0x754   : > { %v3212_v49 = vpop.f32.mrf.mxu1 }
 0x755   : > { %v3213_v50 = vadd.f32 %v5990_v18, %v3212_v49 }
 0x756   : > { %v3214_v51 = vpop.f32.mrf.mxu1 }
 0x757   : > { %3339 = vst [vmem:[%s5995_s14 + $0x40] sm:$0xff] %v3213_v50 }
 0x758   : > { %v3217_v52 = vpop.f32.mrf.mxu1 }
 0x759   : > { %v3218_v53 = vadd.f32 %v5990_v18, %v3217_v52 }
 0x75a   : > { %v3219_v54 = vpop.f32.mrf.mxu1 }
 0x75b   : > { %3340 = vst [vmem:[%s5995_s14 + $0x48] sm:$0xff] %v3218_v53 }
 0x75c   : > { %v3222_v55 = vpop.f32.mrf.mxu1 }
 0x75d   : > { %v3223_v56 = vadd.f32 %v5990_v18, %v3222_v55 }
 0x75e   : > { %v3224_v57 = vpop.f32.mrf.mxu1 }
 0x75f   : > { %3341 = vst [vmem:[%s5995_s14 + $0x50] sm:$0xff] %v3223_v56 }
 0x760   : > { %v3227_v58 = vpop.f32.mrf.mxu1 }
 0x761   : > { %v3228_v59 = vadd.f32 %v5990_v18, %v3227_v58 }
 0x762   : > { %v3229_v60 = vpop.f32.mrf.mxu1 }
 0x763   : > { %3342 = vst [vmem:[%s5995_s14 + $0x58] sm:$0xff] %v3228_v59 }
 0x764   : > { %v3232_v61 = vpop.f32.mrf.mxu1 }
 0x765   : > { %v3233_v62 = vadd.f32 %v5990_v18, %v3232_v61 }
 0x766   : > { %v3234_v63 = vpop.f32.mrf.mxu1 }
 0x767   : > { %3343 = vst [vmem:[%s5995_s14 + $0x60] sm:$0xff] %v3233_v62 }
 0x768   : > { %v3237_v1 = vpop.f32.mrf.mxu1 }
 0x769   : > { %v3238_v2 = vadd.f32 %v5990_v18, %v3237_v1 }
 0x76a   : > { %v3239_v3 = vpop.f32.mrf.mxu1 }
 0x76b   : > { %3344 = vst [vmem:[%s5995_s14 + $0x68] sm:$0xff] %v3238_v2 }
 0x76c   : > { %v3242_v4 = vpop.f32.mrf.mxu1 }
 0x76d   : > { %v3243_v5 = vadd.f32 %v5990_v18, %v3242_v4 }
 0x76e   : > { %v3244_v6 = vpop.f32.mrf.mxu1 }
 0x76f   : > { %3345 = vst [vmem:[%s5995_s14 + $0x70] sm:$0xff] %v3243_v5 }
 0x770   : > { %v3247_v7 = vpop.f32.mrf.mxu1 }
 0x771   : > { %v3248_v8 = vadd.f32 %v5990_v18, %v3247_v7 }
 0x772   : > { %v3249_v9 = vpop.f32.mrf.mxu1 }
 0x773   : > { %3346 = vst [vmem:[%s5995_s14 + $0x78] sm:$0xff] %v3248_v8 }
 0x774   : > { %v3252_v42 = vpop.f32.mrf.mxu1 }
 0x775   : > { %v3253_v10 = vadd.f32 %v5990_v18, %v3252_v42 }
 0x776   : > { %v3254_v11 = vpop.f32.mrf.mxu1 }
 0x777   : > { %3347 = vst [vmem:[%s5995_s14 + $0x80] sm:$0xff] %v3253_v10 }
 0x778   : > { %v3257_v12 = vpop.f32.mrf.mxu1 }
 0x779   : > { %v3258_v13 = vadd.f32 %v5990_v18, %v3257_v12 }
 0x77a   : > { %v3259_v14 = vpop.f32.mrf.mxu1 }
 0x77b   : > { %3348 = vst [vmem:[%s5995_s14 + $0x88] sm:$0xff] %v3258_v13 }
 0x77c   : > { %v3262_v15 = vpop.f32.mrf.mxu1 }
 0x77d   : > { %v3263_v16 = vadd.f32 %v5990_v18, %v3262_v15 }
 0x77e   : > { %v3264_v29 = vpop.f32.mrf.mxu1 }
 0x77f   : > { %3349 = vst [vmem:[%s5995_s14 + $0x90] sm:$0xff] %v3263_v16 }
 0x780   : > { %v3267_v19 = vpop.f32.mrf.mxu1 }
 0x781   : > { %v3268_v20 = vadd.f32 %v5990_v18, %v3267_v19 }
 0x782   : > { %v3269_v21 = vpop.f32.mrf.mxu1 }
 0x783   : > { %3350 = vst [vmem:[%s5995_s14 + $0x98] sm:$0xff] %v3268_v20 }
 0x784   : > { %v3272_v0 = vpop.f32.mrf.mxu1 }
 0x785   : > { %v3273_v17 = vadd.f32 %v5990_v18, %v3272_v0 }
 0x786   : > { %v3274_v22 = vpop.f32.mrf.mxu1 }
 0x787   : > { %3351 = vst [vmem:[%s5995_s14 + $0xa0] sm:$0xff] %v3273_v17 }
 0x788   : > { %v3277_v23 = vpop.f32.mrf.mxu1 }
 0x789   : > { %v3278_v24 = vadd.f32 %v5990_v18, %v3277_v23 }
 0x78a   : > { %v3279_v25 = vpop.f32.mrf.mxu1 }
 0x78b   : > { %3352 = vst [vmem:[%s5995_s14 + $0xa8] sm:$0xff] %v3278_v24 }
 0x78c   : > { %v3282_v38 = vpop.f32.mrf.mxu1 }
 0x78d   : > { %v3283_v37 = vadd.f32 %v5990_v18, %v3282_v38 }
 0x78e   : > { %v3284_v40 = vpop.f32.mrf.mxu1 }
 0x78f   : > { %3353 = vst [vmem:[%s5995_s14 + $0xb0] sm:$0xff] %v3283_v37 }
 0x790   : > { %v3287_v26 = vpop.f32.mrf.mxu1 }
 0x791   : > { %v3288_v27 = vadd.f32 %v5990_v18, %v3287_v26 }
 0x792   : > { %v3289_v28 = vpop.f32.mrf.mxu1 }
 0x793   : > { %3354 = vst [vmem:[%s5995_s14 + $0xb8] sm:$0xff] %v3288_v27 }
 0x794   : > { %v3292_v30 = vpop.f32.mrf.mxu1 }
 0x795   : > { %v3293_v31 = vadd.f32 %v5990_v18, %v3292_v30 }
 0x796   : > { %v3294_v43 = vpop.f32.mrf.mxu1 }
 0x797   : > { %3355 = vst [vmem:[%s5995_s14 + $0xc0] sm:$0xff] %v3293_v31 }
 0x798   : > { %v3297_v32 = vpop.f32.mrf.mxu1 }
 0x799   : > { %v3298_v33 = vadd.f32 %v5990_v18, %v3297_v32 }
 0x79a   : > { %v3299_v34 = vpop.f32.mrf.mxu1 }
 0x79b   : > { %3356 = vst [vmem:[%s5995_s14 + $0xc8] sm:$0xff] %v3298_v33 }
 0x79c   : > { %v3302_v35 = vpop.f32.mrf.mxu1 }
 0x79d   : > { %v3303_v36 = vadd.f32 %v5990_v18, %v3302_v35 }
 0x79e   : > { %v3304_v39 = vpop.f32.mrf.mxu1 }
 0x79f   : > { %3357 = vst [vmem:[%s5995_s14 + $0xd0] sm:$0xff] %v3303_v36 }
 0x7a0   : > { %v3307_v41 = vpop.f32.mrf.mxu1 }
 0x7a1   : > { %v3308_v44 = vadd.f32 %v5990_v18, %v3307_v41 }
 0x7a2   : > { %v3309_v45 = vpop.f32.mrf.mxu1 }
 0x7a3   : > { %3358 = vst [vmem:[%s5995_s14 + $0xd8] sm:$0xff] %v3308_v44 }
 0x7a4   : > { %v3312_v46 = vpop.f32.mrf.mxu1 }
 0x7a5   : > { %v3313_v47 = vadd.f32 %v5990_v18, %v3312_v46 }
 0x7a6   : > { %v3314_v48 = vpop.f32.mrf.mxu1 }
 0x7a7   : > { %3359 = vst [vmem:[%s5995_s14 + $0xe0] sm:$0xff] %v3313_v47 }
 0x7a8   : > { %v3317_v49 = vpop.f32.mrf.mxu1 }
 0x7a9   : > { %v3318_v50 = vadd.f32 %v5990_v18, %v3317_v49 }
 0x7aa   : > { %v3319_v51 = vpop.f32.mrf.mxu1 }
 0x7ab   : > { %3360 = vst [vmem:[%s5995_s14 + $0xe8] sm:$0xff] %v3318_v50 }
 0x7ac   : > { %v3322_v52 = vpop.f32.mrf.mxu1 }
 0x7ad   : > { %v3323_v53 = vadd.f32 %v5990_v18, %v3322_v52 }
 0x7ae   : > { %v3324_v54 = vpop.f32.mrf.mxu1 }
 0x7af   : > { %3361 = vst [vmem:[%s5995_s14 + $0xf0] sm:$0xff] %v3323_v53 }
 0x7b0   : > { %v3327_v55 = vpop.f32.mrf.mxu1 }
 0x7b1   : > { %v3328_v56 = vadd.f32 %v5990_v18, %v3327_v55 }
 0x7b2   : > { %v3329_v57 = vpop.f32.mrf.mxu1 }
 0x7b3   : > { %3362 = vst [vmem:[%s5995_s14 + $0xf8] sm:$0xff] %v3328_v56 }
 0x7b4   : > { %4873 = shalt.err (!%p4870_p3)
}
 0x7b5   : > { %s4874_s21 = scalar_lea.hbm %s6063_s22, 4096  ;;  %s4878_s18 = scalar_lea.hbm %s6181_s19, 8192 }
 0x7b6   : > { %p4875_p6 = scmp.ne.s32.totalorder %s6063_s22, %s4874_s21  ;;  %p4879_p13 = scmp.lt.s32.totalorder %s6063_s22, %s6181_s19 }
 0x7b7   : > { %p4880_p11 = scmp.lt.s32.totalorder %s4878_s18, %s4874_s21 }
 0x7b8   : > { %p4876_p4 = pnand %p4875_p6, %p6182_p2 }
 0x7b9   : > { %p4881_p5 = por %p4880_p11, %p4879_p13 }
 0x7ba   : > { %p4877_p8 = pneg %p4876_p4 }
 0x7bc   : > { %p4882_p1 = pnand %p4881_p5, %p4877_p8 }
 0x7be   : > { %4885 = shalt.err (!%p4882_p1)
}
 0x7bf   : > { %s4945_s16 = smov 128   ;;  %s4946_s1 = smov 8  }
 0x7c0   : > { %4076 = dma.vmem_to_hbm [thread:$0]  (%p6182_p2), %s6065_s13, 4096, %s6063_s22, %s3364_s23, %s4945_s16, %s4945_s16, %s4946_s1  }
 0x7c1 PF: > { %s6183_s28 = sld [smem:[#allocation16_spill]]  ;;  %p6186_p7 = scmp.ge.s32.totalorder %s4932_s27, 2 }
 0x7c2   : > { %s6184_s20 = sld [smem:[#allocation18_spill]] }
 0x7c7   : > { %s3392_s24 = sand.u32 1, %s6183_s28  }
 0x7c8   : > { %p6185_p12 = scmp.ne.s32.totalorder %s6184_s20, 0  ;;  %s3393_s29 = scalar_lea.sflag [#allocation4], %s3392_s24 }
 0x7ca   : > { %p4096_p9 = pnand %p6186_p7, %p6185_p12 }
 0x7cc   : > { %p4097_p0 = pneg %p4096_p9 }
 0x7ce   : > { %4915 = dma.done.wait (%p4097_p0), %s3393_s29, 4096  }
 0x7cf   : > { %4917 = vsyncadd (%p4097_p0), %s3393_s29, 4294963200  ;;  %s6187_s27 = sld [smem:[#allocation19_spill]]  ;;  %s6190_s24 = smov %s4924_s25 }
 0x7d0   : > { %s6188_s21 = sld [smem:[#allocation17_spill]] }
 0x7d1   : > { %s6189_s26 = sld [smem:[#allocation20_spill]] }
 0x7d5   : > { %p32_p10 = scmp.ge.s32.totalorder %s6187_s27, 4  }
 0x7d6   : > { %s6191_s25 = smov %s6188_s21 }
 0x7d7   :  { %34 = sbr.rel (!%p32_p10) target bundleno = 17 (0x11), region = 149 }
 0x7dc   :  { %3398 = vsyncpa [#allocation3], 1 }
 0x7dd   :  { %3400 = vsyncpa [#allocation3 + $0x1], 1 }
 0x7de   :  { %3401 = vsyncpa [#allocation6], 1 }
 0x7df   :  { %3402 = vsyncpa [#allocation9], 1 }
 0x7e0   :  { %3403 = vsyncpa [#allocation4], 1 }
 0x7e1   :  { %3405 = vsyncpa [#allocation4 + $0x1], 1 }

</bundles_post_ra>
